<compile_context>
chip_gen: v7x
topology: tpu7x:2x2x1
jax: 0.10.0
libtpu: 0.0.40
codegen_flags: <defaults>
</compile_context>

<pallas_src>
import functools

import jax
import jax.numpy as jnp
import numpy as np
from jax.experimental import pallas as pl
from jax.experimental.pallas import tpu as pltpu


# ----------------------------------------------------------------------------
# Pallas kernel: one grid step = `bt` batch elements (window-sized n fits VMEM).
# ----------------------------------------------------------------------------
def agent_attention_kernel(x_ref, wq_ref, wk_ref, wv_ref, bq_ref, bk_ref, bv_ref,
                           wp_ref, bp_ref, pool_ref, pb_ref, ab_ref,
                           dwc_mask_ref, dwc_w_ref, dwc_b_ref, o_ref, *, width):
    bt, n, c = x_ref.shape
    num_heads, agent_num, _ = pb_ref.shape
    hd = c // num_heads
    scale = hd ** -0.5
    f32, bf16 = jnp.float32, jnp.bfloat16
    w = width

    # ---- qkv projections: batch folded into M = bt*n, bf16 operands on MXU --
    # (three (c,c) dots because c < 128; fuse into one (c,3c) dot when c%128==0)
    x2 = x_ref[...].reshape(bt * n, c).astype(bf16)
    q = jnp.dot(x2, wq_ref[...], preferred_element_type=f32) + bq_ref[...]
    k = jnp.dot(x2, wk_ref[...], preferred_element_type=f32) + bk_ref[...]
    v = jnp.dot(x2, wv_ref[...], preferred_element_type=f32) + bv_ref[...]
    q3 = q.reshape(bt, n, c)                       # f32 (feeds pool + heads)
    v3f = v.reshape(bt, n, c)                      # f32 (feeds DWC)
    q3b = q3.astype(bf16)
    k3b = k.astype(bf16).reshape(bt, n, c)
    v3b = v3f.astype(bf16)

    # ---- agent tokens: adaptive avg pool of q as ONE 2-D dot ----------------
    # pool (A, n) stays f32 (exact 1/cnt weights); N = bt*c lanes on the MXU.
    q_nT = jnp.transpose(q3, (1, 0, 2)).reshape(n, bt * c)
    agent_flat = jnp.dot(pool_ref[...], q_nT, preferred_element_type=f32)    # (A, bt*c)
    agent = jnp.transpose(agent_flat.reshape(agent_num, bt, c), (1, 0, 2))   # (bt, A, c)
    agent3b = agent.astype(bf16)

    # ---- head-major form: (bt*H, tokens, hd), one relayout per tensor -------
    def heads(t3):
        tokens = t3.shape[1]
        t4 = t3.reshape(bt, tokens, num_heads, hd)
        return jnp.transpose(t4, (0, 2, 1, 3)).reshape(bt * num_heads, tokens, hd)

    qh, kh, vh, ah = heads(q3b), heads(k3b), heads(v3b), heads(agent3b)

    # ---- stage 1: agents attend to tokens ------------------------------------
    s1 = jnp.einsum('gad,gnd->gan', ah, kh, preferred_element_type=f32) * scale
    s1 = s1.reshape(bt, num_heads, agent_num, n) + pb_ref[...][None]
    s1 = s1 - jnp.max(s1, axis=-1, keepdims=True)
    e1 = jnp.exp(s1)
    p1 = e1 * pl.reciprocal(jnp.sum(e1, axis=-1, keepdims=True), approx=True)
    agent_v = jnp.einsum('gan,gnd->gad',
                         p1.reshape(bt * num_heads, agent_num, n).astype(bf16),
                         vh, preferred_element_type=f32)              # (bt*H, A, hd)

    # ---- stage 2: tokens attend to agents -------------------------------------
    s2 = jnp.einsum('gnd,gad->gna', qh, ah, preferred_element_type=f32) * scale
    s2 = s2.reshape(bt, num_heads, n, agent_num) + ab_ref[...][None]
    s2 = s2 - jnp.max(s2, axis=-1, keepdims=True)
    e2 = jnp.exp(s2)
    p2 = e2 * pl.reciprocal(jnp.sum(e2, axis=-1, keepdims=True), approx=True)
    xo = jnp.einsum('gna,gad->gnd',
                    p2.reshape(bt * num_heads, n, agent_num).astype(bf16),
                    agent_v.astype(bf16), preferred_element_type=f32)  # (bt*H, n, hd)
    x_attn = jnp.transpose(xo.reshape(bt, num_heads, n, hd),
                           (0, 2, 1, 3)).reshape(bt, n, c)

    # ---- depthwise 3x3 conv on v: zero-padded shifts + masked FMA (VPU/XLU) --
    # tap (di,dj) reads token m + (di-1)*w + (dj-1); the precomputed mask zeroes
    # row/column wrap-around.  f32 throughout, zero MXU work, no (9,n,n) tensor.
    pad = w + 1
    zpad = jnp.zeros((bt, pad, c), f32)
    v_ext = jnp.concatenate([zpad, v3f, zpad], axis=1)          # (bt, n + 2*pad, c)
    dwc = jnp.zeros((bt, n, c), f32)
    for di in range(3):
        for dj in range(3):
            tap = di * 3 + dj
            off = (di - 1) * w + (dj - 1)
            shifted = v_ext[:, pad + off: pad + off + n, :]      # static shift
            dwc = dwc + (shifted * dwc_mask_ref[tap]) * dwc_w_ref[tap]
    dwc = dwc + dwc_b_ref[...]

    # ---- residual + output projection ------------------------------------------
    y = (x_attn + dwc).astype(bf16).reshape(bt * n, c)
    out = jnp.dot(y, wp_ref[...], preferred_element_type=f32) + bp_ref[...]
    # channel-major permute (faithful to the module), flattened so the stored
    # block's last dim (c*n) is a multiple of 128 -> unmasked, lane-dense vst.
    out_cn = jnp.transpose(out.reshape(bt, n, c), (0, 2, 1))     # (bt, c, n)
    o_ref[...] = out_cn.reshape(1, bt, c * n).astype(o_ref.dtype)


# ----------------------------------------------------------------------------
# Glue helpers (parameter preprocessing, runs once in plain JAX / numpy)
# ----------------------------------------------------------------------------
def make_adaptive_pool_matrix(h, w, p):
    """(p*p, h*w) matrix implementing nn.AdaptiveAvgPool2d((p, p)). Kept f32."""
    P = np.zeros((p * p, h * w), dtype=np.float32)
    for oi in range(p):
        hs, he = (oi * h) // p, -((-(oi + 1) * h) // p)
        for oj in range(p):
            ws, we = (oj * w) // p, -((-(oj + 1) * w) // p)
            cnt = (he - hs) * (we - ws)
            for ii in range(hs, he):
                for jj in range(ws, we):
                    P[oi * p + oj, ii * w + jj] = 1.0 / cnt
    return jnp.asarray(P)


def make_dwc_masks(h, w):
    """(9, n, 1) validity masks: tap di*3+dj valid iff (r+di-1, c+dj-1) in-bounds."""
    n = h * w
    M = np.zeros((9, n, 1), dtype=np.float32)
    for di in range(3):
        for dj in range(3):
            t = di * 3 + dj
            for r in range(h):
                for col in range(w):
                    rr, cc = r + di - 1, col + dj - 1
                    if 0 <= rr < h and 0 <= cc < w:
                        M[t, r * w + col, 0] = 1.0
    return jnp.asarray(M)


def init_params(key, dim, num_heads, agent_num, window_size):
    wh, ww = window_size
    ks = jax.random.split(key, 12)
    std = 0.02
    return {
        "w_qkv": jax.random.normal(ks[0], (dim, 3 * dim), jnp.float32) * std,
        "b_qkv": jax.random.normal(ks[1], (1, 3 * dim), jnp.float32) * std,
        "w_proj": jax.random.normal(ks[2], (dim, dim), jnp.float32) * std,
        "b_proj": jax.random.normal(ks[3], (1, dim), jnp.float32) * std,
        "dwc_w": jax.random.normal(ks[4], (dim, 3, 3), jnp.float32) * std,
        "dwc_b": jax.random.normal(ks[5], (1, dim), jnp.float32) * std,
        "an_bias": jax.random.normal(ks[6], (num_heads, agent_num, 7, 7), jnp.float32) * std,
        "na_bias": jax.random.normal(ks[7], (num_heads, agent_num, 7, 7), jnp.float32) * std,
        "ah_bias": jax.random.normal(ks[8], (num_heads, agent_num, wh, 1), jnp.float32) * std,
        "aw_bias": jax.random.normal(ks[9], (num_heads, agent_num, 1, ww), jnp.float32) * std,
        "ha_bias": jax.random.normal(ks[10], (num_heads, wh, 1, agent_num), jnp.float32) * std,
        "wa_bias": jax.random.normal(ks[11], (num_heads, 1, ww, agent_num), jnp.float32) * std,
    }


def precompute_biases(params, num_heads, agent_num, h, w):
    # jax.image.resize('bilinear') == F.interpolate(mode='bilinear',
    # align_corners=False), the PyTorch default used by the module.
    n = h * w
    pb1 = jax.image.resize(params["an_bias"], (num_heads, agent_num, h, w), method="bilinear")
    pb1 = pb1.reshape(num_heads, agent_num, n)
    pb2 = (params["ah_bias"] + params["aw_bias"]).reshape(num_heads, agent_num, n)
    position_bias = pb1 + pb2                                          # (H, A, n)
    ab1 = jax.image.resize(params["na_bias"], (num_heads, agent_num, h, w), method="bilinear")
    ab1 = ab1.reshape(num_heads, agent_num, n).transpose(0, 2, 1)
    ab2 = (params["ha_bias"] + params["wa_bias"]).reshape(num_heads, n, agent_num)
    agent_bias = ab1 + ab2                                             # (H, n, A)
    return position_bias, agent_bias


def _vmem_limit_bytes():
    """~3/4 of the chip's physical VMEM, clamped to [32 MiB, 100 MiB]."""
    cap = 64 * 1024 * 1024
    try:
        info = pltpu.get_tpu_info()
        cap = int(getattr(info, "vmem_capacity_bytes", cap))
    except Exception:
        pass
    return int(max(32 * 1024 * 1024, min(cap * 3 // 4, 100 * 1024 * 1024)))


# ----------------------------------------------------------------------------
# Wrapper
# ----------------------------------------------------------------------------
def agent_attention(x_nchw, params, *, num_heads, agent_num, batch_tile=8):
    b, c, h, w = x_nchw.shape
    n = h * w
    # PyTorch does `x.view(b, h*w, c)` on NCHW: a reinterpretation, not a
    # permute.  reshape reproduces it exactly (and is free).
    x_tok = x_nchw.reshape(b, n, c)

    # bt: keep >= min(b,4) grid steps so x/out DMAs pipeline behind compute and
    # v7x's second TensorCore gets sharded work; cap at batch_tile for VMEM.
    bt = max(1, min(batch_tile, b // min(b, 4)))
    while b % bt:
        bt -= 1

    pool_size = int(agent_num ** 0.5)
    pool_mat = make_adaptive_pool_matrix(h, w, pool_size)                # (A, n) f32
    position_bias, agent_bias = precompute_biases(params, num_heads, agent_num, h, w)
    dwc_mask = make_dwc_masks(h, w)                                      # (9, n, 1) f32
    dwc_w = params["dwc_w"].reshape(c, 9).T.reshape(9, 1, c)             # tap-major f32

    wq = params["w_qkv"][:, 0 * c:1 * c].astype(jnp.bfloat16)
    wk = params["w_qkv"][:, 1 * c:2 * c].astype(jnp.bfloat16)
    wv = params["w_qkv"][:, 2 * c:3 * c].astype(jnp.bfloat16)
    bq = params["b_qkv"][:, 0 * c:1 * c]
    bk = params["b_qkv"][:, 1 * c:2 * c]
    bv = params["b_qkv"][:, 2 * c:3 * c]
    wp = params["w_proj"].astype(jnp.bfloat16)

    H, A = num_heads, agent_num
    kernel = functools.partial(agent_attention_kernel, width=w)

    out_flat = pl.pallas_call(
        kernel,
        # TODO(synk): emit bf16 (and accept bf16 x) if the surrounding model
        # tolerates it — weights are resident, so x/out are the only per-step
        # HBM traffic and f32->bf16 halves it.
        out_shape=jax.ShapeDtypeStruct((b // bt, bt, c * n), jnp.float32),
        grid_spec=pltpu.PrefetchScalarGridSpec(
            num_scalar_prefetch=0,
            grid=(b // bt,),
            in_specs=[
                pl.BlockSpec((bt, n, c), lambda i: (i, 0, 0)),            # x tokens
                pl.BlockSpec((c, c), lambda i: (0, 0)),                   # w_q
                pl.BlockSpec((c, c), lambda i: (0, 0)),                   # w_k
                pl.BlockSpec((c, c), lambda i: (0, 0)),                   # w_v
                pl.BlockSpec((1, c), lambda i: (0, 0)),                   # b_q
                pl.BlockSpec((1, c), lambda i: (0, 0)),                   # b_k
                pl.BlockSpec((1, c), lambda i: (0, 0)),                   # b_v
                pl.BlockSpec((c, c), lambda i: (0, 0)),                   # w_proj
                pl.BlockSpec((1, c), lambda i: (0, 0)),                   # b_proj
                pl.BlockSpec((A, n), lambda i: (0, 0)),                   # pool matrix (f32)
                pl.BlockSpec((H, A, n), lambda i: (0, 0, 0)),             # position bias
                pl.BlockSpec((H, n, A), lambda i: (0, 0, 0)),             # agent bias
                pl.BlockSpec((9, n, 1), lambda i: (0, 0, 0)),             # dwc validity masks
                pl.BlockSpec((9, 1, c), lambda i: (0, 0, 0)),             # dwc tap weights
                pl.BlockSpec((1, c), lambda i: (0, 0)),                   # dwc bias
            ],
            out_specs=pl.BlockSpec((1, bt, c * n), lambda i: (i, 0, 0)),  # lane-dense store
        ),
        compiler_params=pltpu.CompilerParams(
            dimension_semantics=("parallel",),
            vmem_limit_bytes=_vmem_limit_bytes(),
        ),
    )(x_tok, wq, wk, wv, bq, bk, bv, wp, params["b_proj"],
      pool_mat, position_bias, agent_bias, dwc_mask, dwc_w, params["dwc_b"])

    # (b//bt, bt, c*n) is already batch/channel-major: NCHW view is free.
    return out_flat.reshape(b, c, h, w)


# ----------------------------------------------------------------------------
# Pure-JAX f32 reference (same math, literal PyTorch semantics) for sanity check
# ----------------------------------------------------------------------------
def agent_attention_ref(x_nchw, params, *, num_heads, agent_num):
    b, c, h, w = x_nchw.shape
    n = h * w
    head_dim = c // num_heads
    scale = head_dim ** -0.5
    x = x_nchw.reshape(b, n, c)                       # matches torch `.view(b, h*w, c)`

    pool_size = int(agent_num ** 0.5)
    pool_mat = make_adaptive_pool_matrix(h, w, pool_size)
    position_bias, agent_bias = precompute_biases(params, num_heads, agent_num, h, w)

    qkv = x @ params["w_qkv"] + params["b_qkv"]
    q, k, v = qkv[..., :c], qkv[..., c:2 * c], qkv[..., 2 * c:]
    agent = jnp.einsum("an,bnc->bac", pool_mat, q)

    def split(t):  # (b, m, c) -> (b, H, m, hd)
        return t.reshape(b, -1, num_heads, head_dim).transpose(0, 2, 1, 3)

    qh, kh, vh, ah = split(q), split(k), split(v), split(agent)
    s1 = jnp.einsum("bhad,bhnd->bhan", ah * scale, kh) + position_bias[None]
    a1 = jax.nn.softmax(s1, axis=-1)
    agent_v = jnp.einsum("bhan,bhnd->bhad", a1, vh)
    s2 = jnp.einsum("bhnd,bhad->bhna", qh * scale, ah) + agent_bias[None]
    a2 = jax.nn.softmax(s2, axis=-1)
    xo = jnp.einsum("bhna,bhad->bhnd", a2, agent_v)
    xo = xo.transpose(0, 2, 1, 3).reshape(b, n, c)

    # depthwise 3x3 conv on v (channels-last), padding=1
    v_hwc = v.reshape(b, h, w, c)
    v_pad = jnp.pad(v_hwc, ((0, 0), (1, 1), (1, 1), (0, 0)))
    dwc = jnp.zeros_like(v_hwc)
    wk_ = params["dwc_w"]                              # (c, 3, 3)
    for di in range(3):
        for dj in range(3):
            dwc = dwc + v_pad[:, di:di + h, dj:dj + w, :] * wk_[:, di, dj][None, None, None, :]
    dwc = dwc.reshape(b, n, c) + params["dwc_b"]

    out = (xo + dwc) @ params["w_proj"] + params["b_proj"]
    return out.transpose(0, 2, 1).reshape(b, c, h, w)


# ----------------------------------------------------------------------------
if __name__ == "__main__":
    # Module-consistent small shapes: dim=32, window 8x8, 4 heads, 16 agents.
    b, dim, h, w = 2, 32, 8, 8
    num_heads, agent_num = 4, 16
    window_size = (h, w)

    key = jax.random.PRNGKey(0)
    kx, kp = jax.random.split(key)
    x = jax.random.normal(kx, (b, dim, h, w), jnp.float32)
    params = init_params(kp, dim, num_heads, agent_num, window_size)

    out = agent_attention(x, params, num_heads=num_heads, agent_num=agent_num)
    out = jax.block_until_ready(out)

    ref = agent_attention_ref(x, params, num_heads=num_heads, agent_num=agent_num)
    assert out.shape == (b, dim, h, w)
    # bf16 matmul operands + approx softmax reciprocal vs f32 ref -> 2e-2 tol.
    np.testing.assert_allclose(np.asarray(out), np.asarray(ref), rtol=2e-2, atol=2e-2)
    print("KERNEL_OK")
</pallas_src>

<mosaic_0001>
module attributes {stable_mosaic.version = 11 : i64} {
  func.func @agent_attention_kernel(%arg0: i32, %arg1: memref<1x64x32xf32, #tpu.memory_space<vmem>>, %arg2: memref<32x32xbf16, #tpu.memory_space<vmem>>, %arg3: memref<32x32xbf16, #tpu.memory_space<vmem>>, %arg4: memref<32x32xbf16, #tpu.memory_space<vmem>>, %arg5: memref<1x32xf32, #tpu.memory_space<vmem>>, %arg6: memref<1x32xf32, #tpu.memory_space<vmem>>, %arg7: memref<1x32xf32, #tpu.memory_space<vmem>>, %arg8: memref<32x32xbf16, #tpu.memory_space<vmem>>, %arg9: memref<1x32xf32, #tpu.memory_space<vmem>>, %arg10: memref<16x64xf32, #tpu.memory_space<vmem>>, %arg11: memref<4x16x64xf32, #tpu.memory_space<vmem>>, %arg12: memref<4x64x16xf32, #tpu.memory_space<vmem>>, %arg13: memref<9x64x1xf32, #tpu.memory_space<vmem>>, %arg14: memref<9x1x32xf32, #tpu.memory_space<vmem>>, %arg15: memref<1x32xf32, #tpu.memory_space<vmem>>, %arg16: memref<1x1x2048xf32, #tpu.memory_space<vmem>>) attributes {dimension_semantics = [#tpu.dimension_semantics<parallel>], iteration_bounds = array<i64: 2>, scalar_prefetch = 0 : i64, scratch_operands = 0 : i64, tpu.core_type = #tpu.core_type<tc>, window_params = [{transform_indices = @transform_0, window_bounds = array<i64: 1, 64, 32>}, {pipeline_mode = #tpu.pipeline_mode<synchronous>, transform_indices = @transform_1, window_bounds = array<i64: 32, 32>}, {pipeline_mode = #tpu.pipeline_mode<synchronous>, transform_indices = @transform_2, window_bounds = array<i64: 32, 32>}, {pipeline_mode = #tpu.pipeline_mode<synchronous>, transform_indices = @transform_3, window_bounds = array<i64: 32, 32>}, {pipeline_mode = #tpu.pipeline_mode<synchronous>, transform_indices = @transform_4, window_bounds = array<i64: 1, 32>}, {pipeline_mode = #tpu.pipeline_mode<synchronous>, transform_indices = @transform_5, window_bounds = array<i64: 1, 32>}, {pipeline_mode = #tpu.pipeline_mode<synchronous>, transform_indices = @transform_6, window_bounds = array<i64: 1, 32>}, {pipeline_mode = #tpu.pipeline_mode<synchronous>, transform_indices = @transform_7, window_bounds = array<i64: 32, 32>}, {pipeline_mode = #tpu.pipeline_mode<synchronous>, transform_indices = @transform_8, window_bounds = array<i64: 1, 32>}, {pipeline_mode = #tpu.pipeline_mode<synchronous>, transform_indices = @transform_9, window_bounds = array<i64: 16, 64>}, {pipeline_mode = #tpu.pipeline_mode<synchronous>, transform_indices = @transform_10, window_bounds = array<i64: 4, 16, 64>}, {pipeline_mode = #tpu.pipeline_mode<synchronous>, transform_indices = @transform_11, window_bounds = array<i64: 4, 64, 16>}, {pipeline_mode = #tpu.pipeline_mode<synchronous>, transform_indices = @transform_12, window_bounds = array<i64: 9, 64, 1>}, {pipeline_mode = #tpu.pipeline_mode<synchronous>, transform_indices = @transform_13, window_bounds = array<i64: 9, 1, 32>}, {pipeline_mode = #tpu.pipeline_mode<synchronous>, transform_indices = @transform_14, window_bounds = array<i64: 1, 32>}, {transform_indices = @transform_15, window_bounds = array<i64: 1, 1, 2048>}]} {
    %c0 = arith.constant 0 : index
    %c0_0 = arith.constant 0 : index
    %c0_1 = arith.constant 0 : index
    %0 = vector.load %arg1[%c0, %c0_0, %c0_1] : memref<1x64x32xf32, #tpu.memory_space<vmem>>, vector<1x64x32xf32>
    %1 = vector.shape_cast %0 : vector<1x64x32xf32> to vector<64x32xf32>
    %2 = arith.truncf %1 : vector<64x32xf32> to vector<64x32xbf16>
    %c0_2 = arith.constant 0 : index
    %c0_3 = arith.constant 0 : index
    %3 = vector.load %arg2[%c0_2, %c0_3] : memref<32x32xbf16, #tpu.memory_space<vmem>>, vector<32x32xbf16>
    %cst = arith.constant dense<0.000000e+00> : vector<64x32xf32>
    %4 = tpu.matmul %2, %3, %cst {dimension_numbers = #tpu.dot_dimension_numbers<[1], [0], [0], [1], [0, 0, 1, 1], [], []>} : vector<64x32xbf16>, vector<32x32xbf16>, vector<64x32xf32> -> vector<64x32xf32>
    %c0_4 = arith.constant 0 : index
    %c0_5 = arith.constant 0 : index
    %5 = vector.load %arg5[%c0_4, %c0_5] : memref<1x32xf32, #tpu.memory_space<vmem>>, vector<1x32xf32>
    %6 = vector.broadcast %5 : vector<1x32xf32> to vector<64x32xf32>
    %7 = arith.addf %4, %6 : vector<64x32xf32>
    %c0_6 = arith.constant 0 : index
    %c0_7 = arith.constant 0 : index
    %8 = vector.load %arg3[%c0_6, %c0_7] : memref<32x32xbf16, #tpu.memory_space<vmem>>, vector<32x32xbf16>
    %cst_8 = arith.constant dense<0.000000e+00> : vector<64x32xf32>
    %9 = tpu.matmul %2, %8, %cst_8 {dimension_numbers = #tpu.dot_dimension_numbers<[1], [0], [0], [1], [0, 0, 1, 1], [], []>} : vector<64x32xbf16>, vector<32x32xbf16>, vector<64x32xf32> -> vector<64x32xf32>
    %c0_9 = arith.constant 0 : index
    %c0_10 = arith.constant 0 : index
    %10 = vector.load %arg6[%c0_9, %c0_10] : memref<1x32xf32, #tpu.memory_space<vmem>>, vector<1x32xf32>
    %11 = vector.broadcast %10 : vector<1x32xf32> to vector<64x32xf32>
    %12 = arith.addf %9, %11 : vector<64x32xf32>
    %c0_11 = arith.constant 0 : index
    %c0_12 = arith.constant 0 : index
    %13 = vector.load %arg4[%c0_11, %c0_12] : memref<32x32xbf16, #tpu.memory_space<vmem>>, vector<32x32xbf16>
    %cst_13 = arith.constant dense<0.000000e+00> : vector<64x32xf32>
    %14 = tpu.matmul %2, %13, %cst_13 {dimension_numbers = #tpu.dot_dimension_numbers<[1], [0], [0], [1], [0, 0, 1, 1], [], []>} : vector<64x32xbf16>, vector<32x32xbf16>, vector<64x32xf32> -> vector<64x32xf32>
    %c0_14 = arith.constant 0 : index
    %c0_15 = arith.constant 0 : index
    %15 = vector.load %arg7[%c0_14, %c0_15] : memref<1x32xf32, #tpu.memory_space<vmem>>, vector<1x32xf32>
    %16 = vector.broadcast %15 : vector<1x32xf32> to vector<64x32xf32>
    %17 = arith.addf %14, %16 : vector<64x32xf32>
    %18 = vector.shape_cast %7 : vector<64x32xf32> to vector<1x64x32xf32>
    %19 = vector.shape_cast %17 : vector<64x32xf32> to vector<1x64x32xf32>
    %20 = arith.truncf %18 : vector<1x64x32xf32> to vector<1x64x32xbf16>
    %21 = arith.truncf %12 : vector<64x32xf32> to vector<64x32xbf16>
    %22 = vector.shape_cast %21 : vector<64x32xbf16> to vector<1x64x32xbf16>
    %23 = arith.truncf %19 : vector<1x64x32xf32> to vector<1x64x32xbf16>
    %24 = tpu.transpose %18, [1, 0, 2] : vector<1x64x32xf32> -> vector<64x1x32xf32>
    %25 = vector.shape_cast %24 : vector<64x1x32xf32> to vector<64x32xf32>
    %c0_16 = arith.constant 0 : index
    %c0_17 = arith.constant 0 : index
    %26 = vector.load %arg10[%c0_16, %c0_17] : memref<16x64xf32, #tpu.memory_space<vmem>>, vector<16x64xf32>
    %cst_18 = arith.constant dense<0.000000e+00> : vector<16x32xf32>
    %27 = tpu.matmul %26, %25, %cst_18 {dimension_numbers = #tpu.dot_dimension_numbers<[1], [0], [0], [1], [0, 0, 1, 1], [], []>} : vector<16x64xf32>, vector<64x32xf32>, vector<16x32xf32> -> vector<16x32xf32>
    %28 = vector.shape_cast %27 : vector<16x32xf32> to vector<16x1x32xf32>
    %29 = tpu.transpose %28, [1, 0, 2] : vector<16x1x32xf32> -> vector<1x16x32xf32>
    %30 = arith.truncf %29 : vector<1x16x32xf32> to vector<1x16x32xbf16>
    %31 = vector.shape_cast %20 : vector<1x64x32xbf16> to vector<1x64x4x8xbf16>
    %32 = tpu.transpose %31, [0, 2, 1, 3] : vector<1x64x4x8xbf16> -> vector<1x4x64x8xbf16>
    %33 = vector.shape_cast %32 : vector<1x4x64x8xbf16> to vector<4x64x8xbf16>
    %34 = vector.shape_cast %22 : vector<1x64x32xbf16> to vector<1x64x4x8xbf16>
    %35 = tpu.transpose %34, [0, 2, 1, 3] : vector<1x64x4x8xbf16> -> vector<1x4x64x8xbf16>
    %36 = vector.shape_cast %35 : vector<1x4x64x8xbf16> to vector<4x64x8xbf16>
    %37 = vector.shape_cast %23 : vector<1x64x32xbf16> to vector<1x64x4x8xbf16>
    %38 = tpu.transpose %37, [0, 2, 1, 3] : vector<1x64x4x8xbf16> -> vector<1x4x64x8xbf16>
    %39 = vector.shape_cast %38 : vector<1x4x64x8xbf16> to vector<4x64x8xbf16>
    %40 = vector.shape_cast %30 : vector<1x16x32xbf16> to vector<1x16x4x8xbf16>
    %41 = tpu.transpose %40, [0, 2, 1, 3] : vector<1x16x4x8xbf16> -> vector<1x4x16x8xbf16>
    %42 = vector.shape_cast %41 : vector<1x4x16x8xbf16> to vector<4x16x8xbf16>
    "tpu.trace_start"() <{level = 10 : i32, message = "gad,gnd->gan"}> : () -> ()
    %cst_19 = arith.constant dense<0.000000e+00> : vector<4x16x64xf32>
    %43 = tpu.matmul %42, %36, %cst_19 {dimension_numbers = #tpu.dot_dimension_numbers<[2], [2], [1], [1], [0, 0, 0, 1, 1, 1], [0], [0]>} : vector<4x16x8xbf16>, vector<4x64x8xbf16>, vector<4x16x64xf32> -> vector<4x16x64xf32>
    "tpu.trace_stop"() : () -> ()
    %cst_20 = arith.constant 0.353553385 : f32
    %44 = vector.broadcast %cst_20 : f32 to vector<4x16x64xf32>
    %45 = arith.mulf %43, %44 : vector<4x16x64xf32>
    %46 = vector.shape_cast %45 : vector<4x16x64xf32> to vector<1x4x16x64xf32>
    %c0_21 = arith.constant 0 : index
    %c0_22 = arith.constant 0 : index
    %c0_23 = arith.constant 0 : index
    %47 = vector.load %arg11[%c0_21, %c0_22, %c0_23] : memref<4x16x64xf32, #tpu.memory_space<vmem>>, vector<4x16x64xf32>
    %48 = vector.shape_cast %47 : vector<4x16x64xf32> to vector<1x4x16x64xf32>
    %49 = arith.addf %46, %48 : vector<1x4x16x64xf32>
    %cst_24 = arith.constant dense<0xFF800000> : vector<1x4x16xf32>
    %50 = vector.multi_reduction <maximumf>, %49, %cst_24 [3] : vector<1x4x16x64xf32> to vector<1x4x16xf32>
    %51 = vector.shape_cast %50 : vector<1x4x16xf32> to vector<1x4x16x1xf32>
    %52 = vector.broadcast %51 : vector<1x4x16x1xf32> to vector<1x4x16x64xf32>
    %53 = arith.subf %49, %52 : vector<1x4x16x64xf32>
    %54 = math.exp %53 : vector<1x4x16x64xf32>
    %cst_25 = arith.constant dense<0.000000e+00> : vector<1x4x16xf32>
    %55 = vector.multi_reduction <add>, %54, %cst_25 [3] : vector<1x4x16x64xf32> to vector<1x4x16xf32>
    %56 = vector.shape_cast %55 : vector<1x4x16xf32> to vector<1x4x16x1xf32>
    %57 = tpu.reciprocal %56 {approx = true} : vector<1x4x16x1xf32> -> vector<1x4x16x1xf32>
    %58 = vector.broadcast %57 : vector<1x4x16x1xf32> to vector<1x4x16x64xf32>
    %59 = arith.mulf %54, %58 : vector<1x4x16x64xf32>
    %60 = vector.shape_cast %59 : vector<1x4x16x64xf32> to vector<4x16x64xf32>
    %61 = arith.truncf %60 : vector<4x16x64xf32> to vector<4x16x64xbf16>
    "tpu.trace_start"() <{level = 10 : i32, message = "gan,gnd->gad"}> : () -> ()
    %cst_26 = arith.constant dense<0.000000e+00> : vector<4x16x8xf32>
    %62 = tpu.matmul %61, %39, %cst_26 {dimension_numbers = #tpu.dot_dimension_numbers<[2], [1], [1], [2], [0, 0, 0, 1, 1, 2], [0], [0]>} : vector<4x16x64xbf16>, vector<4x64x8xbf16>, vector<4x16x8xf32> -> vector<4x16x8xf32>
    "tpu.trace_stop"() : () -> ()
    "tpu.trace_start"() <{level = 10 : i32, message = "gnd,gad->gna"}> : () -> ()
    %cst_27 = arith.constant dense<0.000000e+00> : vector<4x64x16xf32>
    %63 = tpu.matmul %33, %42, %cst_27 {dimension_numbers = #tpu.dot_dimension_numbers<[2], [2], [1], [1], [0, 0, 0, 1, 1, 1], [0], [0]>} : vector<4x64x8xbf16>, vector<4x16x8xbf16>, vector<4x64x16xf32> -> vector<4x64x16xf32>
    "tpu.trace_stop"() : () -> ()
    %cst_28 = arith.constant 0.353553385 : f32
    %64 = vector.broadcast %cst_28 : f32 to vector<4x64x16xf32>
    %65 = arith.mulf %63, %64 : vector<4x64x16xf32>
    %66 = vector.shape_cast %65 : vector<4x64x16xf32> to vector<1x4x64x16xf32>
    %c0_29 = arith.constant 0 : index
    %c0_30 = arith.constant 0 : index
    %c0_31 = arith.constant 0 : index
    %67 = vector.load %arg12[%c0_29, %c0_30, %c0_31] : memref<4x64x16xf32, #tpu.memory_space<vmem>>, vector<4x64x16xf32>
    %68 = vector.shape_cast %67 : vector<4x64x16xf32> to vector<1x4x64x16xf32>
    %69 = arith.addf %66, %68 : vector<1x4x64x16xf32>
    %cst_32 = arith.constant dense<0xFF800000> : vector<1x4x64xf32>
    %70 = vector.multi_reduction <maximumf>, %69, %cst_32 [3] : vector<1x4x64x16xf32> to vector<1x4x64xf32>
    %71 = vector.shape_cast %70 : vector<1x4x64xf32> to vector<1x4x64x1xf32>
    %72 = vector.broadcast %71 : vector<1x4x64x1xf32> to vector<1x4x64x16xf32>
    %73 = arith.subf %69, %72 : vector<1x4x64x16xf32>
    %74 = math.exp %73 : vector<1x4x64x16xf32>
    %cst_33 = arith.constant dense<0.000000e+00> : vector<1x4x64xf32>
    %75 = vector.multi_reduction <add>, %74, %cst_33 [3] : vector<1x4x64x16xf32> to vector<1x4x64xf32>
    %76 = vector.shape_cast %75 : vector<1x4x64xf32> to vector<1x4x64x1xf32>
    %77 = tpu.reciprocal %76 {approx = true} : vector<1x4x64x1xf32> -> vector<1x4x64x1xf32>
    %78 = vector.broadcast %77 : vector<1x4x64x1xf32> to vector<1x4x64x16xf32>
    %79 = arith.mulf %74, %78 : vector<1x4x64x16xf32>
    %80 = vector.shape_cast %79 : vector<1x4x64x16xf32> to vector<4x64x16xf32>
    %81 = arith.truncf %80 : vector<4x64x16xf32> to vector<4x64x16xbf16>
    %82 = arith.truncf %62 : vector<4x16x8xf32> to vector<4x16x8xbf16>
    "tpu.trace_start"() <{level = 10 : i32, message = "gna,gad->gnd"}> : () -> ()
    %cst_34 = arith.constant dense<0.000000e+00> : vector<4x64x8xf32>
    %83 = tpu.matmul %81, %82, %cst_34 {dimension_numbers = #tpu.dot_dimension_numbers<[2], [1], [1], [2], [0, 0, 0, 1, 1, 2], [0], [0]>} : vector<4x64x16xbf16>, vector<4x16x8xbf16>, vector<4x64x8xf32> -> vector<4x64x8xf32>
    "tpu.trace_stop"() : () -> ()
    %84 = vector.shape_cast %83 : vector<4x64x8xf32> to vector<1x4x64x8xf32>
    %85 = tpu.transpose %84, [0, 2, 1, 3] : vector<1x4x64x8xf32> -> vector<1x64x4x8xf32>
    %86 = vector.shape_cast %85 : vector<1x64x4x8xf32> to vector<1x64x32xf32>
    %cst_35 = arith.constant 0.000000e+00 : f32
    %87 = vector.broadcast %cst_35 : f32 to vector<1x9x32xf32>
    %88 = tpu.concatenate %87, %19, %87 in 1 : vector<1x9x32xf32>, vector<1x64x32xf32>, vector<1x9x32xf32> -> vector<1x82x32xf32>
    %cst_36 = arith.constant 0.000000e+00 : f32
    %89 = vector.broadcast %cst_36 : f32 to vector<1x64x32xf32>
    %90 = vector.extract_strided_slice %88 {offsets = [0, 0, 0], sizes = [1, 64, 32], strides = [1, 1, 1]} : vector<1x82x32xf32> to vector<1x64x32xf32>
    %c0_37 = arith.constant 0 : index
    %c0_38 = arith.constant 0 : index
    %c0_39 = arith.constant 0 : index
    %91 = vector.load %arg13[%c0_37, %c0_38, %c0_39] : memref<9x64x1xf32, #tpu.memory_space<vmem>>, vector<1x64x1xf32>
    %92 = vector.shape_cast %91 : vector<1x64x1xf32> to vector<64x1xf32>
    %93 = vector.shape_cast %92 : vector<64x1xf32> to vector<1x64x1xf32>
    %94 = vector.broadcast %93 : vector<1x64x1xf32> to vector<1x64x32xf32>
    %95 = arith.mulf %90, %94 : vector<1x64x32xf32>
    %c0_40 = arith.constant 0 : index
    %c0_41 = arith.constant 0 : index
    %c0_42 = arith.constant 0 : index
    %96 = vector.load %arg14[%c0_40, %c0_41, %c0_42] : memref<9x1x32xf32, #tpu.memory_space<vmem>>, vector<1x1x32xf32>
    %97 = vector.shape_cast %96 : vector<1x1x32xf32> to vector<1x32xf32>
    %98 = vector.shape_cast %97 : vector<1x32xf32> to vector<1x1x32xf32>
    %99 = vector.broadcast %98 : vector<1x1x32xf32> to vector<1x64x32xf32>
    %100 = arith.mulf %95, %99 : vector<1x64x32xf32>
    %101 = arith.addf %89, %100 : vector<1x64x32xf32>
    %102 = vector.extract_strided_slice %88 {offsets = [0, 1, 0], sizes = [1, 64, 32], strides = [1, 1, 1]} : vector<1x82x32xf32> to vector<1x64x32xf32>
    %c1 = arith.constant 1 : index
    %c0_43 = arith.constant 0 : index
    %c0_44 = arith.constant 0 : index
    %103 = vector.load %arg13[%c1, %c0_43, %c0_44] : memref<9x64x1xf32, #tpu.memory_space<vmem>>, vector<1x64x1xf32>
    %104 = vector.shape_cast %103 : vector<1x64x1xf32> to vector<64x1xf32>
    %105 = vector.shape_cast %104 : vector<64x1xf32> to vector<1x64x1xf32>
    %106 = vector.broadcast %105 : vector<1x64x1xf32> to vector<1x64x32xf32>
    %107 = arith.mulf %102, %106 : vector<1x64x32xf32>
    %c1_45 = arith.constant 1 : index
    %c0_46 = arith.constant 0 : index
    %c0_47 = arith.constant 0 : index
    %108 = vector.load %arg14[%c1_45, %c0_46, %c0_47] : memref<9x1x32xf32, #tpu.memory_space<vmem>>, vector<1x1x32xf32>
    %109 = vector.shape_cast %108 : vector<1x1x32xf32> to vector<1x32xf32>
    %110 = vector.shape_cast %109 : vector<1x32xf32> to vector<1x1x32xf32>
    %111 = vector.broadcast %110 : vector<1x1x32xf32> to vector<1x64x32xf32>
    %112 = arith.mulf %107, %111 : vector<1x64x32xf32>
    %113 = arith.addf %101, %112 : vector<1x64x32xf32>
    %114 = vector.extract_strided_slice %88 {offsets = [0, 2, 0], sizes = [1, 64, 32], strides = [1, 1, 1]} : vector<1x82x32xf32> to vector<1x64x32xf32>
    %c2 = arith.constant 2 : index
    %c0_48 = arith.constant 0 : index
    %c0_49 = arith.constant 0 : index
    %115 = vector.load %arg13[%c2, %c0_48, %c0_49] : memref<9x64x1xf32, #tpu.memory_space<vmem>>, vector<1x64x1xf32>
    %116 = vector.shape_cast %115 : vector<1x64x1xf32> to vector<64x1xf32>
    %117 = vector.shape_cast %116 : vector<64x1xf32> to vector<1x64x1xf32>
    %118 = vector.broadcast %117 : vector<1x64x1xf32> to vector<1x64x32xf32>
    %119 = arith.mulf %114, %118 : vector<1x64x32xf32>
    %c2_50 = arith.constant 2 : index
    %c0_51 = arith.constant 0 : index
    %c0_52 = arith.constant 0 : index
    %120 = vector.load %arg14[%c2_50, %c0_51, %c0_52] : memref<9x1x32xf32, #tpu.memory_space<vmem>>, vector<1x1x32xf32>
    %121 = vector.shape_cast %120 : vector<1x1x32xf32> to vector<1x32xf32>
    %122 = vector.shape_cast %121 : vector<1x32xf32> to vector<1x1x32xf32>
    %123 = vector.broadcast %122 : vector<1x1x32xf32> to vector<1x64x32xf32>
    %124 = arith.mulf %119, %123 : vector<1x64x32xf32>
    %125 = arith.addf %113, %124 : vector<1x64x32xf32>
    %126 = vector.extract_strided_slice %88 {offsets = [0, 8, 0], sizes = [1, 64, 32], strides = [1, 1, 1]} : vector<1x82x32xf32> to vector<1x64x32xf32>
    %c3 = arith.constant 3 : index
    %c0_53 = arith.constant 0 : index
    %c0_54 = arith.constant 0 : index
    %127 = vector.load %arg13[%c3, %c0_53, %c0_54] : memref<9x64x1xf32, #tpu.memory_space<vmem>>, vector<1x64x1xf32>
    %128 = vector.shape_cast %127 : vector<1x64x1xf32> to vector<64x1xf32>
    %129 = vector.shape_cast %128 : vector<64x1xf32> to vector<1x64x1xf32>
    %130 = vector.broadcast %129 : vector<1x64x1xf32> to vector<1x64x32xf32>
    %131 = arith.mulf %126, %130 : vector<1x64x32xf32>
    %c3_55 = arith.constant 3 : index
    %c0_56 = arith.constant 0 : index
    %c0_57 = arith.constant 0 : index
    %132 = vector.load %arg14[%c3_55, %c0_56, %c0_57] : memref<9x1x32xf32, #tpu.memory_space<vmem>>, vector<1x1x32xf32>
    %133 = vector.shape_cast %132 : vector<1x1x32xf32> to vector<1x32xf32>
    %134 = vector.shape_cast %133 : vector<1x32xf32> to vector<1x1x32xf32>
    %135 = vector.broadcast %134 : vector<1x1x32xf32> to vector<1x64x32xf32>
    %136 = arith.mulf %131, %135 : vector<1x64x32xf32>
    %137 = arith.addf %125, %136 : vector<1x64x32xf32>
    %138 = vector.extract_strided_slice %88 {offsets = [0, 9, 0], sizes = [1, 64, 32], strides = [1, 1, 1]} : vector<1x82x32xf32> to vector<1x64x32xf32>
    %c4 = arith.constant 4 : index
    %c0_58 = arith.constant 0 : index
    %c0_59 = arith.constant 0 : index
    %139 = vector.load %arg13[%c4, %c0_58, %c0_59] : memref<9x64x1xf32, #tpu.memory_space<vmem>>, vector<1x64x1xf32>
    %140 = vector.shape_cast %139 : vector<1x64x1xf32> to vector<64x1xf32>
    %141 = vector.shape_cast %140 : vector<64x1xf32> to vector<1x64x1xf32>
    %142 = vector.broadcast %141 : vector<1x64x1xf32> to vector<1x64x32xf32>
    %143 = arith.mulf %138, %142 : vector<1x64x32xf32>
    %c4_60 = arith.constant 4 : index
    %c0_61 = arith.constant 0 : index
    %c0_62 = arith.constant 0 : index
    %144 = vector.load %arg14[%c4_60, %c0_61, %c0_62] : memref<9x1x32xf32, #tpu.memory_space<vmem>>, vector<1x1x32xf32>
    %145 = vector.shape_cast %144 : vector<1x1x32xf32> to vector<1x32xf32>
    %146 = vector.shape_cast %145 : vector<1x32xf32> to vector<1x1x32xf32>
    %147 = vector.broadcast %146 : vector<1x1x32xf32> to vector<1x64x32xf32>
    %148 = arith.mulf %143, %147 : vector<1x64x32xf32>
    %149 = arith.addf %137, %148 : vector<1x64x32xf32>
    %150 = vector.extract_strided_slice %88 {offsets = [0, 10, 0], sizes = [1, 64, 32], strides = [1, 1, 1]} : vector<1x82x32xf32> to vector<1x64x32xf32>
    %c5 = arith.constant 5 : index
    %c0_63 = arith.constant 0 : index
    %c0_64 = arith.constant 0 : index
    %151 = vector.load %arg13[%c5, %c0_63, %c0_64] : memref<9x64x1xf32, #tpu.memory_space<vmem>>, vector<1x64x1xf32>
    %152 = vector.shape_cast %151 : vector<1x64x1xf32> to vector<64x1xf32>
    %153 = vector.shape_cast %152 : vector<64x1xf32> to vector<1x64x1xf32>
    %154 = vector.broadcast %153 : vector<1x64x1xf32> to vector<1x64x32xf32>
    %155 = arith.mulf %150, %154 : vector<1x64x32xf32>
    %c5_65 = arith.constant 5 : index
    %c0_66 = arith.constant 0 : index
    %c0_67 = arith.constant 0 : index
    %156 = vector.load %arg14[%c5_65, %c0_66, %c0_67] : memref<9x1x32xf32, #tpu.memory_space<vmem>>, vector<1x1x32xf32>
    %157 = vector.shape_cast %156 : vector<1x1x32xf32> to vector<1x32xf32>
    %158 = vector.shape_cast %157 : vector<1x32xf32> to vector<1x1x32xf32>
    %159 = vector.broadcast %158 : vector<1x1x32xf32> to vector<1x64x32xf32>
    %160 = arith.mulf %155, %159 : vector<1x64x32xf32>
    %161 = arith.addf %149, %160 : vector<1x64x32xf32>
    %162 = vector.extract_strided_slice %88 {offsets = [0, 16, 0], sizes = [1, 64, 32], strides = [1, 1, 1]} : vector<1x82x32xf32> to vector<1x64x32xf32>
    %c6 = arith.constant 6 : index
    %c0_68 = arith.constant 0 : index
    %c0_69 = arith.constant 0 : index
    %163 = vector.load %arg13[%c6, %c0_68, %c0_69] : memref<9x64x1xf32, #tpu.memory_space<vmem>>, vector<1x64x1xf32>
    %164 = vector.shape_cast %163 : vector<1x64x1xf32> to vector<64x1xf32>
    %165 = vector.shape_cast %164 : vector<64x1xf32> to vector<1x64x1xf32>
    %166 = vector.broadcast %165 : vector<1x64x1xf32> to vector<1x64x32xf32>
    %167 = arith.mulf %162, %166 : vector<1x64x32xf32>
    %c6_70 = arith.constant 6 : index
    %c0_71 = arith.constant 0 : index
    %c0_72 = arith.constant 0 : index
    %168 = vector.load %arg14[%c6_70, %c0_71, %c0_72] : memref<9x1x32xf32, #tpu.memory_space<vmem>>, vector<1x1x32xf32>
    %169 = vector.shape_cast %168 : vector<1x1x32xf32> to vector<1x32xf32>
    %170 = vector.shape_cast %169 : vector<1x32xf32> to vector<1x1x32xf32>
    %171 = vector.broadcast %170 : vector<1x1x32xf32> to vector<1x64x32xf32>
    %172 = arith.mulf %167, %171 : vector<1x64x32xf32>
    %173 = arith.addf %161, %172 : vector<1x64x32xf32>
    %174 = vector.extract_strided_slice %88 {offsets = [0, 17, 0], sizes = [1, 64, 32], strides = [1, 1, 1]} : vector<1x82x32xf32> to vector<1x64x32xf32>
    %c7 = arith.constant 7 : index
    %c0_73 = arith.constant 0 : index
    %c0_74 = arith.constant 0 : index
    %175 = vector.load %arg13[%c7, %c0_73, %c0_74] : memref<9x64x1xf32, #tpu.memory_space<vmem>>, vector<1x64x1xf32>
    %176 = vector.shape_cast %175 : vector<1x64x1xf32> to vector<64x1xf32>
    %177 = vector.shape_cast %176 : vector<64x1xf32> to vector<1x64x1xf32>
    %178 = vector.broadcast %177 : vector<1x64x1xf32> to vector<1x64x32xf32>
    %179 = arith.mulf %174, %178 : vector<1x64x32xf32>
    %c7_75 = arith.constant 7 : index
    %c0_76 = arith.constant 0 : index
    %c0_77 = arith.constant 0 : index
    %180 = vector.load %arg14[%c7_75, %c0_76, %c0_77] : memref<9x1x32xf32, #tpu.memory_space<vmem>>, vector<1x1x32xf32>
    %181 = vector.shape_cast %180 : vector<1x1x32xf32> to vector<1x32xf32>
    %182 = vector.shape_cast %181 : vector<1x32xf32> to vector<1x1x32xf32>
    %183 = vector.broadcast %182 : vector<1x1x32xf32> to vector<1x64x32xf32>
    %184 = arith.mulf %179, %183 : vector<1x64x32xf32>
    %185 = arith.addf %173, %184 : vector<1x64x32xf32>
    %186 = vector.extract_strided_slice %88 {offsets = [0, 18, 0], sizes = [1, 64, 32], strides = [1, 1, 1]} : vector<1x82x32xf32> to vector<1x64x32xf32>
    %c8 = arith.constant 8 : index
    %c0_78 = arith.constant 0 : index
    %c0_79 = arith.constant 0 : index
    %187 = vector.load %arg13[%c8, %c0_78, %c0_79] : memref<9x64x1xf32, #tpu.memory_space<vmem>>, vector<1x64x1xf32>
    %188 = vector.shape_cast %187 : vector<1x64x1xf32> to vector<64x1xf32>
    %189 = vector.shape_cast %188 : vector<64x1xf32> to vector<1x64x1xf32>
    %190 = vector.broadcast %189 : vector<1x64x1xf32> to vector<1x64x32xf32>
    %191 = arith.mulf %186, %190 : vector<1x64x32xf32>
    %c8_80 = arith.constant 8 : index
    %c0_81 = arith.constant 0 : index
    %c0_82 = arith.constant 0 : index
    %192 = vector.load %arg14[%c8_80, %c0_81, %c0_82] : memref<9x1x32xf32, #tpu.memory_space<vmem>>, vector<1x1x32xf32>
    %193 = vector.shape_cast %192 : vector<1x1x32xf32> to vector<1x32xf32>
    %194 = vector.shape_cast %193 : vector<1x32xf32> to vector<1x1x32xf32>
    %195 = vector.broadcast %194 : vector<1x1x32xf32> to vector<1x64x32xf32>
    %196 = arith.mulf %191, %195 : vector<1x64x32xf32>
    %197 = arith.addf %185, %196 : vector<1x64x32xf32>
    %c0_83 = arith.constant 0 : index
    %c0_84 = arith.constant 0 : index
    %198 = vector.load %arg15[%c0_83, %c0_84] : memref<1x32xf32, #tpu.memory_space<vmem>>, vector<1x32xf32>
    %199 = vector.shape_cast %198 : vector<1x32xf32> to vector<1x1x32xf32>
    %200 = vector.broadcast %199 : vector<1x1x32xf32> to vector<1x64x32xf32>
    %201 = arith.addf %197, %200 : vector<1x64x32xf32>
    %202 = arith.addf %86, %201 : vector<1x64x32xf32>
    %203 = arith.truncf %202 : vector<1x64x32xf32> to vector<1x64x32xbf16>
    %204 = vector.shape_cast %203 : vector<1x64x32xbf16> to vector<64x32xbf16>
    %c0_85 = arith.constant 0 : index
    %c0_86 = arith.constant 0 : index
    %205 = vector.load %arg8[%c0_85, %c0_86] : memref<32x32xbf16, #tpu.memory_space<vmem>>, vector<32x32xbf16>
    %cst_87 = arith.constant dense<0.000000e+00> : vector<64x32xf32>
    %206 = tpu.matmul %204, %205, %cst_87 {dimension_numbers = #tpu.dot_dimension_numbers<[1], [0], [0], [1], [0, 0, 1, 1], [], []>} : vector<64x32xbf16>, vector<32x32xbf16>, vector<64x32xf32> -> vector<64x32xf32>
    %c0_88 = arith.constant 0 : index
    %c0_89 = arith.constant 0 : index
    %207 = vector.load %arg9[%c0_88, %c0_89] : memref<1x32xf32, #tpu.memory_space<vmem>>, vector<1x32xf32>
    %208 = vector.broadcast %207 : vector<1x32xf32> to vector<64x32xf32>
    %209 = arith.addf %206, %208 : vector<64x32xf32>
    %210 = vector.shape_cast %209 : vector<64x32xf32> to vector<1x64x32xf32>
    %211 = tpu.transpose %210, [0, 2, 1] : vector<1x64x32xf32> -> vector<1x32x64xf32>
    %212 = vector.shape_cast %211 : vector<1x32x64xf32> to vector<1x1x2048xf32>
    %c0_90 = arith.constant 0 : index
    %c0_91 = arith.constant 0 : index
    %c0_92 = arith.constant 0 : index
    %213 = vector.load %arg16[%c0_90, %c0_91, %c0_92] : memref<1x1x2048xf32, #tpu.memory_space<vmem>>, vector<1x1x2048xf32>
    tpu.vector_store %arg16[%c0_90, %c0_91, %c0_92], %212 {strides = array<i32>} : memref<1x1x2048xf32, #tpu.memory_space<vmem>>, vector<1x1x2048xf32>,
    return
  }
  func.func @transform_0(%arg0: i32) -> (i32, i32, i32) {
    %c0_i32 = arith.constant 0 : i32
    %c0_i32_0 = arith.constant 0 : i32
    %c0_i32_1 = arith.constant 0 : i32
    return %arg0, %c0_i32, %c0_i32_0 : i32, i32, i32
  }
  func.func @transform_1(%arg0: i32) -> (i32, i32) {
    %c0_i32 = arith.constant 0 : i32
    %c0_i32_0 = arith.constant 0 : i32
    %c0_i32_1 = arith.constant 0 : i32
    return %c0_i32, %c0_i32_0 : i32, i32
  }
  func.func @transform_2(%arg0: i32) -> (i32, i32) {
    %c0_i32 = arith.constant 0 : i32
    %c0_i32_0 = arith.constant 0 : i32
    %c0_i32_1 = arith.constant 0 : i32
    return %c0_i32, %c0_i32_0 : i32, i32
  }
  func.func @transform_3(%arg0: i32) -> (i32, i32) {
    %c0_i32 = arith.constant 0 : i32
    %c0_i32_0 = arith.constant 0 : i32
    %c0_i32_1 = arith.constant 0 : i32
    return %c0_i32, %c0_i32_0 : i32, i32
  }
  func.func @transform_4(%arg0: i32) -> (i32, i32) {
    %c0_i32 = arith.constant 0 : i32
    %c0_i32_0 = arith.constant 0 : i32
    %c0_i32_1 = arith.constant 0 : i32
    return %c0_i32, %c0_i32_0 : i32, i32
  }
  func.func @transform_5(%arg0: i32) -> (i32, i32) {
    %c0_i32 = arith.constant 0 : i32
    %c0_i32_0 = arith.constant 0 : i32
    %c0_i32_1 = arith.constant 0 : i32
    return %c0_i32, %c0_i32_0 : i32, i32
  }
  func.func @transform_6(%arg0: i32) -> (i32, i32) {
    %c0_i32 = arith.constant 0 : i32
    %c0_i32_0 = arith.constant 0 : i32
    %c0_i32_1 = arith.constant 0 : i32
    return %c0_i32, %c0_i32_0 : i32, i32
  }
  func.func @transform_7(%arg0: i32) -> (i32, i32) {
    %c0_i32 = arith.constant 0 : i32
    %c0_i32_0 = arith.constant 0 : i32
    %c0_i32_1 = arith.constant 0 : i32
    return %c0_i32, %c0_i32_0 : i32, i32
  }
  func.func @transform_8(%arg0: i32) -> (i32, i32) {
    %c0_i32 = arith.constant 0 : i32
    %c0_i32_0 = arith.constant 0 : i32
    %c0_i32_1 = arith.constant 0 : i32
    return %c0_i32, %c0_i32_0 : i32, i32
  }
  func.func @transform_9(%arg0: i32) -> (i32, i32) {
    %c0_i32 = arith.constant 0 : i32
    %c0_i32_0 = arith.constant 0 : i32
    %c0_i32_1 = arith.constant 0 : i32
    return %c0_i32, %c0_i32_0 : i32, i32
  }
  func.func @transform_10(%arg0: i32) -> (i32, i32, i32) {
    %c0_i32 = arith.constant 0 : i32
    %c0_i32_0 = arith.constant 0 : i32
    %c0_i32_1 = arith.constant 0 : i32
    %c0_i32_2 = arith.constant 0 : i32
    return %c0_i32, %c0_i32_0, %c0_i32_1 : i32, i32, i32
  }
  func.func @transform_11(%arg0: i32) -> (i32, i32, i32) {
    %c0_i32 = arith.constant 0 : i32
    %c0_i32_0 = arith.constant 0 : i32
    %c0_i32_1 = arith.constant 0 : i32
    %c0_i32_2 = arith.constant 0 : i32
    return %c0_i32, %c0_i32_0, %c0_i32_1 : i32, i32, i32
  }
  func.func @transform_12(%arg0: i32) -> (i32, i32, i32) {
    %c0_i32 = arith.constant 0 : i32
    %c0_i32_0 = arith.constant 0 : i32
    %c0_i32_1 = arith.constant 0 : i32
    %c0_i32_2 = arith.constant 0 : i32
    return %c0_i32, %c0_i32_0, %c0_i32_1 : i32, i32, i32
  }
  func.func @transform_13(%arg0: i32) -> (i32, i32, i32) {
    %c0_i32 = arith.constant 0 : i32
    %c0_i32_0 = arith.constant 0 : i32
    %c0_i32_1 = arith.constant 0 : i32
    %c0_i32_2 = arith.constant 0 : i32
    return %c0_i32, %c0_i32_0, %c0_i32_1 : i32, i32, i32
  }
  func.func @transform_14(%arg0: i32) -> (i32, i32) {
    %c0_i32 = arith.constant 0 : i32
    %c0_i32_0 = arith.constant 0 : i32
    %c0_i32_1 = arith.constant 0 : i32
    return %c0_i32, %c0_i32_0 : i32, i32
  }
  func.func @transform_15(%arg0: i32) -> (i32, i32, i32) {
    %c0_i32 = arith.constant 0 : i32
    %c0_i32_0 = arith.constant 0 : i32
    %c0_i32_1 = arith.constant 0 : i32
    return %arg0, %c0_i32, %c0_i32_0 : i32, i32, i32
  }
}

</mosaic_0001>

<bundles_post_ra>
// kernel: tpu_custom_call.1
= control target key start
LH: loop header
LB: loop body
LE: loop exit
PB: predicated region body
PF: predicated region fallthrough
CT: control target
= control target key end

     0   :  { %s14537_s0 = inlined_call_operand.vmem [shape: f32[2,64,32], index: 0, kind: input, shape index: {}]   ;;  %s14538_s1 = inlined_call_operand.vmem [shape: bf16[32,32], index: 1, kind: input, shape index: {}]   ;;  %s14539_s2 = inlined_call_operand.vmem [shape: bf16[32,32], index: 2, kind: input, shape index: {}]   ;;  %s14540_s3 = inlined_call_operand.vmem [shape: bf16[32,32], index: 3, kind: input, shape index: {}]   ;;  %s14541_s4 = inlined_call_operand.vmem [shape: f32[1,32], index: 4, kind: input, shape index: {}]   ;;  %s14542_s5 = inlined_call_operand.vmem [shape: f32[1,32], index: 5, kind: input, shape index: {}]   ;;  %s14543_s6 = inlined_call_operand.vmem [shape: f32[1,32], index: 6, kind: input, shape index: {}]   ;;  %s14544_s7 = inlined_call_operand.vmem [shape: bf16[32,32], index: 7, kind: input, shape index: {}]   ;;  %s14545_s8 = inlined_call_operand.vmem [shape: f32[1,32], index: 8, kind: input, shape index: {}]   ;;  %s14546_s9 = inlined_call_operand.vmem [shape: f32[16,64], index: 9, kind: input, shape index: {}]   ;;  %s14547_s10 = inlined_call_operand.vmem [shape: f32[4,16,64], index: 10, kind: input, shape index: {}]   ;;  %s14548_s11 = inlined_call_operand.vmem [shape: f32[4,64,16], index: 11, kind: input, shape index: {}]   ;;  %s14549_s12 = inlined_call_operand.vmem [shape: f32[9,64,1], index: 12, kind: input, shape index: {}]   ;;  %s14550_s13 = inlined_call_operand.vmem [shape: f32[9,1,32], index: 13, kind: input, shape index: {}]   ;;  %s14551_s14 = inlined_call_operand.vmem [shape: f32[1,32], index: 14, kind: input, shape index: {}]   ;;  %s14552_s15 = inlined_call_operand.hbm [shape: f32[2,1,2048], index: 15, kind: output, shape index: {}]  }
   0x1   :  { %14573 = sst [smem:[#allocation17_spill]] %s14537_s0 }
   0x2   :  { %14574 = sst [smem:[#allocation18_spill]] %s14538_s1 }
   0x3   :  { %20 = vsyncpa [#allocation3], 0 }
   0x4   :  { %22 = vsyncpa [#allocation3 + $0x1], 0  ;;  %s10670_s18 = smov 0   ;;  %s10672_s19 = smov 0  }
   0x5   :  { %s10674_s20 = smov 0   ;;  %s10676_s21 = smov 0  }
   0x6 LB: > { %14575 = sst [smem:[#allocation5_spill]] %s10570_s20  ;;  %s10691_s22 = sadd.s32 4294967295, %s10574_s21   ;;  %s10574_s21 = sphi %s10676_s21, %s14636_s21   ;;  %s10570_s20 = sphi %s10674_s20, %s14638_s20   ;;  %s10566_s19 = sphi %s10672_s19, %s14640_s19   ;;  %s10562_s18 = sphi %s10670_s18, %s14639_s18  }
   0x7   : > { %s9671_s23 = sadd.s32 4294967294, %s10574_s21   ;;  %s10695_s24 = sadd.s32 1, %s10574_s21  }
   0x8   : > { %14576 = sst [smem:[#allocation6_spill]] %s10695_s24  ;;  %s355_s25 = sadd.s32 1, %s10570_s20 }
   0x9   : > { %s352_s26 = ssub.s32 %s10574_s21, %s10695_s24  ;;  %p365_p0 = scmp.ne.s32.totalorder %s10570_s20, %s10566_s19 }
   0xa   : > { %p353_p1 = scmp.eq.s32.totalorder %s352_s26, 0  ;;  %p366_p2 = scmp.eq.s32.totalorder %s10691_s22, 1 }
   0xb   : > { %p371_p3 = scmp.ne.s32.totalorder %s10566_s19, %s10562_s18  ;;  %p372_p4 = scmp.eq.s32.totalorder %s9671_s23, 1 }
   0xc   : > { %s10706_s27 = scalar_select %p353_p1, %s10570_s20, %s355_s25  }
   0xd   : > { %p10708_p5 = por %p366_p2, %p365_p0  ;;  %p10712_p6 = por %p372_p4, %p371_p3 }
   0xe   : > { %14577 = sst [smem:[#allocation7_spill]] %s10706_s27  ;;  %p9674_p7 = scmp.ge.s32.totalorder %s10574_s21, 1 }
   0xf   : > { %p440_p8 = scmp.lt.s32.totalorder %s10574_s21, 3 }
  0x11   : > { %p441_p9 = pnand %p9674_p7, %p440_p8 }
  0x13   : > { %444 = sbr.rel (%p441_p9) target bundleno = 2888 (0xb48), region = 80 }
  0x1a   : > { %s14580_s1 = sld [smem:[#allocation18_spill]]  ;;  %p488_p10 = scmp.lt.s32.totalorder %s10691_s22, 1  ;;  %v10346_v2 = vld [vmem:[%s14539_s2] sm:$0xff]   ;;  %vm529_vm0 = vcmask 261120   ;;  %v10347_v15 = vld [vmem:[%s14539_s2 + $0x8] sm:$0xff]   ;;  %vm1380_vm1 = vcmask 523264   ;;  %v799_v20 = vlaneseq }
  0x1b   : > { %s14581_s0 = sld [smem:[#allocation17_spill]]  ;;  %v1187_v16 = vld [vmem:[%s14546_s9] sm:$0xff]  ;;  %v14556_v17 = vmov 0   ;;  %v10577_v18 = vmov 1983009808   ;;  %vm1254_vm2 = vcmask 1041409  }
  0x1c   : > { %s489_s25 = scalar_select %p488_p10, %s10691_s22, 1  ;;  %10342 = vset.pattern.permute.xlu0 %v14556_v17  ;;  %10343 = vset.pattern.permute.xlu1 %v14556_v17  ;;  %v797_v19 = vunpack.c.l.s4 %v10577_v18  ;;  %v10578_v21 = vmov 1934713408   ;;  %v10762_v24 = vshrl.u32 %v799_v20, 7  ;;  %v10767_v26 = vld [vmem:[%s14541_s4] ss:$0 sm:$0xff] }
  0x1d   : > { %v812_v22 = vunpack.c.l.s4 %v10578_v21  ;;  %vm1257_vm3 = vcmask 1042434   ;;  %v14569_v37 = vmov 0.0   ;;  %vm1260_vm4 = vcmask 1043459   ;;  %s10580_s16 = smov 120   ;;  %s10582_s30 = smov 112  }
  0x1e   : > { %s9907_s26 = sshll.u32 %s489_s25, 6  ;;  %v798_v23 = vunpack.c.0.s8 %v797_v19  ;;  %14585 = vst [vmem:[#allocation11_spill] sm:$0xff] %v10762_v24  ;;  %vm1263_vm5 = vcmask 1044484   ;;  %vm1266_vm6 = vcmask 1045509   ;;  %vm1269_vm7 = vcmask 1046534   ;;  %s10585_s20 = smov 8  }
  0x1f   : > { %v813_v25 = vunpack.c.0.s8 %v812_v22  ;;  %vm1272_vm8 = vcmask 1047559   ;;  %vm5156_vm9 = vcmask 64512   ;;  %vm10584_vm10 = vmmov 0   ;;  %s10586_s23 = smov 16   ;;  %s10587_s25 = smov 24  }
  0x20   : > { %v10344_v0 = vld [vmem:[%s14580_s1] sm:$0xff]   ;;  %v10345_v1 = vld [vmem:[%s14580_s1 + $0x8] sm:$0xff]   ;;  %v10770_v27 = vsub.s32 %v798_v23, %v10762_v24  ;;  %vm7975_vm11 = vcmask 1040384   ;;  %vm6077_vm12 = vcmask 130048   ;;  %vm8181_vm13 = vcmask 1046528   ;;  %s10588_s27 = smov 64  }
  0x21   : > { %10023 = vmatprep.subr.bf16.mxu0 %v10344_v0  ;;  %10282 = vmatprep.subr.bf16.mxu1 %v10344_v0  ;;  %s492_s24 = scalar_lea.vmem %s14581_s0, %s9907_s26  ;;  %v10774_v30 = vsub.s32 %v813_v25, %v10762_v24  ;;  %vm8256_vm14 = vcmask 1041408   ;;  %vm8316_vm15 = vcmask 1045504   ;;  %s485_s17 = sand.u32 1, %s10566_s19  }
  0x22   : > { %10024 = vmatpush3.bf16.msra.mxu0 %v10344_v0  ;;  %10284 = vmatpush3.bf16.msra.mxu1 %v10344_v0  ;;  %v494_v3 = vld [vmem:[%s492_s24] sm:$0xff]  ;;  %v495_v4 = vld [vmem:[%s492_s24 + $0x8] sm:$0xff]  ;;  %v496_v5 = vld [vmem:[%s492_s24 + $0x10] sm:$0xff]  ;;  %14586 = vst [vmem:[#allocation12_spill] sm:$0xff] %v10770_v27  ;;  %s9908_s26 = sshll.u32 %s10691_s22, 8 }
  0x23   : > { %10025 = vmatprep.subr.bf16.mxu0 %v10345_v1  ;;  %10283 = vmatprep.subr.bf16.mxu1 %v10345_v1  ;;  %v502_v6 = vpack.c.bf16 %v495_v4, %v494_v3  ;;  %v497_v7 = vld [vmem:[%s492_s24 + $0x18] sm:$0xff]  ;;  %v498_v8 = vld [vmem:[%s492_s24 + $0x20] sm:$0xff]  ;;  %v499_v9 = vld [vmem:[%s492_s24 + $0x28] sm:$0xff] }
  0x24   : > { %v10732_v10 = vpack.c.bf16 %v497_v7, %v496_v5  ;;  %v10734_v11 = vpack.c.bf16 %v499_v9, %v498_v8  ;;  %v500_v12 = vld [vmem:[%s492_s24 + $0x30] sm:$0xff]  ;;  %v501_v13 = vld [vmem:[%s492_s24 + $0x38] sm:$0xff]  ;;  %s10581_s24 = smov 104  }
  0x25   : > { %10027 = vmatprep.mubr.msk.bf16.mxu0 %vm529_vm0, %v502_v6  ;;  %v10737_v14 = vpack.c.bf16 %v501_v13, %v500_v12 }
  0x26   : > { %10026 = vmatpush3.bf16.msra.mxu0 %v10345_v1  ;;  %10285 = vmatpush3.bf16.msra.mxu1 %v10345_v1  ;;  %14582 = vst [vmem:[#allocation8_spill] sm:$0xff] %v10732_v10  ;;  %14583 = vst [vmem:[#allocation9_spill] sm:$0xff] %v10734_v11 }
  0x27   : > { %10035 = vmatprep.subr.bf16.mxu1 %v10346_v2  ;;  %14584 = vst [vmem:[#allocation10_spill] sm:$0xff] %v10737_v14  ;;  %10031 = vmatprep.mubr.msk.bf16.mxu1 %vm529_vm0, %v10734_v11 }
  0x29   : > { %10028 = vmatmul.mubr.msk.bf16.vlgmr.msra.gmra.mrb[0].mxu0 %vm529_vm0, %v10732_v10  ;;  %10032 = vmatmul.mubr.msk.bf16.vlgmr.msra.gmra.mrb[0].mxu1 %vm529_vm0, %v10737_v14 }
  0x2a   : > { %10051 = vmatprep.mubr.msk.bf16.mxu0 %vm529_vm0, %v502_v6  ;;  %10036 = vmatpush3.bf16.msra.mxu1 %v10346_v2 }
  0x2b   : > { %10039 = vmatprep.mubr.msk.bf16.mxu1 %vm529_vm0, %v502_v6  ;;  %10037 = vmatprep.subr.bf16.mxu1 %v10347_v15 }
  0x2e   : > { %10038 = vmatpush3.bf16.msra.mxu1 %v10347_v15 }
  0x31   : > { %10040 = vmatmul.mubr.msk.bf16.vlgmr.msra.gmra.mrb[4].mxu1 %vm529_vm0, %v10732_v10 }
  0x32   : > { %10043 = vmatprep.mubr.msk.bf16.mxu1 %vm529_vm0, %v10734_v11 }
  0x39   : > { %10044 = vmatmul.mubr.msk.bf16.gmra.mrb[8].mxu1 %vm529_vm0, %v10737_v14 }
  0x3a   : > { %10075 = vmatprep.mubr.msk.f32.mxu1 %vm1380_vm1, %v1187_v16 }
  0xfc   : > { %v10029_v28 = vpop.f32.mrb[0].mxu0  ;;  %v10033_v32 = vpop.f32.mrb[0].mxu1 }
  0xfd   : > { %v585_v29 = vadd.f32 %v10029_v28, %v10767_v26  ;;  %v576_v31 = vpop.f32.mrb[1].mxu0  ;;  %v10780_v34 = vadd.f32 %v10033_v32, %v10767_v26  ;;  %v592_v36 = vpop.f32.mrb[1].mxu1 }
  0xfe   : > { %v10777_v33 = vadd.f32 %v10767_v26, %v576_v31  ;;  %v10030_v35 = vpop.f32.mrb[2].mxu0  ;;  %v10786_v41 = vadd.f32 %v10767_v26, %v592_v36  ;;  %v10790_v43 = vpop.f32.mrb[2].mxu1 }
  0xff   : > { %v893_v38 = vcombine.high %v585_v29, %v14569_v37  ;;  %v900_v39 = vrot.slane %v585_v29, %v10770_v27  ;;  %v588_v40 = vadd.f32 %v10030_v35, %v10767_v26  ;;  %v10788_v42 = vpop.f32.mrb[3].mxu0  ;;  %v1089_v46 = vcombine.high %v10780_v34, %v14569_v37  ;;  %v10800_v48 = vpop.f32.mrb[3].mxu1 }
 0x100   : > { %v795_v44 = vcombine.high %v10777_v33, %v14569_v37  ;;  %v802_v45 = vrot.slane %v10777_v33, %v10770_v27  ;;  %v1096_v47 = vrot.slane %v10780_v34, %v10770_v27  ;;  %v596_v23 = vadd.f32 %v10767_v26, %v10800_v48 }
 0x101   : > { %v907_v49 = vrot.slane %v893_v38, %v10770_v27  ;;  %v908_v50 = vcombine.high %v900_v39, %v14569_v37  ;;  %v915_v51 = vrot.slane %v900_v39, %v10774_v30  ;;  %v10805_v52 = vpack.c.bf16 %v588_v40, %v585_v29 }
 0x102   : > { %v809_v53 = vrot.slane %v795_v44, %v10770_v27  ;;  %v810_v54 = vcombine.high %v802_v45, %v14569_v37  ;;  %v817_v55 = vrot.slane %v802_v45, %v10774_v30  ;;  %v1103_v56 = vrot.slane %v1089_v46, %v10770_v27 }
 0x103   : > { %14587 = vst [vmem:[#allocation13_spill] sm:$0xff] %v10805_v52  ;;  %v922_v57 = vrot.slane %v908_v50, %v10774_v30  ;;  %v923_v58 = vcombine.high %v907_v49, %v14569_v37  ;;  %v10814_v59 = vrot.slane %v907_v49, %v10774_v30  ;;  %v938_v60 = vcombine.high %v915_v51, %v14569_v37 }
 0x104   : > { %v824_v61 = vrot.slane %v810_v54, %v10774_v30  ;;  %v825_v62 = vcombine.high %v809_v53, %v14569_v37  ;;  %v10820_v63 = vrot.slane %v809_v53, %v10774_v30  ;;  %v840_v0 = vcombine.high %v817_v55, %v14569_v37  ;;  %v10833_v5 = vpop.f32.mrb[4].mxu1 }
 0x105   : > { %v10824_v1 = vrot.slane %v923_v58, %v10774_v30  ;;  %v10827_v2 = vcombine.high %v922_v57, %v14569_v37  ;;  %v10831_v3 = vcombine.high %v10814_v59, %v14569_v37  ;;  %v1288_v4 = vrot.slane %v938_v60, 7  ;;  %v10842_v12 = vpop.f32.mrb[5].mxu1 }
 0x106   : > { %v1290_v6 = vrot.slane %v922_v57, 6  ;;  %v10837_v8 = vrot.slane %v825_v62, %v10774_v30  ;;  %v10840_v9 = vcombine.high %v824_v61, %v14569_v37  ;;  %v10849_v18 = vcombine.high %v10820_v63, %v14569_v37  ;;  %v10851_v19 = vpop.f32.mrb[6].mxu1 }
 0x107   : > { %v1289_v13 = vsel %vm1254_vm2, %v1288_v4, %v915_v51  ;;  %v1253_v21 = vrot.slane %v840_v0, 7  ;;  %v1256_v22 = vrot.slane %v824_v61, 6  ;;  %v10857_v25 = vpop.f32.mrb[7].mxu1  ;;  %v1104_v31 = vcombine.high %v1096_v47, %v14569_v37 }
 0x108   : > { %v10854_v20 = vsel %vm1257_vm3, %v1290_v6, %v1289_v13  ;;  %v1111_v32 = vrot.slane %v1096_v47, %v10774_v30  ;;  %v1119_v36 = vcombine.high %v1103_v56, %v14569_v37  ;;  %v10866_v38 = vrot.slane %v1103_v56, %v10774_v30 }
 0x109   : > { %v1255_v35 = vsel %vm1254_vm2, %v1253_v21, %v817_v55  ;;  %v942_v39 = vcombine.high %v588_v40, %v14569_v37  ;;  %v1118_v45 = vrot.slane %v1104_v31, %v10774_v30  ;;  %v949_v49 = vrot.slane %v588_v40, %v10770_v27 }
 0x10a   : > { %v10870_v44 = vsel %vm1257_vm3, %v1256_v22, %v1255_v35  ;;  %v1134_v46 = vcombine.high %v1111_v32, %v14569_v37  ;;  %v10876_v47 = vrot.slane %v1119_v36, %v10774_v30  ;;  %v10880_v50 = vcombine.high %v10866_v38, %v14569_v37 }
 0x10b   : > { %v956_v53 = vrot.slane %v942_v39, %v10770_v27  ;;  %v10885_v54 = vcombine.high %v1118_v45, %v14569_v37  ;;  %v1346_v56 = vrot.slane %v1118_v45, 6  ;;  %v957_v57 = vcombine.high %v949_v49, %v14569_v37 }
 0x10c   : > { %v1344_v55 = vrot.slane %v1134_v46, 7  ;;  %v10888_v58 = vpop.f32.mrb[8].mxu1  ;;  %v964_v60 = vrot.slane %v949_v49, %v10774_v30  ;;  %v991_v21 = vcombine.high %v10786_v41, %v14569_v37  ;;  %v11003_v52 = vpack.c.bf16 %v596_v23, %v10786_v41 }
 0x10d   : > { %v972_v61 = vcombine.high %v956_v53, %v14569_v37  ;;  %v10894_v62 = vrot.slane %v956_v53, %v10774_v30  ;;  %v10896_v0 = vpop.f32.mrb[9].mxu1  ;;  %v971_v13 = vrot.slane %v957_v57, %v10774_v30  ;;  %v998_v53 = vrot.slane %v10786_v41, %v10770_v27 }
 0x10e   : > { %v1345_v4 = vsel %vm1254_vm2, %v1344_v55, %v1111_v32  ;;  %v10903_v22 = vpop.f32.mrb[10].mxu1  ;;  %v987_v36 = vcombine.high %v964_v60, %v14569_v37  ;;  %v1005_v57 = vrot.slane %v991_v21, %v10770_v27  ;;  %14590 = vst [vmem:[#allocation16_spill] sm:$0xff] %v11003_v52  ;;  %v1047_v41 = vrot.slane %v596_v23, %v10770_v27 }
 0x10f   : > { %v10906_v31 = vsel %vm1257_vm3, %v1346_v56, %v1345_v4  ;;  %v10909_v35 = vrot.slane %v972_v61, %v10774_v30  ;;  %v10914_v32 = vcombine.high %v10894_v62, %v14569_v37  ;;  %v10916_v39 = vpop.f32.mrb[11].mxu1  ;;  %v10919_v45 = vcombine.high %v971_v13, %v14569_v37 }
 0x110   : > { %v1304_v46 = vrot.slane %v971_v13, 6  ;;  %v1302_v55 = vrot.slane %v987_v36, 7  ;;  %v580_v61 = vadd.f32 %v10767_v26, %v10788_v42  ;;  %v1006_v17 = vcombine.high %v998_v53, %v14569_v37 }
 0x111   : > { %v1013_v40 = vrot.slane %v998_v53, %v10774_v30  ;;  %v604_v13 = vadd.f32 %v10790_v43, %v10767_v26  ;;  %v1021_v36 = vcombine.high %v1005_v57, %v14569_v37  ;;  %v10936_v6 = vrot.slane %v1005_v57, %v10774_v30 }
 0x112   : > { %v1303_v51 = vsel %vm1254_vm2, %v1302_v55, %v964_v60  ;;  %v10939_v21 = vpack.c.bf16 %v580_v61, %v10777_v33  ;;  %v1020_v56 = vrot.slane %v1006_v17, %v10774_v30  ;;  %v844_v49 = vcombine.high %v580_v61, %v14569_v37 }
 0x113   : > { %v10942_v42 = vsel %vm1257_vm3, %v1304_v46, %v1303_v51  ;;  %v1036_v53 = vcombine.high %v1013_v40, %v14569_v37  ;;  %v10948_v43 = vrot.slane %v1021_v36, %v10774_v30  ;;  %v10952_v60 = vcombine.high %v10936_v6, %v14569_v37 }
 0x114   : > { %14588 = vst [vmem:[#allocation14_spill] sm:$0xff] %v10939_v21  ;;  %v851_v33 = vrot.slane %v580_v61, %v10770_v27  ;;  %v10957_v51 = vcombine.high %v1020_v56, %v14569_v37  ;;  %v1318_v17 = vrot.slane %v1020_v56, 6  ;;  %v858_v57 = vrot.slane %v844_v49, %v10770_v27 }
 0x115   : > { %v1316_v46 = vrot.slane %v1036_v53, 7  ;;  %v10964_v7 = vpack.c.bf16 %v604_v13, %v10780_v34  ;;  %v1138_v34 = vcombine.high %v604_v13, %v14569_v37  ;;  %v1145_v16 = vrot.slane %v604_v13, %v10770_v27 }
 0x116   : > { %v859_v36 = vcombine.high %v851_v33, %v14569_v37  ;;  %v866_v4 = vrot.slane %v851_v33, %v10774_v30  ;;  %v874_v15 = vcombine.high %v858_v57, %v14569_v37  ;;  %v10970_v53 = vrot.slane %v858_v57, %v10774_v30 }
 0x117   : > { %14589 = vst [vmem:[#allocation15_spill] sm:$0xff] %v10964_v7  ;;  %v1317_v55 = vsel %vm1254_vm2, %v1316_v46, %v1013_v40  ;;  %v1152_v61 = vrot.slane %v1138_v34, %v10770_v27  ;;  %v1160_v28 = vrot.slane %v1145_v16, %v10774_v30  ;;  %v1055_v21 = vcombine.high %v1047_v41, %v14569_v37 }
 0x118   : > { %v10973_v49 = vsel %vm1257_vm3, %v1318_v17, %v1317_v55  ;;  %v873_v56 = vrot.slane %v859_v36, %v10774_v30  ;;  %v889_v33 = vcombine.high %v866_v4, %v14569_v37  ;;  %v10979_v40 = vrot.slane %v874_v15, %v10774_v30 }
 0x119   : > { %v10983_v46 = vcombine.high %v10970_v53, %v14569_v37  ;;  %v1280_v57 = vrot.slane %v10970_v53, 4  ;;  %v1153_v15 = vcombine.high %v1145_v16, %v14569_v37  ;;  %v1168_v7 = vcombine.high %v1152_v61, %v14569_v37 }
 0x11a   : > { %v890_v55 = vcombine.high %v873_v56, %v14569_v37  ;;  %v1274_v17 = vrot.slane %v889_v33, 7  ;;  %v1276_v36 = vrot.slane %v873_v56, 6  ;;  %v10997_v33 = vrot.slane %v1152_v61, %v10774_v30 }
 0x11b   : > { %v1282_v29 = vrot.slane %v10983_v46, 3  ;;  %v1167_v34 = vrot.slane %v1153_v15, %v10774_v30  ;;  %v1183_v46 = vcombine.high %v1160_v28, %v14569_v37  ;;  %v11006_v26 = vrot.slane %v1168_v7, %v10774_v30 }
 0x11c   : > { %v1275_v53 = vsel %vm1254_vm2, %v1274_v17, %v866_v4  ;;  %v1278_v13 = vrot.slane %v890_v55, 5  ;;  %v11010_v48 = vcombine.high %v10997_v33, %v14569_v37  ;;  %v1040_v4 = vcombine.high %v596_v23, %v14569_v37 }
 0x11d   : > { %v1277_v56 = vsel %vm1257_vm3, %v1276_v36, %v1275_v53  ;;  %v11015_v61 = vcombine.high %v1167_v34, %v14569_v37  ;;  %v1358_v55 = vrot.slane %v1183_v46, 7  ;;  %v1360_v17 = vrot.slane %v1167_v34, 6 }
 0x11e   : > { %v1054_v7 = vrot.slane %v1040_v4, %v10770_v27  ;;  %v843_v15 = vcombine.high %v10837_v8, %v14569_v37  ;;  %v892_v53 = vcombine.high %v10979_v40, %v14569_v37  ;;  %v1062_v34 = vrot.slane %v1047_v41, %v10774_v30 }
 0x11f   : > { %v1359_v16 = vsel %vm1254_vm2, %v1358_v55, %v1160_v28  ;;  %v14591_v36 = vrot.slane %v10840_v9, 5  ;;  %v1069_v28 = vrot.slane %v1055_v21, %v10774_v30  ;;  %v14592_v52 = vrot.slane %v10820_v63, 4 }
 0x120   : > { %v11029_v23 = vsel %vm1257_vm3, %v1360_v17, %v1359_v16  ;;  %v1070_v46 = vcombine.high %v1054_v7, %v14569_v37  ;;  %v1077_v4 = vrot.slane %v1054_v7, %v10774_v30  ;;  %v1085_v55 = vcombine.high %v1062_v34, %v14569_v37 }
 0x121   : > { %v1261_v24 = vsel %vm1260_vm4, %v14591_v36, %v10870_v44  ;;  %v1268_v16 = vrot.slane %v10837_v8, 2  ;;  %v14593_v14 = vrot.slane %v10849_v18, 3  ;;  %v1086_v44 = vcombine.high %v1069_v28, %v14569_v37 }
 0x122   : > { %v1264_v41 = vsel %vm1263_vm5, %v14592_v52, %v1261_v24  ;;  %v1084_v17 = vrot.slane %v1070_v46, %v10774_v30  ;;  %v1087_v27 = vcombine.high %v1077_v4, %v14569_v37  ;;  %v1336_v7 = vrot.slane %v1077_v4, 4 }
 0x123   : > { %v1267_v9 = vsel %vm1266_vm6, %v14593_v14, %v1264_v41  ;;  %v1330_v21 = vrot.slane %v1085_v55, 7  ;;  %v1332_v36 = vrot.slane %v1069_v28, 6  ;;  %v1271_v10 = vrot.slane %v843_v15, 1 }
 0x124   : > { %v1270_v11 = vsel %vm1269_vm7, %v1268_v16, %v1267_v9  ;;  %v1338_v63 = vrot.slane %v1087_v27, 3  ;;  %v1279_v24 = vsel %vm1260_vm4, %v1278_v13, %v1277_v56  ;;  %v1284_v52 = vrot.slane %v10979_v40, 2 }
 0x125   : > { %v1331_v8 = vsel %vm1254_vm2, %v1330_v21, %v1062_v34  ;;  %v1334_v46 = vrot.slane %v1086_v44, 5  ;;  %v1281_v4 = vsel %vm1263_vm5, %v1280_v57, %v1279_v24  ;;  %v1286_v18 = vrot.slane %v892_v53, 1 }
 0x126   : > { %v1333_v14 = vsel %vm1257_vm3, %v1332_v36, %v1331_v8  ;;  %v1273_v41 = vsel %vm1272_vm8, %v1271_v10, %v1270_v11  ;;  %v1283_v28 = vsel %vm1266_vm6, %v1282_v29, %v1281_v4  ;;  %v941_v27 = vcombine.high %v10824_v1, %v14569_v37 }
 0x127   : > { %v1285_v15 = vsel %vm1269_vm7, %v1284_v52, %v1283_v28  ;;  %v990_v40 = vcombine.high %v10909_v35, %v14569_v37  ;;  %v14594_v13 = vrot.slane %v10827_v2, 5  ;;  %v1298_v56 = vrot.slane %v10824_v1, 2 }
 0x128   : > { %v1287_v53 = vsel %vm1272_vm8, %v1286_v18, %v1285_v15  ;;  %v14595_v10 = vrot.slane %v10814_v59, 4  ;;  %v1300_v29 = vrot.slane %v941_v27, 1  ;;  %v14596_v34 = vrot.slane %v10919_v45, 5 }
 0x129   : > { %v1293_v57 = vsel %vm1260_vm4, %v14594_v13, %v10854_v20  ;;  %v10266_v16 = vpack.c.bf16 %v1287_v53, %v1273_v41  ;;  %v14597_v9 = vrot.slane %v10831_v3, 3  ;;  %v14598_v20 = vrot.slane %v10894_v62, 4 }
 0x12a   : > { %v1295_v11 = vsel %vm1263_vm5, %v14595_v10, %v1293_v57  ;;  %v1307_v55 = vsel %vm1260_vm4, %v14596_v34, %v10942_v42  ;;  %v1312_v44 = vrot.slane %v10909_v35, 2  ;;  %v14599_v21 = vrot.slane %v10914_v32, 3 }
 0x12b   : > { %v1297_v2 = vsel %vm1266_vm6, %v14597_v9, %v1295_v11  ;;  %v1309_v1 = vsel %vm1263_vm5, %v14598_v20, %v1307_v55  ;;  %v1314_v45 = vrot.slane %v990_v40, 1  ;;  %v1039_v42 = vcombine.high %v10948_v43, %v14569_v37  ;;  %10267 = vmatprep.subr.bf16.mxu1 %v10266_v16 }
 0x12c   : > { %v1299_v59 = vsel %vm1269_vm7, %v1298_v56, %v1297_v2  ;;  %v1311_v36 = vsel %vm1266_vm6, %v14599_v21, %v1309_v1  ;;  %v1088_v62 = vcombine.high %v1084_v17, %v14569_v37  ;;  %v14600_v35 = vrot.slane %v10957_v51, 5  ;;  %10269 = vmatpush3.bf16.msra.mxu1 %v10266_v16 }
 0x12d   : > { %v1301_v3 = vsel %vm1272_vm8, %v1300_v29, %v1299_v59  ;;  %v1313_v24 = vsel %vm1269_vm7, %v1312_v44, %v1311_v36  ;;  %v14601_v8 = vrot.slane %v10936_v6, 4  ;;  %v1326_v18 = vrot.slane %v10948_v43, 2 }
 0x12e   : > { %v1321_v52 = vsel %vm1260_vm4, %v14600_v35, %v10973_v49  ;;  %v1315_v32 = vsel %vm1272_vm8, %v1314_v45, %v1313_v24  ;;  %v1328_v41 = vrot.slane %v1039_v42, 1  ;;  %v14602_v27 = vrot.slane %v10952_v60, 3 }
 0x12f   : > { %v1323_v4 = vsel %vm1263_vm5, %v14601_v8, %v1321_v52  ;;  %v10270_v28 = vpack.c.bf16 %v1315_v32, %v1301_v3  ;;  %v1335_v40 = vsel %vm1260_vm4, %v1334_v46, %v1333_v14  ;;  %v1340_v51 = vrot.slane %v1084_v17, 2 }
 0x130   : > { %v1325_v15 = vsel %vm1266_vm6, %v14602_v27, %v1323_v4  ;;  %v1337_v13 = vsel %vm1263_vm5, %v1336_v7, %v1335_v40  ;;  %v1342_v57 = vrot.slane %v1088_v62, 1  ;;  %v1137_v6 = vcombine.high %v10876_v47, %v14569_v37 }
 0x131   : > { %v1327_v49 = vsel %vm1269_vm7, %v1326_v18, %v1325_v15  ;;  %10271 = vmatprep.subr.bf16.mxu1 %v10270_v28  ;;  %v1339_v56 = vsel %vm1266_vm6, %v1338_v63, %v1337_v13  ;;  %v1186_v60 = vcombine.high %v11006_v26, %v14569_v37  ;;  %v14603_v46 = vrot.slane %v10885_v54, 5  ;;  %v9685_v63 = vld [vmem:[%s14542_s5] ss:$0 sm:$0xff] }
 0x132   : > { %v1329_v43 = vsel %vm1272_vm8, %v1328_v41, %v1327_v49  ;;  %10273 = vmatpush3.bf16.msra.mxu1 %v10270_v28  ;;  %v1341_v7 = vsel %vm1269_vm7, %v1340_v51, %v1339_v56  ;;  %v14604_v14 = vrot.slane %v10866_v38, 4  ;;  %v1354_v10 = vrot.slane %v10876_v47, 2  ;;  %v14613_v13 = vld [vmem:[#allocation12_spill] sm:$0xff] }
 0x133   : > { %v1349_v17 = vsel %vm1260_vm4, %v14603_v46, %v10906_v31  ;;  %v1356_v11 = vrot.slane %v1137_v6, 1  ;;  %v1343_v29 = vsel %vm1272_vm8, %v1342_v57, %v1341_v7  ;;  %v14605_v54 = vrot.slane %v10880_v50, 3 }
 0x134   : > { %v1351_v53 = vsel %vm1263_vm5, %v14604_v14, %v1349_v17  ;;  %v14606_v34 = vrot.slane %v11015_v61, 5  ;;  %v1368_v55 = vrot.slane %v11006_v26, 2  ;;  %v10274_v16 = vpack.c.bf16 %v1343_v29, %v1329_v43 }
 0x135   : > { %v1353_v31 = vsel %vm1266_vm6, %v14605_v54, %v1351_v53  ;;  %v14607_v9 = vrot.slane %v10997_v33, 4  ;;  %v1370_v20 = vrot.slane %v1186_v60, 1  ;;  %v14608_v50 = vrot.slane %v11010_v48, 3 }
 0x136   : > { %v1363_v38 = vsel %vm1260_vm4, %v14606_v34, %v11029_v23  ;;  %v1355_v47 = vsel %vm1269_vm7, %v1354_v10, %v1353_v31  ;;  %v673_v61 = vadd.f32 %v10833_v5, %v9685_v63  ;;  %v665_v23 = vadd.f32 %v9685_v63, %v10842_v12  ;;  %10275 = vmatprep.subr.bf16.mxu1 %v10274_v16 }
 0x137   : > { %v1365_v2 = vsel %vm1263_vm5, %v14607_v9, %v1363_v38  ;;  %v1357_v1 = vsel %vm1272_vm8, %v1356_v11, %v1355_v47  ;;  %v676_v59 = vadd.f32 %v10851_v19, %v9685_v63  ;;  %v668_v33 = vadd.f32 %v9685_v63, %v10857_v25  ;;  %10277 = vmatpush3.bf16.msra.mxu1 %v10274_v16  ;;  %v1188_v19 = vld [vmem:[%s14546_s9 + $0x8] sm:$0xff]  ;;  %v10348_v25 = vld [vmem:[%s14540_s3] sm:$0xff]  }
 0x138   : > { %v1367_v44 = vsel %vm1266_vm6, %v14608_v50, %v1365_v2  ;;  %v689_v21 = vadd.f32 %v10888_v58, %v9685_v63  ;;  %v681_v48 = vadd.f32 %v9685_v63, %v10896_v0  ;;  %v692_v45 = vadd.f32 %v10903_v22, %v9685_v63  ;;  %v10349_v58 = vld [vmem:[%s14540_s3 + $0x8] sm:$0xff]   ;;  %10047 = vmatprep.subr.bf16.mxu0 %v10348_v25  ;;  %v14609_v0 = vld [vmem:[#allocation8_spill] sm:$0xff] }
 0x139   : > { %v1369_v26 = vsel %vm1269_vm7, %v1368_v55, %v1367_v44  ;;  %v684_v5 = vadd.f32 %v9685_v63, %v10916_v39  ;;  %v788_v12 = vpack.c.bf16 %v676_v59, %v673_v61  ;;  %v787_v3 = vpack.c.bf16 %v668_v33, %v665_v23  ;;  %10048 = vmatpush3.bf16.msra.mxu0 %v10348_v25  ;;  %v14610_v22 = vld [vmem:[#allocation9_spill] sm:$0xff]  ;;  %v14611_v39 = vld [vmem:[#allocation10_spill] sm:$0xff] }
 0x13a   : > { %v1371_v36 = vsel %vm1272_vm8, %v1370_v20, %v1369_v26  ;;  %v11151_v24 = vpack.c.bf16 %v692_v45, %v689_v21  ;;  %10049 = vmatprep.subr.bf16.mxu0 %v10349_v58  ;;  %v14612_v35 = vmov 0   ;;  %vm7958_vm2 = vcmask 195584  }
 0x13b   : > { %v10278_v42 = vpack.c.bf16 %v1371_v36, %v1357_v1  ;;  %v11153_v62 = vpack.c.bf16 %v684_v5, %v681_v48  ;;  %2741 = vrot.lane.b32.xlu0 %v787_v3, %s10580_s16  ;;  %2757 = vrot.lane.b32.xlu1 %v787_v3, %s10581_s24  ;;  %v11193_v52 = vpack.i.b16 %v14612_v35, %v14612_v35  ;;  %v2769_v32 = vshrl.u32 %v787_v3, 16 }
 0x13c   : > { %v2785_v51 = vshrl.u32 %v788_v12, 16  ;;  %v2817_v60 = vshrl.u32 %v11151_v24, 16 }
 0x13d   : > { %10279 = vmatprep.subr.bf16.mxu1 %v10278_v42  ;;  %10050 = vmatpush3.bf16.msra.mxu0 %v10349_v58  ;;  %v2801_v49 = vshrl.u32 %v11153_v62, 16 }
 0x13e   : > { %10281 = vmatpush3.bf16.msra.mxu1 %v10278_v42  ;;  %10078 = vmatprep.subr.bf16.mxu0 %v14569_v37 }
 0x13f   : > { %10090 = vmatprep.subr.bf16.mxu1 %v14569_v37  ;;  %2749 = vrot.lane.b32.xlu0 %v787_v3, %s10582_s30 }
 0x140   : > { %2743 = vrot.lane.b32.xlu1 %v788_v12, %s10580_s16  ;;  %10052 = vmatmul.mubr.msk.bf16.vlgmr.msra.gmra.mrb[4].mxu0 %vm529_vm0, %v14609_v0 }
 0x141   : > { %10076 = vmatmul.mubr.msk.f32.vlgmr.msra.gmra.mrb[12].mxu1 %vm1380_vm1, %v1188_v19  ;;  %10055 = vmatprep.mubr.msk.bf16.mxu0 %vm529_vm0, %v14610_v22 }
 0x142   : > { %10098 = vmatprep.mubr.msk.bf16.mxu1 %vm10584_vm10, %v14569_v37 }
 0x143   : > { %2751 = vrot.lane.b32.xlu0 %v788_v12, %s10582_s30 }
 0x144   : > { %2759 = vrot.lane.b32.xlu1 %v788_v12, %s10581_s24 }
 0x147   : > { %2745 = vrot.lane.b32.xlu0 %v11153_v62, %s10580_s16 }
 0x148   : > { %2753 = vrot.lane.b32.xlu1 %v11153_v62, %s10582_s30  ;;  %10056 = vmatmul.mubr.msk.bf16.gmra.mrb[8].mxu0 %vm529_vm0, %v14611_v39 }
 0x149   : > { %10086 = vmatprep.mubr.msk.bf16.mxu0 %vm10584_vm10, %v14569_v37 }
 0x14b   : > { %2761 = vrot.lane.b32.xlu0 %v11153_v62, %s10581_s24 }
 0x14c   : > { %2747 = vrot.lane.b32.xlu1 %v11151_v24, %s10580_s16 }
 0x14f   : > { %2755 = vrot.lane.b32.xlu0 %v11151_v24, %s10582_s30 }
 0x150   : > { %2763 = vrot.lane.b32.xlu1 %v11151_v24, %s10581_s24 }
 0x1ad   : > { %v2742_v8 = vpop.permute.xlu0 %2741  ;;  %v2758_v41 = vpop.permute.xlu1 %2757 }
 0x1ae   : > { %v2767_v4 = vpack.i.b16 %v2742_v8, %v787_v3  ;;  %v2770_v18 = vshrl.u32 %v2742_v8, 16  ;;  %v2778_v15 = vshrl.u32 %v2758_v41, 16 }
 0x1b0   : > { %v2771_v28 = vpack.i.b16 %v2770_v18, %v2769_v32  ;;  %v2829_v27 = vcombine.high %v2767_v4, %v11193_v52  ;;  %v2836_v57 = vrot.slane %v2767_v4, %v14613_v13 }
 0x1b1   : > { %v2750_v40 = vpop.permute.xlu0 %2749 }
 0x1b2   : > { %v2895_v6 = vcombine.high %v2771_v28, %v11193_v52  ;;  %v2775_v43 = vpack.i.b16 %v2758_v41, %v2750_v40  ;;  %v2744_v56 = vpop.permute.xlu1 %2743  ;;  %v2843_v46 = vrot.slane %v2829_v27, %v14613_v13  ;;  %v2777_v17 = vshrl.u32 %v2750_v40, 16 }
 0x1b3   : > { %v2783_v7 = vpack.i.b16 %v2744_v56, %v788_v12  ;;  %v2786_v14 = vshrl.u32 %v2744_v56, 16  ;;  %v2902_v53 = vrot.slane %v2771_v28, %v14613_v13 }
 0x1b4   : > { %v2909_v10 = vrot.slane %v2895_v6, %v14613_v13  ;;  %v2844_v11 = vcombine.high %v2775_v43, %v11193_v52  ;;  %v2851_v63 = vrot.slane %v2775_v43, %v14613_v13  ;;  %v2779_v29 = vpack.i.b16 %v2778_v15, %v2777_v17 }
 0x1b5   : > { %v2787_v54 = vpack.i.b16 %v2786_v14, %v2785_v51  ;;  %v2961_v31 = vcombine.high %v2783_v7, %v11193_v52  ;;  %v11207_v34 = vrot.slane %v2783_v7, %v14613_v13  ;;  %v2752_v38 = vpop.permute.xlu0 %2751 }
 0x1b6   : > { %v2858_v55 = vrot.slane %v2844_v11, %v14613_v13  ;;  %v2859_v16 = vcombine.low %v2836_v57, %v2851_v63  ;;  %v2860_v47 = vcombine.high %v2836_v57, %v2851_v63  ;;  %v2760_v9 = vpop.permute.xlu1 %2759  ;;  %v2793_v2 = vshrl.u32 %v2752_v38, 16 }
 0x1b7   : > { %v2910_v20 = vcombine.high %v2779_v29, %v11193_v52  ;;  %v2917_v1 = vrot.slane %v2779_v29, %v14613_v13  ;;  %v11213_v50 = vrot.slane %v2961_v31, %v14613_v13  ;;  %v3027_v44 = vcombine.high %v2787_v54, %v11193_v52 }
 0x1b8   : > { %v11217_v61 = vrot.slane %v2859_v16, %v10774_v30  ;;  %v11220_v23 = vrot.slane %v2860_v47, %v10774_v30  ;;  %v2875_v26 = vcombine.low %v2843_v46, %v2858_v55  ;;  %v2876_v59 = vcombine.high %v2843_v46, %v2858_v55 }
 0x1b9   : > { %v2924_v33 = vrot.slane %v2910_v20, %v14613_v13  ;;  %v2925_v21 = vcombine.low %v2902_v53, %v2917_v1  ;;  %v2926_v36 = vcombine.high %v2902_v53, %v2917_v1  ;;  %v3034_v48 = vrot.slane %v2787_v54, %v14613_v13  ;;  %v2746_v45 = vpop.permute.xlu0 %2745 }
 0x1ba   : > { %v11225_v5 = vrot.slane %v2875_v26, %v10774_v30  ;;  %v11228_v42 = vrot.slane %v2876_v59, %v10774_v30  ;;  %v3357_v12 = vcombine.low %v11217_v61, %v11220_v23  ;;  %v9721_v3 = vcombine.high %v11217_v61, %v11220_v23  ;;  %v2754_v19 = vpop.permute.xlu1 %2753 }
 0x1bb   : > { %v11235_v25 = vrot.slane %v2925_v21, %v10774_v30  ;;  %v11238_v58 = vrot.slane %v2926_v36, %v10774_v30  ;;  %v2941_v0 = vcombine.low %v2909_v10, %v2924_v33  ;;  %v2942_v22 = vcombine.high %v2909_v10, %v2924_v33 }
 0x1bc   : > { %v3373_v39 = vcombine.low %v11225_v5, %v11228_v42  ;;  %v9722_v35 = vcombine.high %v11225_v5, %v11228_v42  ;;  %v3041_v32 = vrot.slane %v3027_v44, %v14613_v13  ;;  %v2794_v8 = vshrl.u32 %v2760_v9, 16 }
 0x1bd   : > { %v11246_v4 = vrot.slane %v2941_v0, %v10774_v30  ;;  %v11249_v18 = vrot.slane %v2942_v22, %v10774_v30  ;;  %v3407_v41 = vcombine.low %v11235_v25, %v11238_v58  ;;  %v9723_v28 = vcombine.high %v11235_v25, %v11238_v58  ;;  %v2762_v27 = vpop.permute.xlu0 %2761 }
 0x1be   : > { %v2791_v15 = vpack.i.b16 %v2760_v9, %v2752_v38  ;;  %v2795_v40 = vpack.i.b16 %v2794_v8, %v2793_v2  ;;  %v2799_v51 = vpack.i.b16 %v2746_v45, %v11153_v62  ;;  %v2802_v57 = vshrl.u32 %v2746_v45, 16  ;;  %v2748_v6 = vpop.permute.xlu1 %2747 }
 0x1bf   : > { %v2809_v43 = vshrl.u32 %v2754_v19, 16  ;;  %v2807_v56 = vpack.i.b16 %v2762_v27, %v2754_v19  ;;  %v2810_v46 = vshrl.u32 %v2762_v27, 16  ;;  %v2815_v17 = vpack.i.b16 %v2748_v6, %v11151_v24 }
 0x1c0   : > { %v2976_v7 = vcombine.high %v2791_v15, %v11193_v52  ;;  %v2983_v14 = vrot.slane %v2791_v15, %v14613_v13  ;;  %v3042_v53 = vcombine.high %v2795_v40, %v11193_v52  ;;  %v3049_v10 = vrot.slane %v2795_v40, %v14613_v13 }
 0x1c1   : > { %v2803_v11 = vpack.i.b16 %v2802_v57, %v2801_v49  ;;  %v3093_v63 = vcombine.high %v2799_v51, %v11193_v52  ;;  %v3100_v29 = vrot.slane %v2799_v51, %v14613_v13  ;;  %v2811_v54 = vpack.i.b16 %v2810_v46, %v2809_v43 }
 0x1c2   : > { %v2990_v31 = vrot.slane %v2976_v7, %v14613_v13  ;;  %v2991_v38 = vcombine.low %v11207_v34, %v2983_v14  ;;  %v2992_v55 = vcombine.high %v11207_v34, %v2983_v14  ;;  %v3056_v16 = vrot.slane %v3042_v53, %v14613_v13 }
 0x1c3   : > { %v3057_v47 = vcombine.low %v3034_v48, %v3049_v10  ;;  %v3058_v9 = vcombine.high %v3034_v48, %v3049_v10  ;;  %v3107_v2 = vrot.slane %v3093_v63, %v14613_v13  ;;  %v3159_v62 = vcombine.high %v2803_v11, %v11193_v52 }
 0x1c4   : > { %v11272_v49 = vrot.slane %v2991_v38, %v10774_v30  ;;  %v11275_v20 = vrot.slane %v2992_v55, %v10774_v30  ;;  %v3007_v1 = vcombine.low %v11213_v50, %v2990_v31  ;;  %v3008_v44 = vcombine.high %v11213_v50, %v2990_v31 }
 0x1c5   : > { %v11280_v34 = vrot.slane %v3057_v47, %v10774_v30  ;;  %v11283_v26 = vrot.slane %v3058_v9, %v10774_v30  ;;  %v3073_v59 = vcombine.low %v3041_v32, %v3056_v16  ;;  %v3074_v33 = vcombine.high %v3041_v32, %v3056_v16  ;;  %v2764_v32 = vpop.permute.xlu1 %2763 }
 0x1c6   : > { %v11286_v21 = vrot.slane %v3007_v1, %v10774_v30  ;;  %v11289_v36 = vrot.slane %v3008_v44, %v10774_v30  ;;  %v3457_v48 = vcombine.low %v11272_v49, %v11275_v20  ;;  %v9725_v50 = vcombine.high %v11272_v49, %v11275_v20 }
 0x1c7   : > { %v11296_v45 = vrot.slane %v3073_v59, %v10774_v30  ;;  %v11299_v19 = vrot.slane %v3074_v33, %v10774_v30  ;;  %v3507_v0 = vcombine.low %v11280_v34, %v11283_v26  ;;  %v9727_v22 = vcombine.high %v11280_v34, %v11283_v26  ;;  %v2756_v33 = vpop.permute.xlu0 %2755 }
 0x1c8   : > { %v3473_v8 = vcombine.low %v11286_v21, %v11289_v36  ;;  %v9726_v27 = vcombine.high %v11286_v21, %v11289_v36  ;;  %v3166_v15 = vrot.slane %v2803_v11, %v14613_v13  ;;  %v3173_v40 = vrot.slane %v3159_v62, %v14613_v13 }
 0x1c9   : > { %v3108_v51 = vcombine.high %v2807_v56, %v11193_v52  ;;  %v3115_v57 = vrot.slane %v2807_v56, %v14613_v13  ;;  %v3174_v43 = vcombine.high %v2811_v54, %v11193_v52  ;;  %v3181_v46 = vrot.slane %v2811_v54, %v14613_v13 }
 0x1ca   : > { %v2818_v7 = vshrl.u32 %v2748_v6, 16  ;;  %v3225_v14 = vcombine.high %v2815_v17, %v11193_v52  ;;  %v3232_v53 = vrot.slane %v2815_v17, %v14613_v13  ;;  %v2826_v10 = vshrl.u32 %v2764_v32, 16 }
 0x1cb   : > { %v3122_v63 = vrot.slane %v3108_v51, %v14613_v13  ;;  %v3123_v31 = vcombine.low %v3100_v29, %v3115_v57  ;;  %v3124_v11 = vcombine.high %v3100_v29, %v3115_v57  ;;  %v3188_v38 = vrot.slane %v3174_v43, %v14613_v13 }
 0x1cc   : > { %v3189_v55 = vcombine.low %v3166_v15, %v3181_v46  ;;  %v3190_v16 = vcombine.high %v3166_v15, %v3181_v46  ;;  %v2819_v56 = vpack.i.b16 %v2818_v7, %v2817_v60  ;;  %v3239_v47 = vrot.slane %v3225_v14, %v14613_v13 }
 0x1cd   : > { %v11323_v6 = vrot.slane %v3123_v31, %v10774_v30  ;;  %v11326_v54 = vrot.slane %v3124_v11, %v10774_v30  ;;  %v3139_v17 = vcombine.low %v3107_v2, %v3122_v63  ;;  %v3140_v9 = vcombine.high %v3107_v2, %v3122_v63 }
 0x1ce   : > { %v11329_v62 = vrot.slane %v3189_v55, %v10774_v30  ;;  %v11332_v29 = vrot.slane %v3190_v16, %v10774_v30  ;;  %v3205_v1 = vcombine.low %v3173_v40, %v3188_v38  ;;  %v3206_v44 = vcombine.high %v3173_v40, %v3188_v38 }
 0x1cf   : > { %v11335_v24 = vrot.slane %v3139_v17, %v10774_v30  ;;  %v11338_v60 = vrot.slane %v3140_v9, %v10774_v30  ;;  %v3557_v59 = vcombine.low %v11323_v6, %v11326_v54  ;;  %v9729_v2 = vcombine.high %v11323_v6, %v11326_v54 }
 0x1d0   : > { %v11345_v15 = vrot.slane %v3205_v1, %v10774_v30  ;;  %v11348_v51 = vrot.slane %v3206_v44, %v10774_v30  ;;  %v3607_v40 = vcombine.low %v11329_v62, %v11332_v29  ;;  %v9731_v57 = vcombine.high %v11329_v62, %v11332_v29 }
 0x1d1   : > { %v3573_v43 = vcombine.low %v11335_v24, %v11338_v60  ;;  %v9730_v46 = vcombine.high %v11335_v24, %v11338_v60  ;;  %v3291_v7 = vcombine.high %v2819_v56, %v11193_v52  ;;  %v3298_v14 = vrot.slane %v2819_v56, %v14613_v13 }
 0x1d2   : > { %v2823_v63 = vpack.i.b16 %v2764_v32, %v2756_v33  ;;  %v2825_v31 = vshrl.u32 %v2756_v33, 16  ;;  %v3364_v11 = vrot.slane %v3357_v12, %v14613_v13  ;;  %v3372_v38 = vrot.slane %v9721_v3, %v14613_v13 }
 0x1d3   : > { %v3305_v55 = vrot.slane %v3291_v7, %v14613_v13  ;;  %v3380_v16 = vrot.slane %v3373_v39, %v14613_v13  ;;  %v3388_v32 = vrot.slane %v9722_v35, %v14613_v13  ;;  %v3414_v12 = vrot.slane %v3407_v41, %v14613_v13 }
 0x1d4   : > { %v2827_v56 = vpack.i.b16 %v2826_v10, %v2825_v31  ;;  %v3240_v61 = vcombine.high %v2823_v63, %v11193_v52  ;;  %v3247_v23 = vrot.slane %v2823_v63, %v14613_v13  ;;  %v3389_v3 = vcombine.low %v3364_v11, %v3372_v38 }
 0x1d5   : > { %v3397_v17 = vcombine.low %v3380_v16, %v3388_v32  ;;  %v3422_v39 = vrot.slane %v9723_v28, %v14613_v13  ;;  %v3423_v5 = vcombine.low %v11246_v4, %v11249_v18  ;;  %v9724_v42 = vcombine.high %v11246_v4, %v11249_v18 }
 0x1d6   : > { %v3254_v35 = vrot.slane %v3240_v61, %v14613_v13  ;;  %v3255_v41 = vcombine.low %v3232_v53, %v3247_v23  ;;  %v3256_v10 = vcombine.high %v3232_v53, %v3247_v23  ;;  %v3306_v9 = vcombine.high %v2827_v56, %v11193_v52 }
 0x1d7   : > { %v3313_v1 = vrot.slane %v2827_v56, %v14613_v13  ;;  %v11395_v44 = vrot.slane %v3389_v3, %v10774_v30  ;;  %v11398_v25 = vrot.slane %v3397_v17, %v10774_v30  ;;  %v3430_v58 = vrot.slane %v3423_v5, %v14613_v13 }
 0x1d8   : > { %v11402_v28 = vrot.slane %v3255_v41, %v10774_v30  ;;  %v11405_v4 = vrot.slane %v3256_v10, %v10774_v30  ;;  %v3271_v18 = vcombine.low %v3239_v47, %v3254_v35  ;;  %v3272_v53 = vcombine.high %v3239_v47, %v3254_v35 }
 0x1d9   : > { %v3320_v33 = vrot.slane %v3306_v9, %v14613_v13  ;;  %v3321_v7 = vcombine.low %v3298_v14, %v3313_v1  ;;  %v3322_v63 = vcombine.high %v3298_v14, %v3313_v1  ;;  %v3405_v31 = vcombine.low %v11395_v44, %v11398_v25 }
 0x1da   : > { %v11411_v11 = vrot.slane %v3271_v18, %v10774_v30  ;;  %v11414_v38 = vrot.slane %v3272_v53, %v10774_v30  ;;  %v3657_v16 = vcombine.low %v11402_v28, %v11405_v4  ;;  %v9733_v32 = vcombine.high %v11402_v28, %v11405_v4 }
 0x1db   : > { %v11421_v47 = vrot.slane %v3321_v7, %v10774_v30  ;;  %v11424_v14 = vrot.slane %v3322_v63, %v10774_v30  ;;  %v3337_v56 = vcombine.low %v3305_v55, %v3320_v33  ;;  %v3338_v61 = vcombine.high %v3305_v55, %v3320_v33 }
 0x1dc   : > { %v3673_v23 = vcombine.low %v11411_v11, %v11414_v38  ;;  %v9734_v3 = vcombine.high %v11411_v11, %v11414_v38  ;;  %v3438_v17 = vrot.slane %v9724_v42, %v14613_v13  ;;  %v3439_v5 = vcombine.low %v3414_v12, %v3422_v39 }
 0x1dd   : > { %v11432_v35 = vrot.slane %v3337_v56, %v10774_v30  ;;  %v11435_v41 = vrot.slane %v3338_v61, %v10774_v30  ;;  %v3707_v10 = vcombine.low %v11421_v47, %v11424_v14  ;;  %v9735_v55 = vcombine.high %v11421_v47, %v11424_v14 }
 0x1de   : > { %v11442_v9 = vrot.slane %v3439_v5, %v10774_v30  ;;  %v3447_v1 = vcombine.low %v3430_v58, %v3438_v17  ;;  %v3760_v18 = vshrl.u32 %v3405_v31, 16  ;;  %v3464_v12 = vrot.slane %v3457_v48, %v14613_v13 }
 0x1df   : > { %v3472_v39 = vrot.slane %v9725_v50, %v14613_v13  ;;  %v3480_v42 = vrot.slane %v3473_v8, %v14613_v13  ;;  %v3488_v58 = vrot.slane %v9726_v27, %v14613_v13  ;;  %v3514_v48 = vrot.slane %v3507_v0, %v14613_v13 }
 0x1e0   : > { %v11465_v53 = vrot.slane %v3447_v1, %v10774_v30  ;;  %v3522_v49 = vrot.slane %v9727_v22, %v14613_v13  ;;  %v3523_v20 = vcombine.low %v11296_v45, %v11299_v19  ;;  %v9728_v21 = vcombine.high %v11296_v45, %v11299_v19 }
 0x1e1   : > { %v3489_v36 = vcombine.low %v3464_v12, %v3472_v39  ;;  %v3497_v50 = vcombine.low %v3480_v42, %v3488_v58  ;;  %v3564_v0 = vrot.slane %v3557_v59, %v14613_v13  ;;  %v3572_v8 = vrot.slane %v9729_v2, %v14613_v13 }
 0x1e2   : > { %v3455_v34 = vcombine.low %v11442_v9, %v11465_v53  ;;  %v3530_v26 = vrot.slane %v3523_v20, %v14613_v13  ;;  %v3538_v22 = vrot.slane %v9728_v21, %v14613_v13  ;;  %v3539_v45 = vcombine.low %v3514_v48, %v3522_v49 }
 0x1e3   : > { %v3496_v19 = vrot.slane %v3489_v36, %v10774_v30  ;;  %v3504_v27 = vrot.slane %v3497_v50, %v10774_v30  ;;  %v3580_v59 = vrot.slane %v3573_v43, %v14613_v13  ;;  %v3588_v6 = vrot.slane %v9730_v46, %v14613_v13 }
 0x1e4   : > { %v3759_v54 = vpack.i.b16 %v3455_v34, %v3405_v31  ;;  %v3761_v2 = vshrl.u32 %v3455_v34, 16  ;;  %v11498_v33 = vrot.slane %v3539_v45, %v10774_v30  ;;  %v3547_v7 = vcombine.low %v3530_v26, %v3538_v22 }
 0x1e5   : > { %v3505_v63 = vcombine.low %v3496_v19, %v3504_v27  ;;  %v3589_v56 = vcombine.low %v3564_v0, %v3572_v8  ;;  %v3597_v61 = vcombine.low %v3580_v59, %v3588_v6  ;;  %v3614_v17 = vrot.slane %v3607_v40, %v14613_v13 }
 0x1e6   : > { %v5161_v43 = vsel %vm5156_vm9, %v3759_v54, 0  ;;  %v3762_v5 = vpack.i.b16 %v3761_v2, %v3760_v18  ;;  %v3554_v24 = vrot.slane %v3547_v7, %v10774_v30  ;;  %v3622_v60 = vrot.slane %v9731_v57, %v14613_v13 }
 0x1e7   : > { %10079 = vmatpush3.bf16.xpose.msra.mxu0 %v5161_v43  ;;  %v3772_v46 = vshrl.u32 %v3505_v63, 16  ;;  %v3596_v31 = vrot.slane %v3589_v56, %v10774_v30  ;;  %v3604_v1 = vrot.slane %v3597_v61, %v10774_v30  ;;  %v3623_v12 = vcombine.low %v11345_v15, %v11348_v51 }
 0x1e8   : > { %v5217_v40 = vsel %vm5156_vm9, %v3762_v5, 0  ;;  %10080 = vmatprep.subr.bf16.mxu0 %v14569_v37  ;;  %v3555_v18 = vcombine.low %v11498_v33, %v3554_v24  ;;  %v9732_v39 = vcombine.high %v11345_v15, %v11348_v51  ;;  %v3639_v62 = vcombine.low %v3614_v17, %v3622_v60 }
 0x1e9   : > { %10091 = vmatpush3.bf16.xpose.msra.mxu1 %v5217_v40  ;;  %v3605_v29 = vcombine.low %v3596_v31, %v3604_v1  ;;  %v3630_v57 = vrot.slane %v3623_v12, %v14613_v13  ;;  %v3664_v42 = vrot.slane %v3657_v16, %v14613_v13  ;;  %v3672_v58 = vrot.slane %v9733_v32, %v14613_v13 }
 0x1ea   : > { %v3771_v48 = vpack.i.b16 %v3555_v18, %v3505_v63  ;;  %10092 = vmatprep.subr.bf16.mxu1 %v14569_v37  ;;  %v3773_v49 = vshrl.u32 %v3555_v18, 16  ;;  %v3638_v15 = vrot.slane %v9732_v39, %v14613_v13  ;;  %v3646_v51 = vrot.slane %v3639_v62, %v10774_v30 }
 0x1eb   : > { %v3784_v20 = vshrl.u32 %v3605_v29, 16  ;;  %v3680_v21 = vrot.slane %v3673_v23, %v14613_v13  ;;  %v3688_v28 = vrot.slane %v9734_v3, %v14613_v13  ;;  %v3689_v4 = vcombine.low %v3664_v42, %v3672_v58 }
 0x1ec   : > { %v5164_v16 = vsel %vm5156_vm9, %v3771_v48, 0  ;;  %v3774_v32 = vpack.i.b16 %v3773_v49, %v3772_v46  ;;  %v3647_v36 = vcombine.low %v3630_v57, %v3638_v15  ;;  %v3714_v50 = vrot.slane %v3707_v10, %v14613_v13 }
 0x1ed   : > { %v3696_v0 = vrot.slane %v3689_v4, %v10774_v30  ;;  %v3697_v8 = vcombine.low %v3680_v21, %v3688_v28  ;;  %v3722_v23 = vrot.slane %v9735_v55, %v14613_v13  ;;  %v3723_v11 = vcombine.low %v11432_v35, %v11435_v41  ;;  %v14614_v4 = vld [vmem:[#allocation11_spill] sm:$0xff] }
 0x1ee   : > { %v5220_v38 = vsel %vm5156_vm9, %v3774_v32, 0  ;;  %v3654_v3 = vrot.slane %v3647_v36, %v10774_v30  ;;  %v9736_v34 = vcombine.high %v11432_v35, %v11435_v41  ;;  %v11557_v10 = vcombine.high %v11395_v44, %v11398_v25 }
 0x1ef   : > { %10081 = vmatpush3.bf16.xpose.msra.mxu0 %v5164_v16  ;;  %v3704_v26 = vrot.slane %v3697_v8, %v10774_v30  ;;  %v3730_v47 = vrot.slane %v3723_v11, %v14613_v13  ;;  %v3739_v14 = vcombine.low %v3714_v50, %v3722_v23  ;;  %v11563_v55 = vcombine.high %v11442_v9, %v11465_v53 }
 0x1f0   : > { %10082 = vmatprep.subr.bf16.mxu0 %v14569_v37  ;;  %v3655_v22 = vcombine.low %v3646_v51, %v3654_v3  ;;  %v3738_v45 = vrot.slane %v9736_v34, %v14613_v13  ;;  %v3766_v35 = vshrl.u32 %v11557_v10, 16  ;;  %v11568_v41 = vcombine.high %v3496_v19, %v3504_v27 }
 0x1f1   : > { %10093 = vmatpush3.bf16.xpose.msra.mxu1 %v5220_v38  ;;  %v3705_v44 = vcombine.low %v3696_v0, %v3704_v26  ;;  %v3746_v25 = vrot.slane %v3739_v14, %v10774_v30  ;;  %v3765_v59 = vpack.i.b16 %v11563_v55, %v11557_v10  ;;  %v3767_v6 = vshrl.u32 %v11563_v55, 16 }
 0x1f2   : > { %v3783_v9 = vpack.i.b16 %v3655_v22, %v3605_v29  ;;  %10094 = vmatprep.subr.bf16.mxu1 %v14569_v37  ;;  %v3785_v53 = vshrl.u32 %v3655_v22, 16  ;;  %v3747_v54 = vcombine.low %v3730_v47, %v3738_v45  ;;  %v11576_v2 = vcombine.high %v11498_v33, %v3554_v24 }
 0x1f3   : > { %v11578_v7 = vpack.i.b16 %v3767_v6, %v3766_v35  ;;  %v3778_v19 = vshrl.u32 %v11568_v41, 16  ;;  %v11586_v43 = vcombine.high %v3596_v31, %v3604_v1  ;;  %v11588_v5 = vcombine.high %v3646_v51, %v3654_v3 }
 0x1f4   : > { %v5167_v27 = vsel %vm5156_vm9, %v3783_v9, 0  ;;  %v3786_v63 = vpack.i.b16 %v3785_v53, %v3784_v20  ;;  %v3754_v56 = vrot.slane %v3747_v54, %v10774_v30  ;;  %v3777_v61 = vpack.i.b16 %v11576_v2, %v11568_v41 }
 0x1f5   : > { %v3779_v17 = vshrl.u32 %v11576_v2, 16  ;;  %v3796_v60 = vshrl.u32 %v3705_v44, 16  ;;  %v11591_v46 = vcombine.high %v3696_v0, %v3704_v26  ;;  %v3789_v40 = vpack.i.b16 %v11588_v5, %v11586_v43 }
 0x1f6   : > { %v5223_v33 = vsel %vm5156_vm9, %v3786_v63, 0  ;;  %v3755_v24 = vcombine.low %v3746_v25, %v3754_v56  ;;  %v3790_v18 = vshrl.u32 %v11586_v43, 16  ;;  %v3791_v39 = vshrl.u32 %v11588_v5, 16 }
 0x1f7   : > { %10083 = vmatpush3.bf16.xpose.msra.mxu0 %v5167_v27  ;;  %v11593_v12 = vpack.i.b16 %v3779_v17, %v3778_v19  ;;  %v11600_v62 = vcombine.high %v3746_v25, %v3754_v56  ;;  %v3802_v29 = vshrl.u32 %v11591_v46, 16  ;;  %v10583_v20 = vmov 1966171168  }
 0x1f8   : > { %10084 = vmatprep.subr.bf16.mxu0 %v14569_v37  ;;  %v3795_v31 = vpack.i.b16 %v3755_v24, %v3705_v44  ;;  %v3797_v1 = vshrl.u32 %v3755_v24, 16  ;;  %v11603_v57 = vpack.i.b16 %v3791_v39, %v3790_v18  ;;  %v1466_v21 = vunpack.c.l.s4 %v10583_v20 }
 0x1f9   : > { %10095 = vmatpush3.bf16.xpose.msra.mxu1 %v5223_v33  ;;  %v3801_v58 = vpack.i.b16 %v11600_v62, %v11591_v46  ;;  %v3803_v48 = vshrl.u32 %v11600_v62, 16  ;;  %v5276_v10 = vsel %vm5156_vm9, %v3777_v61, 0  ;;  %v5332_v55 = vsel %vm5156_vm9, %v11593_v12, 0 }
 0x1fa   : > { %10096 = vmatprep.subr.bf16.mxu1 %v14569_v37  ;;  %v3798_v42 = vpack.i.b16 %v3797_v1, %v3796_v60  ;;  %v5170_v49 = vsel %vm5156_vm9, %v3795_v31, 0  ;;  %v1467_v28 = vunpack.c.0.s8 %v1466_v21  ;;  %v5335_v2 = vsel %vm5156_vm9, %v11603_v57, 0 }
 0x1fb   : > { %v11610_v15 = vpack.i.b16 %v3803_v48, %v3802_v29  ;;  %v5282_v43 = vsel %vm5156_vm9, %v3801_v58, 0 }
 0x1fc   : > { %v5226_v51 = vsel %vm5156_vm9, %v3798_v42, 0  ;;  %v11616_v16 = vsub.s32 %v1467_v28, %v14614_v4 }
 0x1fd   : > { %v5338_v5 = vsel %vm5156_vm9, %v11610_v15, 0 }
 0x1fe   : > { %14615 = vst [vmem:[#allocation8_spill] sm:$0xff] %v11616_v16 }
 0x1ff   : > { %10085 = vmatpush3.bf16.xpose.msra.mxu0 %v5170_v49 }
 0x200   : > { %10102 = vmatprep.subr.bf16.mxu0 %v14569_v37 }
 0x201   : > { %10097 = vmatpush3.bf16.xpose.msra.mxu1 %v5226_v51 }
 0x202   : > { %10114 = vmatprep.subr.bf16.mxu1 %v14569_v37 }
 0x214   : > { %v10077_v32 = vpop.f32.mrb[12].mxu1 }
 0x215   : > { %v1513_v36 = vcombine.high %v10077_v32, %v10077_v32  ;;  %v1520_v50 = vrot.slane %v10077_v32, %v11616_v16  ;;  %v1453_v0 = vpop.f32.mrb[13].mxu1 }
 0x216   : > { %v1464_v8 = vcombine.high %v1453_v0, %v1453_v0  ;;  %v1471_v23 = vrot.slane %v1453_v0, %v11616_v16 }
 0x217   : > { %v1527_v11 = vrot.slane %v1513_v36, %v11616_v16  ;;  %v1528_v38 = vcombine.high %v1520_v50, %v1520_v50  ;;  %v1536_v47 = vrot.slane %v1520_v50, %v11616_v16 }
 0x218   : > { %v1478_v3 = vrot.slane %v1464_v8, %v11616_v16  ;;  %v1479_v34 = vcombine.high %v1471_v23, %v1471_v23  ;;  %v1487_v45 = vrot.slane %v1471_v23, %v11616_v16  ;;  %v10053_v8 = vpop.f32.mrb[4].mxu0  ;;  %v9692_v23 = vld [vmem:[%s14543_s6] ss:$0 sm:$0xff] }
 0x219   : > { %v1529_v26 = vcombine.high %v1527_v11, %v1527_v11  ;;  %v1550_v14 = vrot.slane %v1528_v38, %v11616_v16  ;;  %v1543_v44 = vrot.slane %v1527_v11, %v11616_v16  ;;  %v761_v11 = vadd.f32 %v10053_v8, %v9692_v23  ;;  %v752_v38 = vpop.f32.mrb[5].mxu0 }
 0x21a   : > { %v1480_v22 = vcombine.high %v1478_v3, %v1478_v3  ;;  %v1501_v35 = vrot.slane %v1479_v34, %v11616_v16  ;;  %v1494_v53 = vrot.slane %v1478_v3, %v11616_v16  ;;  %v11652_v3 = vadd.f32 %v9692_v23, %v752_v38  ;;  %v10054_v34 = vpop.f32.mrb[6].mxu0 }
 0x21b   : > { %v1557_v25 = vrot.slane %v1529_v26, %v11616_v16  ;;  %v1611_v6 = vcombine.low %v1536_v47, %v1550_v14  ;;  %v9703_v9 = vcombine.high %v1536_v47, %v1550_v14  ;;  %v7979_v26 = vrot.slane %v761_v11, 7  ;;  %v755_v14 = vpop.f32.mrb[7].mxu0 }
 0x21c   : > { %v1508_v54 = vrot.slane %v1480_v22, %v11616_v16  ;;  %v1562_v19 = vcombine.low %v1487_v45, %v1501_v35  ;;  %v9701_v27 = vcombine.high %v1487_v45, %v1501_v35  ;;  %v764_v47 = vadd.f32 %v10054_v34, %v9692_v23 }
 0x21d   : > { %v1613_v63 = vcombine.low %v1543_v44, %v1557_v25  ;;  %v9704_v56 = vcombine.high %v1543_v44, %v1557_v25  ;;  %v1621_v17 = vrot.slane %v1611_v6, %v11616_v16  ;;  %v1628_v33 = vrot.slane %v9703_v9, %v11616_v16 }
 0x21e   : > { %v1564_v24 = vcombine.low %v1494_v53, %v1508_v54  ;;  %v9702_v60 = vcombine.high %v1494_v53, %v1508_v54  ;;  %v1572_v18 = vrot.slane %v1562_v19, %v11616_v16  ;;  %v1579_v39 = vrot.slane %v9701_v27, %v11616_v16  ;;  %v10057_v19 = vpop.f32.mrb[8].mxu0 }
 0x21f   : > { %v1635_v31 = vrot.slane %v1613_v63, %v11616_v16  ;;  %v1642_v1 = vrot.slane %v9704_v56, %v11616_v16  ;;  %v1643_v29 = vcombine.low %v1621_v17, %v1628_v33  ;;  %v14568_v22 = vrot.slane %v11652_v3, 7  ;;  %v768_v63 = vpop.f32.mrb[9].mxu0 }
 0x220   : > { %v1586_v42 = vrot.slane %v1564_v24, %v11616_v16  ;;  %v1593_v48 = vrot.slane %v9702_v60, %v11616_v16  ;;  %v1594_v49 = vcombine.low %v1572_v18, %v1579_v39  ;;  %v756_v45 = vadd.f32 %v9692_v23, %v755_v14  ;;  %v10058_v17 = vpop.f32.mrb[10].mxu0 }
 0x221   : > { %v1644_v51 = vcombine.low %v1635_v31, %v1642_v1  ;;  %v1651_v21 = vrot.slane %v1643_v29, %v11616_v16  ;;  %v11655_v35 = vpack.c.bf16 %v764_v47, %v761_v11  ;;  %v7981_v44 = vrot.slane %v764_v47, 7  ;;  %v771_v60 = vpop.f32.mrb[11].mxu0 }
 0x222   : > { %v1595_v20 = vcombine.low %v1586_v42, %v1593_v48  ;;  %v1602_v4 = vrot.slane %v1594_v49, %v11616_v16  ;;  %v11658_v25 = vpack.c.bf16 %v756_v45, %v11652_v3  ;;  %v7977_v6 = vrot.slane %v756_v45, 7 }
 0x223   : > { %v1658_v28 = vrot.slane %v1644_v51, %v11616_v16  ;;  %v11661_v9 = vsel %vm7975_vm11, %v7979_v26, %v7981_v44  ;;  %v777_v27 = vadd.f32 %v10057_v19, %v9692_v23  ;;  %v769_v56 = vadd.f32 %v9692_v23, %v768_v63 }
 0x224   : > { %v1609_v32 = vrot.slane %v1595_v20, %v11616_v16  ;;  %v11666_v53 = vsel %vm7975_vm11, %v14568_v22, %v7977_v6  ;;  %v11669_v54 = vsel %vm7975_vm11, %v7977_v6, %v7979_v26  ;;  %v11679_v24 = vadd.f32 %v10058_v17, %v9692_v23 }
 0x225   : > { %v1659_v36 = vcombine.low %v1651_v21, %v1658_v28  ;;  %v7987_v33 = vrot.slane %v777_v27, 7  ;;  %v7983_v18 = vrot.slane %v769_v56, 7  ;;  %v772_v39 = vadd.f32 %v9692_v23, %v771_v60 }
 0x226   : > { %v1610_v50 = vcombine.low %v1602_v4, %v1609_v32  ;;  %v11682_v31 = vpack.c.bf16 %v11679_v24, %v777_v27  ;;  %v14567_v1 = vrot.slane %v11679_v24, 7  ;;  %v3837_v41 = vshrl.u32 %v11658_v25, 16 }
 0x227   : > { %v11686_v29 = vsel %vm7975_vm11, %v7981_v44, %v7983_v18  ;;  %v11688_v42 = vpack.c.bf16 %v772_v39, %v769_v56  ;;  %v7985_v48 = vrot.slane %v772_v39, 7 }
 0x228   : > { %v1662_v0 = vpack.c.bf16 %v1659_v36, %v1610_v50  ;;  %v11697_v49 = vsel %vm7975_vm11, %v7987_v33, %v14567_v1  ;;  %v3885_v46 = vshrl.u32 %v11682_v31, 16 }
 0x229   : > { %v11700_v51 = vsel %vm7975_vm11, %v7983_v18, %v7985_v48  ;;  %v11703_v20 = vsel %vm7975_vm11, %v7985_v48, %v7987_v33 }
 0x22a   : > { %4892 = vrot.lane.b32.xlu1 %v1662_v0, %s10582_s30  ;;  %4890 = vrot.lane.b32.xlu0 %v1662_v0, %s10580_s16  ;;  %v4900_v32 = vshrl.u32 %v1662_v0, 16 }
 0x22e   : > { %4894 = vrot.lane.b32.xlu0 %v1662_v0, %s10581_s24  ;;  %3817 = vrot.lane.b32.xlu1 %v11658_v25, %s10582_s30 }
 0x232   : > { %3809 = vrot.lane.b32.xlu0 %v11658_v25, %s10580_s16  ;;  %3825 = vrot.lane.b32.xlu1 %v11658_v25, %s10581_s24 }
 0x236   : > { %3811 = vrot.lane.b32.xlu0 %v11655_v35, %s10580_s16  ;;  %3819 = vrot.lane.b32.xlu1 %v11655_v35, %s10582_s30 }
 0x23a   : > { %3827 = vrot.lane.b32.xlu0 %v11655_v35, %s10581_s24  ;;  %3813 = vrot.lane.b32.xlu1 %v11688_v42, %s10580_s16 }
 0x23e   : > { %3821 = vrot.lane.b32.xlu0 %v11688_v42, %s10582_s30  ;;  %3829 = vrot.lane.b32.xlu1 %v11688_v42, %s10581_s24 }
 0x242   : > { %3815 = vrot.lane.b32.xlu0 %v11682_v31, %s10580_s16  ;;  %3823 = vrot.lane.b32.xlu1 %v11682_v31, %s10582_s30 }
 0x246   : > { %3831 = vrot.lane.b32.xlu0 %v11682_v31, %s10581_s24 }
 0x29c   : > { %v4891_v21 = vpop.permute.xlu0 %4890  ;;  %v4893_v36 = vpop.permute.xlu1 %4892 }
 0x29d   : > { %v4898_v28 = vpack.i.b16 %v4891_v21, %v1662_v0  ;;  %v4901_v4 = vshrl.u32 %v4891_v21, 16  ;;  %v4908_v38 = vshrl.u32 %v4893_v36, 16 }
 0x29f   : > { %v4902_v50 = vpack.i.b16 %v4901_v4, %v4900_v32  ;;  %v4912_v23 = vcombine.high %v4898_v28, %v11193_v52  ;;  %v4919_v26 = vrot.slane %v4898_v28, %v14613_v13 }
 0x2a0   : > { %v4895_v8 = vpop.permute.xlu0 %4894  ;;  %v3818_v61 = vpop.permute.xlu1 %3817 }
 0x2a1   : > { %v4906_v11 = vpack.i.b16 %v4895_v8, %v4893_v36  ;;  %v4909_v34 = vshrl.u32 %v4895_v8, 16  ;;  %v4978_v45 = vcombine.high %v4902_v50, %v11193_v52  ;;  %v4926_v6 = vrot.slane %v4912_v23, %v14613_v13 }
 0x2a2   : > { %v4985_v63 = vrot.slane %v4902_v50, %v14613_v13 }
 0x2a3   : > { %v4927_v47 = vcombine.high %v4906_v11, %v11193_v52  ;;  %v4934_v14 = vrot.slane %v4906_v11, %v14613_v13  ;;  %v4910_v44 = vpack.i.b16 %v4909_v34, %v4908_v38  ;;  %v4992_v48 = vrot.slane %v4978_v45, %v14613_v13 }
 0x2a4   : > { %v3810_v12 = vpop.permute.xlu0 %3809 }
 0x2a5   : > { %v4941_v0 = vrot.slane %v4927_v47, %v14613_v13  ;;  %v4942_v19 = vcombine.low %v4919_v26, %v4934_v14  ;;  %v4943_v27 = vcombine.high %v4919_v26, %v4934_v14  ;;  %v4993_v56 = vcombine.high %v4910_v44, %v11193_v52 }
 0x2a6   : > { %v5000_v17 = vrot.slane %v4910_v44, %v14613_v13 }
 0x2a7   : > { %v4950_v33 = vrot.slane %v4942_v19, %v10774_v30  ;;  %v4957_v60 = vrot.slane %v4943_v27, %v10774_v30  ;;  %v4958_v18 = vcombine.low %v4926_v6, %v4941_v0  ;;  %v4959_v39 = vcombine.high %v4926_v6, %v4941_v0 }
 0x2a8   : > { %v5007_v21 = vrot.slane %v4993_v56, %v14613_v13  ;;  %v5008_v28 = vcombine.low %v4985_v63, %v5000_v17  ;;  %v5009_v4 = vcombine.high %v4985_v63, %v5000_v17 }
 0x2a9   : > { %v4966_v32 = vrot.slane %v4958_v18, %v10774_v30  ;;  %v4973_v36 = vrot.slane %v4959_v39, %v10774_v30  ;;  %v5044_v50 = vcombine.low %v4950_v33, %v4957_v60  ;;  %v9753_v8 = vcombine.high %v4950_v33, %v4957_v60 }
 0x2aa   : > { %v5016_v23 = vrot.slane %v5008_v28, %v10774_v30  ;;  %v5023_v11 = vrot.slane %v5009_v4, %v10774_v30  ;;  %v5024_v38 = vcombine.low %v4992_v48, %v5007_v21  ;;  %v5025_v34 = vcombine.high %v4992_v48, %v5007_v21 }
 0x2ab   : > { %v5051_v26 = vrot.slane %v5044_v50, %v14613_v13  ;;  %v5059_v47 = vrot.slane %v9753_v8, %v14613_v13  ;;  %v5060_v14 = vcombine.low %v4966_v32, %v4973_v36  ;;  %v9754_v45 = vcombine.high %v4966_v32, %v4973_v36 }
 0x2ac   : > { %v5032_v44 = vrot.slane %v5024_v38, %v10774_v30  ;;  %v5039_v6 = vrot.slane %v5025_v34, %v10774_v30  ;;  %v5094_v0 = vcombine.low %v5016_v23, %v5023_v11  ;;  %v9755_v19 = vcombine.high %v5016_v23, %v5023_v11 }
 0x2ad   : > { %v5067_v27 = vrot.slane %v5060_v14, %v14613_v13  ;;  %v5075_v63 = vrot.slane %v9754_v45, %v14613_v13  ;;  %v5076_v56 = vcombine.low %v5051_v26, %v5059_v47  ;;  %v5273_v47 = vsel %vm5156_vm9, %v3765_v59, 0 }
 0x2ae   : > { %v5101_v17 = vrot.slane %v5094_v0, %v14613_v13  ;;  %v5109_v33 = vrot.slane %v9755_v19, %v14613_v13  ;;  %v5110_v60 = vcombine.low %v5032_v44, %v5039_v6  ;;  %v9756_v18 = vcombine.high %v5032_v44, %v5039_v6 }
 0x2af   : > { %v5084_v39 = vcombine.low %v5067_v27, %v5075_v63  ;;  %v5083_v32 = vrot.slane %v5076_v56, %v10774_v30  ;;  %v5329_v45 = vsel %vm5156_vm9, %v11578_v7, 0  ;;  %v5279_v7 = vsel %vm5156_vm9, %v3789_v40, 0 }
 0x2b0   : > { %v5117_v48 = vrot.slane %v5110_v60, %v14613_v13  ;;  %v5125_v21 = vrot.slane %v9756_v18, %v14613_v13  ;;  %v5126_v28 = vcombine.low %v5101_v17, %v5109_v33  ;;  %v3835_v0 = vpack.i.b16 %v3810_v12, %v11658_v25  ;;  %v3826_v17 = vpop.permute.xlu1 %3825  ;;  %v3812_v18 = vpop.permute.xlu0 %3811 }
 0x2b1   : > { %v5091_v4 = vrot.slane %v5084_v39, %v10774_v30  ;;  %v3838_v19 = vshrl.u32 %v3810_v12, 16  ;;  %v3853_v63 = vshrl.u32 %v11655_v35, 16  ;;  %v3845_v25 = vshrl.u32 %v3818_v61, 16 }
 0x2b2   : > { %v5134_v36 = vcombine.low %v5117_v48, %v5125_v21  ;;  %v5133_v50 = vrot.slane %v5126_v28, %v10774_v30  ;;  %v3897_v27 = vcombine.high %v3835_v0, %v11193_v52  ;;  %v3869_v33 = vshrl.u32 %v11688_v42, 16 }
 0x2b3   : > { %v5092_v8 = vcombine.low %v5083_v32, %v5091_v4  ;;  %v5093_v44 = vcombine.high %v5083_v32, %v5091_v4  ;;  %v3839_v57 = vpack.i.b16 %v3838_v19, %v3837_v41  ;;  %v3904_v58 = vrot.slane %v3835_v0, %v14613_v13 }
 0x2b4   : > { %v5141_v23 = vrot.slane %v5134_v36, %v10774_v30  ;;  %v3843_v60 = vpack.i.b16 %v3826_v17, %v3818_v61  ;;  %v3911_v39 = vrot.slane %v3897_v27, %v14613_v13  ;;  %v3846_v48 = vshrl.u32 %v3826_v17, 16 }
 0x2b5   : > { %v5147_v34 = vshrl.u32 %v5092_v8, 16  ;;  %v5153_v40 = vshrl.u32 %v5093_v44, 16  ;;  %v3963_v15 = vcombine.high %v3839_v57, %v11193_v52  ;;  %v3851_v21 = vpack.i.b16 %v3812_v18, %v11655_v35 }
 0x2b6   : > { %v5142_v11 = vcombine.low %v5133_v50, %v5141_v23  ;;  %v5143_v59 = vcombine.high %v5133_v50, %v5141_v23  ;;  %v3854_v28 = vshrl.u32 %v3812_v18, 16  ;;  %v3970_v4 = vrot.slane %v3839_v57, %v14613_v13 }
 0x2b7   : > { %v3977_v32 = vrot.slane %v3963_v15, %v14613_v13  ;;  %v3912_v36 = vcombine.high %v3843_v60, %v11193_v52  ;;  %v3919_v50 = vrot.slane %v3843_v60, %v14613_v13 }
 0x2b8   : > { %v11749_v38 = vpack.i.b16 %v5142_v11, %v5092_v8  ;;  %v5148_v26 = vshrl.u32 %v5142_v11, 16  ;;  %v5154_v6 = vshrl.u32 %v5143_v59, 16  ;;  %v11795_v56 = vpack.i.b16 %v5143_v59, %v5093_v44 }
 0x2b9   : > { %v3847_v8 = vpack.i.b16 %v3846_v48, %v3845_v25  ;;  %v3855_v23 = vpack.i.b16 %v3854_v28, %v3853_v63  ;;  %v4029_v11 = vcombine.high %v3851_v21, %v11193_v52  ;;  %v3926_v35 = vrot.slane %v3912_v36, %v14613_v13 }
 0x2ba   : > { %10087 = vmatmul.mubr.msk.bf16.vlgmr.msra.gmra.mrb[12].mxu0 %vm5156_vm9, %v11749_v38  ;;  %v11757_v14 = vpack.i.b16 %v5148_v26, %v5147_v34  ;;  %v11799_v62 = vpack.i.b16 %v5154_v6, %v5153_v40  ;;  %v11811_v34 = vrot.slane %v3851_v21, %v14613_v13  ;;  %v3820_v26 = vpop.permute.xlu1 %3819  ;;  %v3828_v6 = vpop.permute.xlu0 %3827 }
 0x2bb   : > { %10103 = vmatpush3.bf16.xpose.msra.mxu0 %v5273_v47  ;;  %10110 = vmatprep.mubr.msk.bf16.mxu0 %vm10584_vm10, %v14569_v37  ;;  %v3927_v47 = vcombine.low %v3904_v58, %v3919_v50  ;;  %v3985_v59 = vrot.slane %v3847_v8, %v14613_v13  ;;  %v4095_v44 = vcombine.high %v3855_v23, %v11193_v52 }
 0x2bc   : > { %10099 = vmatmul.mubr.msk.bf16.vlgmr.msra.gmra.mrb[16].mxu1 %vm5156_vm9, %v11757_v14  ;;  %10104 = vmatprep.subr.bf16.mxu0 %v14569_v37  ;;  %v3943_v61 = vcombine.low %v3911_v39, %v3926_v35  ;;  %v3944_v12 = vcombine.high %v3911_v39, %v3926_v35 }
 0x2bd   : > { %10115 = vmatpush3.bf16.xpose.msra.mxu1 %v5329_v45  ;;  %10122 = vmatprep.mubr.msk.bf16.mxu1 %vm10584_vm10, %v14569_v37  ;;  %v3928_v45 = vcombine.high %v3904_v58, %v3919_v50  ;;  %v3935_v41 = vrot.slane %v3927_v47, %v10774_v30  ;;  %v3993_v19 = vcombine.low %v3970_v4, %v3985_v59 }
 0x2be   : > { %10116 = vmatprep.subr.bf16.mxu1 %v14569_v37  ;;  %v3814_v40 = vpop.permute.xlu1 %3813  ;;  %v11827_v57 = vrot.slane %v3943_v61, %v10774_v30  ;;  %v11830_v27 = vrot.slane %v3944_v12, %v10774_v30  ;;  %v4109_v50 = vrot.slane %v4095_v44, %v14613_v13  ;;  %v3822_v35 = vpop.permute.xlu0 %3821 }
 0x2bf   : > { %v11835_v17 = vrot.slane %v3993_v19, %v10774_v30 }
 0x2c0   : > { %v4441_v48 = vcombine.low %v11827_v57, %v11830_v27  ;;  %v9738_v21 = vcombine.high %v11827_v57, %v11830_v27 }
 0x2c2   : > { %v3830_v47 = vpop.permute.xlu1 %3829 }
 0x2c3   : > { %10105 = vmatpush3.bf16.xpose.msra.mxu0 %v5276_v10  ;;  %v3861_v10 = vshrl.u32 %v3820_v26, 16  ;;  %v3878_v19 = vshrl.u32 %v3830_v47, 16 }
 0x2c4   : > { %10106 = vmatprep.subr.bf16.mxu0 %v14569_v37 }
 0x2c5   : > { %10117 = vmatpush3.bf16.xpose.msra.mxu1 %v5332_v55  ;;  %v3978_v55 = vcombine.high %v3847_v8, %v11193_v52  ;;  %v3859_v8 = vpack.i.b16 %v3828_v6, %v3820_v26 }
 0x2c6   : > { %10118 = vmatprep.subr.bf16.mxu1 %v14569_v37 }
 0x2c7   : > { %v3992_v0 = vrot.slane %v3978_v55, %v14613_v13  ;;  %v4044_v44 = vcombine.high %v3859_v8, %v11193_v52  ;;  %v4051_v26 = vrot.slane %v3859_v8, %v14613_v13 }
 0x2c9   : > { %v4009_v15 = vcombine.low %v3977_v32, %v3992_v0  ;;  %v4010_v60 = vcombine.high %v3977_v32, %v3992_v0  ;;  %v3875_v0 = vpack.i.b16 %v3830_v47, %v3822_v35 }
 0x2cb   : > { %10107 = vmatpush3.bf16.xpose.msra.mxu0 %v5279_v7  ;;  %v11818_v7 = vrot.slane %v4029_v11, %v14613_v13  ;;  %v11855_v28 = vrot.slane %v4009_v15, %v10774_v30  ;;  %v3867_v11 = vpack.i.b16 %v3814_v40, %v11688_v42 }
 0x2cc   : > { %10108 = vmatprep.subr.bf16.mxu0 %v14569_v37 }
 0x2cd   : > { %10119 = vmatpush3.bf16.xpose.msra.mxu1 %v5335_v2  ;;  %v3942_v2 = vrot.slane %v3928_v45, %v10774_v30  ;;  %v4161_v61 = vcombine.high %v3867_v11, %v11193_v52 }
 0x2ce   : > { %10120 = vmatprep.subr.bf16.mxu1 %v14569_v37 }
 0x2cf   : > { %v4425_v63 = vcombine.low %v3935_v41, %v3942_v2  ;;  %v9737_v25 = vcombine.high %v3935_v41, %v3942_v2  ;;  %v3877_v41 = vshrl.u32 %v3822_v35, 16  ;;  %v4175_v15 = vrot.slane %v4161_v61, %v14613_v13 }
 0x2d1   : > { %v11841_v18 = vrot.slane %v4425_v63, %v14613_v13  ;;  %v11844_v39 = vrot.slane %v9737_v25, %v14613_v13  ;;  %v4059_v63 = vcombine.low %v11811_v34, %v4051_v26 }
 0x2d3   : > { %10109 = vmatpush3.bf16.xpose.msra.mxu0 %v5282_v43  ;;  %v3994_v43 = vcombine.high %v3970_v4, %v3985_v59  ;;  %v11858_v4 = vrot.slane %v4010_v60, %v10774_v30  ;;  %v3870_v59 = vshrl.u32 %v3814_v40, 16  ;;  %v4060_v40 = vcombine.high %v11811_v34, %v4051_v26 }
 0x2d4   : > { %10126 = vmatprep.subr.bf16.mxu0 %v14569_v37 }
 0x2d5   : > { %10121 = vmatpush3.bf16.xpose.msra.mxu1 %v5338_v5  ;;  %v4102_v5 = vrot.slane %v3855_v23, %v14613_v13  ;;  %v11838_v58 = vrot.slane %v3994_v43, %v10774_v30  ;;  %v3862_v23 = vshrl.u32 %v3828_v6, 16  ;;  %v4491_v45 = vcombine.low %v11855_v28, %v11858_v4 }
 0x2d6   : > { %10138 = vmatprep.subr.bf16.mxu1 %v14569_v37  ;;  %v3871_v12 = vpack.i.b16 %v3870_v59, %v3869_v33  ;;  %v4168_v6 = vrot.slane %v3867_v11, %v14613_v13  ;;  %v4058_v43 = vrot.slane %v4044_v44, %v14613_v13  ;;  %v4067_v33 = vrot.slane %v4059_v63, %v10774_v30 }
 0x2d7   : > { %v4475_v32 = vcombine.low %v11835_v17, %v11838_v58  ;;  %v9739_v36 = vcombine.high %v11835_v17, %v11838_v58  ;;  %v3863_v2 = vpack.i.b16 %v3862_v23, %v3861_v10  ;;  %v4074_v8 = vrot.slane %v4060_v40, %v10774_v30 }
 0x2d8   : > { %v4227_v60 = vcombine.high %v3871_v12, %v11193_v52  ;;  %v4234_v42 = vrot.slane %v3871_v12, %v14613_v13  ;;  %v4075_v23 = vcombine.low %v11818_v7, %v4058_v43  ;;  %v4076_v11 = vcombine.high %v11818_v7, %v4058_v43 }
 0x2d9   : > { %v4110_v10 = vcombine.high %v3863_v2, %v11193_v52  ;;  %v4117_v25 = vrot.slane %v3863_v2, %v14613_v13  ;;  %v4525_v26 = vcombine.low %v4067_v33, %v4074_v8  ;;  %v9741_v61 = vcombine.high %v4067_v33, %v4074_v8 }
 0x2da   : > { %10111 = vmatmul.mubr.msk.bf16.vlgmr.msra.gmra.mrb[16].mxu0 %vm5156_vm9, %v11795_v56  ;;  %v4241_v59 = vrot.slane %v4227_v60, %v14613_v13  ;;  %v11893_v2 = vrot.slane %v4075_v23, %v10774_v30  ;;  %v11896_v44 = vrot.slane %v4076_v11, %v10774_v30  ;;  %v3824_v60 = vpop.permute.xlu1 %3823  ;;  %v3816_v11 = vpop.permute.xlu0 %3815  ;;  %v4490_v57 = vrot.slane %v9739_v36, %v14613_v13 }
 0x2db   : > { %10134 = vmatprep.mubr.msk.bf16.mxu0 %vm10584_vm10, %v14569_v37  ;;  %v4124_v34 = vrot.slane %v4110_v10, %v14613_v13  ;;  %v4125_v35 = vcombine.low %v4102_v5, %v4117_v25  ;;  %v4126_v47 = vcombine.high %v4102_v5, %v4117_v25  ;;  %v11905_v5 = vrot.slane %v4525_v26, %v14613_v13 }
 0x2dc   : > { %10123 = vmatmul.mubr.msk.bf16.vlgmr.msra.gmra.mrb[20].mxu1 %vm5156_vm9, %v11799_v62  ;;  %v11908_v40 = vrot.slane %v9741_v61, %v14613_v13  ;;  %v3883_v26 = vpack.i.b16 %v3816_v11, %v11682_v31  ;;  %v3893_v1 = vshrl.u32 %v3824_v60, 16  ;;  %v4498_v17 = vrot.slane %v4491_v45, %v14613_v13 }
 0x2dd   : > { %10146 = vmatprep.mubr.msk.bf16.mxu1 %vm10584_vm10, %v14569_v37  ;;  %v11899_v12 = vrot.slane %v4125_v35, %v10774_v30  ;;  %v11902_v63 = vrot.slane %v4126_v47, %v10774_v30  ;;  %v4141_v7 = vcombine.low %v4109_v50, %v4124_v34  ;;  %v4142_v43 = vcombine.high %v4109_v50, %v4124_v34 }
 0x2de   : > { %v3879_v34 = vpack.i.b16 %v3878_v19, %v3877_v41  ;;  %v4176_v35 = vcombine.high %v3875_v0, %v11193_v52  ;;  %v4183_v47 = vrot.slane %v3875_v0, %v14613_v13  ;;  %v4293_v50 = vcombine.high %v3883_v26, %v11193_v52 }
 0x2df   : > { %v11915_v33 = vrot.slane %v4141_v7, %v10774_v30  ;;  %v11918_v8 = vrot.slane %v4142_v43, %v10774_v30  ;;  %v3886_v43 = vshrl.u32 %v3816_v11, 16  ;;  %v4300_v61 = vrot.slane %v3883_v26, %v14613_v13 }
 0x2e0   : > { %v4190_v22 = vrot.slane %v4176_v35, %v14613_v13  ;;  %v4191_v37 = vcombine.low %v4168_v6, %v4183_v47  ;;  %v4192_v23 = vcombine.high %v4168_v6, %v4183_v47  ;;  %v4242_v41 = vcombine.high %v3879_v34, %v11193_v52 }
 0x2e1   : > { %v4249_v19 = vrot.slane %v3879_v34, %v14613_v13  ;;  %v3887_v0 = vpack.i.b16 %v3886_v43, %v3885_v46  ;;  %v4307_v55 = vrot.slane %v4293_v50, %v14613_v13  ;;  %v3832_v43 = vpop.permute.xlu0 %3831 }
 0x2e2   : > { %v4199_v25 = vrot.slane %v4191_v37, %v10774_v30  ;;  %v4206_v11 = vrot.slane %v4192_v23, %v10774_v30  ;;  %v4207_v7 = vcombine.low %v4175_v15, %v4190_v22  ;;  %v4208_v10 = vcombine.high %v4175_v15, %v4190_v22 }
 0x2e3   : > { %v4256_v35 = vrot.slane %v4242_v41, %v14613_v13  ;;  %v4257_v6 = vcombine.low %v4234_v42, %v4249_v19  ;;  %v4258_v47 = vcombine.high %v4234_v42, %v4249_v19 }
 0x2e4   : > { %v11943_v34 = vrot.slane %v4207_v7, %v10774_v30  ;;  %v11946_v31 = vrot.slane %v4208_v10, %v10774_v30  ;;  %v4625_v46 = vcombine.low %v4199_v25, %v4206_v11  ;;  %v9745_v26 = vcombine.high %v4199_v25, %v4206_v11 }
 0x2e5   : > { %v11949_v37 = vrot.slane %v4257_v6, %v10774_v30  ;;  %v11952_v23 = vrot.slane %v4258_v47, %v10774_v30  ;;  %v4273_v22 = vcombine.low %v4241_v59, %v4256_v35  ;;  %v4274_v15 = vcombine.high %v4241_v59, %v4256_v35 }
 0x2e6   : > { %v11955_v42 = vrot.slane %v4625_v46, %v14613_v13  ;;  %v11958_v50 = vrot.slane %v9745_v26, %v14613_v13  ;;  %v4641_v10 = vcombine.low %v11943_v34, %v11946_v31  ;;  %v9746_v25 = vcombine.high %v11943_v34, %v11946_v31 }
 0x2e7   : > { %v11965_v7 = vrot.slane %v4273_v22, %v10774_v30  ;;  %v11968_v41 = vrot.slane %v4274_v15, %v10774_v30  ;;  %v4675_v59 = vcombine.low %v11949_v37, %v11952_v23  ;;  %v4359_v11 = vcombine.high %v3887_v0, %v11193_v52 }
 0x2e8   : > { %v4366_v35 = vrot.slane %v3887_v0, %v14613_v13  ;;  %v3891_v6 = vpack.i.b16 %v3832_v43, %v3824_v60  ;;  %v3894_v47 = vshrl.u32 %v3832_v43, 16  ;;  %v4448_v22 = vrot.slane %v4441_v48, %v14613_v13 }
 0x2e9   : > { %v4456_v15 = vrot.slane %v9738_v21, %v14613_v13  ;;  %v4373_v0 = vrot.slane %v4359_v11, %v14613_v13  ;;  %v4457_v26 = vcombine.low %v11841_v18, %v11844_v39  ;;  %v4482_v48 = vrot.slane %v4475_v32, %v14613_v13 }
 0x2ea   : > { %v3895_v60 = vpack.i.b16 %v3894_v47, %v3893_v1  ;;  %v4308_v43 = vcombine.high %v3891_v6, %v11193_v52  ;;  %v4315_v46 = vrot.slane %v3891_v6, %v14613_v13  ;;  %v14623_v34 = vcombine.high %v11949_v37, %v11952_v23 }
 0x2eb   : > { %v4465_v19 = vcombine.low %v4448_v22, %v4456_v15  ;;  %v12005_v18 = vrot.slane %v4457_v26, %v10774_v30 }
 0x2ec   : > { %v4322_v1 = vrot.slane %v4308_v43, %v14613_v13  ;;  %v4323_v27 = vcombine.low %v4300_v61, %v4315_v46  ;;  %v4324_v21 = vcombine.high %v4300_v61, %v4315_v46  ;;  %v4374_v11 = vcombine.high %v3895_v60, %v11193_v52 }
 0x2ed   : > { %v4381_v6 = vrot.slane %v3895_v60, %v14613_v13  ;;  %v12008_v39 = vrot.slane %v4465_v19, %v10774_v30  ;;  %v4690_v31 = vrot.slane %v14623_v34, %v14613_v13 }
 0x2ee   : > { %v4331_v58 = vrot.slane %v4323_v27, %v10774_v30  ;;  %v4338_v32 = vrot.slane %v4324_v21, %v10774_v30  ;;  %v4339_v36 = vcombine.low %v4307_v55, %v4322_v1  ;;  %v4340_v61 = vcombine.high %v4307_v55, %v4322_v1 }
 0x2ef   : > { %v4388_v47 = vrot.slane %v4374_v11, %v14613_v13  ;;  %v4389_v46 = vcombine.low %v4366_v35, %v4381_v6  ;;  %v4390_v22 = vcombine.high %v4366_v35, %v4381_v6  ;;  %v4473_v26 = vcombine.low %v12005_v18, %v12008_v39 }
 0x2f0   : > { %v4347_v19 = vrot.slane %v4339_v36, %v10774_v30  ;;  %v4354_v15 = vrot.slane %v4340_v61, %v10774_v30  ;;  %v4725_v60 = vcombine.low %v4331_v58, %v4338_v32  ;;  %v9749_v43 = vcombine.high %v4331_v58, %v4338_v32 }
 0x2f1   : > { %v12022_v45 = vrot.slane %v4389_v46, %v10774_v30  ;;  %v12025_v27 = vrot.slane %v4390_v22, %v10774_v30  ;;  %v4405_v55 = vcombine.low %v4373_v0, %v4388_v47  ;;  %v4406_v1 = vcombine.high %v4373_v0, %v4388_v47 }
 0x2f2   : > { %v12028_v21 = vrot.slane %v4725_v60, %v14613_v13  ;;  %v12031_v35 = vrot.slane %v9749_v43, %v14613_v13  ;;  %v4741_v11 = vcombine.low %v4347_v19, %v4354_v15  ;;  %v9750_v6 = vcombine.high %v4347_v19, %v4354_v15 }
 0x2f3   : > { %v12034_v36 = vrot.slane %v4405_v55, %v10774_v30  ;;  %v12037_v58 = vrot.slane %v4406_v1, %v10774_v30  ;;  %v4775_v32 = vcombine.low %v12022_v45, %v12025_v27  ;;  %v9751_v0 = vcombine.high %v12022_v45, %v12025_v27 }
 0x2f4   : > { %v14616_v61 = vcombine.high %v11855_v28, %v11858_v4  ;;  %v4507_v46 = vcombine.low %v4482_v48, %v4490_v57  ;;  %v4829_v22 = vshrl.u32 %v4473_v26, 16  ;;  %v14617_v19 = vcombine.low %v11893_v2, %v11896_v44 }
 0x2f5   : > { %v4791_v60 = vcombine.low %v12034_v36, %v12037_v58  ;;  %v9752_v43 = vcombine.high %v12034_v36, %v12037_v58  ;;  %v14618_v45 = vcombine.high %v11893_v2, %v11896_v44  ;;  %v4557_v28 = vcombine.low %v11905_v5, %v11908_v40 }
 0x2f6   : > { %v4506_v47 = vrot.slane %v14616_v61, %v14613_v13  ;;  %v4548_v15 = vrot.slane %v14617_v19, %v14613_v13  ;;  %v4514_v4 = vrot.slane %v4507_v46, %v10774_v30  ;;  %v14619_v57 = vcombine.low %v11899_v12, %v11902_v63 }
 0x2f7   : > { %v4556_v27 = vrot.slane %v14618_v45, %v14613_v13  ;;  %v14620_v1 = vcombine.high %v11899_v12, %v11902_v63  ;;  %v4564_v58 = vrot.slane %v4557_v28, %v10774_v30  ;;  %v14621_v44 = vcombine.low %v11915_v33, %v11918_v8 }
 0x2f8   : > { %v4515_v48 = vcombine.low %v4498_v17, %v4506_v47  ;;  %v4582_v55 = vrot.slane %v14619_v57, %v14613_v13  ;;  %v14622_v40 = vcombine.high %v11915_v33, %v11918_v8  ;;  %v4648_v12 = vrot.slane %v4641_v10, %v14613_v13 }
 0x2f9   : > { %v4590_v36 = vrot.slane %v14620_v1, %v14613_v13  ;;  %v4565_v2 = vcombine.low %v4548_v15, %v4556_v27  ;;  %v4598_v5 = vrot.slane %v14621_v44, %v14613_v13  ;;  %v4656_v63 = vrot.slane %v9746_v25, %v14613_v13 }
 0x2fa   : > { %v4606_v17 = vrot.slane %v14622_v40, %v14613_v13  ;;  %v4522_v61 = vrot.slane %v4515_v48, %v10774_v30  ;;  %v4657_v33 = vcombine.low %v11955_v42, %v11958_v50  ;;  %v4682_v8 = vrot.slane %v4675_v59, %v14613_v13 }
 0x2fb   : > { %v4607_v47 = vcombine.low %v4582_v55, %v4590_v36  ;;  %v4572_v46 = vrot.slane %v4565_v2, %v10774_v30  ;;  %v4665_v10 = vcombine.low %v4648_v12, %v4656_v63  ;;  %v14624_v42 = vcombine.low %v11965_v7, %v11968_v41 }
 0x2fc   : > { %v4615_v19 = vcombine.low %v4598_v5, %v4606_v17  ;;  %v4523_v15 = vcombine.low %v4514_v4, %v4522_v61  ;;  %v4664_v28 = vrot.slane %v4657_v33, %v10774_v30  ;;  %v14625_v55 = vcombine.high %v11965_v7, %v11968_v41 }
 0x2fd   : > { %v4614_v45 = vrot.slane %v4607_v47, %v10774_v30  ;;  %v4573_v25 = vcombine.low %v4564_v58, %v4572_v46  ;;  %v4698_v50 = vrot.slane %v14624_v42, %v14613_v13  ;;  %v4672_v57 = vrot.slane %v4665_v10, %v10774_v30 }
 0x2fe   : > { %v4622_v27 = vrot.slane %v4615_v19, %v10774_v30  ;;  %v4827_v59 = vpack.i.b16 %v4523_v15, %v4473_v26  ;;  %v4830_v48 = vshrl.u32 %v4523_v15, 16  ;;  %v4706_v37 = vrot.slane %v14625_v55, %v14613_v13 }
 0x2ff   : > { %v4845_v1 = vshrl.u32 %v4573_v25, 16  ;;  %v4707_v36 = vcombine.low %v4682_v8, %v4690_v31  ;;  %v4748_v2 = vrot.slane %v4741_v11, %v14613_v13  ;;  %v4673_v5 = vcombine.low %v4664_v28, %v4672_v57 }
 0x300   : > { %v4623_v23 = vcombine.low %v4614_v45, %v4622_v27  ;;  %10127 = vmatpush3.bf16.msra.mxu0 %v4827_v59  ;;  %v4831_v44 = vpack.i.b16 %v4830_v48, %v4829_v22  ;;  %v4715_v40 = vcombine.low %v4698_v50, %v4706_v37  ;;  %v4756_v17 = vrot.slane %v9750_v6, %v14613_v13 }
 0x301   : > { %v14626_v26 = vmov 0.0   ;;  %v4714_v63 = vrot.slane %v4707_v36, %v10774_v30  ;;  %v4757_v7 = vcombine.low %v12028_v21, %v12031_v35  ;;  %v4861_v19 = vshrl.u32 %v4673_v5, 16 }
 0x302   : > { %10128 = vmatprep.subr.bf16.mxu0 %v14626_v26  ;;  %v4843_v47 = vpack.i.b16 %v4623_v23, %v4573_v25  ;;  %v4846_v12 = vshrl.u32 %v4623_v23, 16  ;;  %10139 = vmatpush3.bf16.msra.mxu1 %v4831_v44  ;;  %v4722_v41 = vrot.slane %v4715_v40, %v10774_v30  ;;  %v4765_v11 = vcombine.low %v4748_v2, %v4756_v17 }
 0x303   : > { %v4782_v22 = vrot.slane %v4775_v32, %v14613_v13  ;;  %10140 = vmatprep.subr.bf16.mxu1 %v14626_v26  ;;  %v4764_v6 = vrot.slane %v4757_v7, %v10774_v30  ;;  %v4790_v8 = vrot.slane %v9751_v0, %v14613_v13  ;;  %v4798_v15 = vrot.slane %v4791_v60, %v14613_v13 }
 0x304   : > { %v4847_v33 = vpack.i.b16 %v4846_v12, %v4845_v1  ;;  %10129 = vmatpush3.bf16.msra.mxu0 %v4843_v47  ;;  %v4723_v10 = vcombine.low %v4714_v63, %v4722_v41  ;;  %v4772_v21 = vrot.slane %v4765_v11, %v10774_v30  ;;  %v4806_v35 = vrot.slane %v9752_v43, %v14613_v13 }
 0x305   : > { %v12127_v34 = vcombine.high %v12005_v18, %v12008_v39  ;;  %10130 = vmatprep.subr.bf16.mxu0 %v14626_v26  ;;  %v4807_v32 = vcombine.low %v4782_v22, %v4790_v8  ;;  %v12130_v31 = vcombine.high %v4514_v4, %v4522_v61  ;;  %v12132_v25 = vcombine.high %v4564_v58, %v4572_v46  ;;  %v5389_v22 = vld [vmem:[%s14547_s10] sm:$0xff] }
 0x306   : > { %v12134_v0 = vcombine.high %v4614_v45, %v4622_v27  ;;  %10141 = vmatpush3.bf16.msra.mxu1 %v4847_v33  ;;  %v4859_v60 = vpack.i.b16 %v4723_v10, %v4673_v5  ;;  %v4862_v42 = vshrl.u32 %v4723_v10, 16  ;;  %v4773_v50 = vcombine.low %v4764_v6, %v4772_v21  ;;  %v5390_v10 = vld [vmem:[%s14547_s10 + $0x8] sm:$0xff] }
 0x307   : > { %v4815_v59 = vcombine.low %v4798_v15, %v4806_v35  ;;  %10142 = vmatprep.subr.bf16.mxu1 %v14626_v26  ;;  %v4814_v43 = vrot.slane %v4807_v32, %v10774_v30  ;;  %v4835_v18 = vpack.i.b16 %v12130_v31, %v12127_v34  ;;  %v12142_v4 = vcombine.high %v4664_v28, %v4672_v57 }
 0x308   : > { %v4851_v39 = vpack.i.b16 %v12134_v0, %v12132_v25  ;;  %10131 = vmatpush3.bf16.msra.mxu0 %v4859_v60  ;;  %v4863_v58 = vpack.i.b16 %v4862_v42, %v4861_v19  ;;  %v4877_v46 = vshrl.u32 %v4773_v50, 16  ;;  %v12145_v45 = vcombine.high %v4714_v63, %v4722_v41 }
 0x309   : > { %v4822_v61 = vrot.slane %v4815_v59, %v10774_v30  ;;  %10132 = vmatprep.subr.bf16.mxu0 %v14626_v26  ;;  %v12148_v27 = vcombine.high %v4764_v6, %v4772_v21  ;;  %v4837_v48 = vshrl.u32 %v12127_v34, 16  ;;  %v4838_v55 = vshrl.u32 %v12130_v31, 16  ;;  %v5391_v59 = vld [vmem:[%s14547_s10 + $0x10] sm:$0xff] }
 0x30a   : > { %v4853_v37 = vshrl.u32 %v12132_v25, 16  ;;  %10143 = vmatpush3.bf16.msra.mxu1 %v4863_v58  ;;  %v4867_v57 = vpack.i.b16 %v12145_v45, %v12142_v4  ;;  %v4854_v1 = vshrl.u32 %v12134_v0, 16  ;;  %v4869_v2 = vshrl.u32 %v12142_v4, 16 }
 0x30b   : > { %v4823_v28 = vcombine.low %v4814_v43, %v4822_v61  ;;  %v12155_v23 = vcombine.high %v4814_v43, %v4822_v61  ;;  %10144 = vmatprep.subr.bf16.mxu1 %v14626_v26  ;;  %v12159_v36 = vpack.i.b16 %v4838_v55, %v4837_v48  ;;  %v4870_v44 = vshrl.u32 %v12145_v45, 16 }
 0x30c   : > { %v4885_v5 = vshrl.u32 %v12148_v27, 16  ;;  %v12166_v12 = vpack.i.b16 %v4854_v1, %v4853_v37  ;;  %v14627_v37 = vld [vmem:[#allocation14_spill] sm:$0xff] }
 0x30d   : > { %v4875_v40 = vpack.i.b16 %v4823_v28, %v4773_v50  ;;  %v4878_v17 = vshrl.u32 %v4823_v28, 16  ;;  %v4883_v47 = vpack.i.b16 %v12155_v23, %v12148_v27  ;;  %v12168_v63 = vpack.i.b16 %v4870_v44, %v4869_v2 }
 0x30e   : > { %v4886_v7 = vshrl.u32 %v12155_v23, 16 }
 0x30f   : > { %10133 = vmatpush3.bf16.msra.mxu0 %v4875_v40  ;;  %v4879_v41 = vpack.i.b16 %v4878_v17, %v4877_v46 }
 0x310   : > { %10150 = vmatprep.subr.bf16.mxu0 %v14626_v26  ;;  %v12172_v19 = vpack.i.b16 %v4886_v7, %v4885_v5 }
 0x311   : > { %10145 = vmatpush3.bf16.msra.mxu1 %v4879_v41 }
 0x312   : > { %10162 = vmatprep.subr.bf16.mxu1 %v14626_v26 }
 0x38d   : > { %v5206_v11 = vpop.f32.mrb[12].mxu0 }
 0x38e   : > { %v5381_v33 = vmul.f32 0.35355338, %v5206_v11  ;;  %v10088_v6 = vpop.f32.mrb[13].mxu0  ;;  %v5392_v11 = vld [vmem:[%s14547_s10 + $0x18] sm:$0xff] }
 0x38f   : > { %v5209_v8 = vpop.f32.mrb[14].mxu0  ;;  %v5262_v15 = vpop.f32.mrb[16].mxu1  ;;  %v5393_v6 = vld [vmem:[%s14547_s10 + $0x20] sm:$0xff] }
 0x390   : > { %v5382_v21 = vmul.f32 0.35355338, %v5209_v8  ;;  %v5383_v35 = vmul.f32 0.35355338, %v5262_v15  ;;  %v10089_v32 = vpop.f32.mrb[15].mxu0  ;;  %v10100_v60 = vpop.f32.mrb[17].mxu1  ;;  %v12181_v42 = vadd.f32 %v5389_v22, %v5381_v33 }
 0x391   : > { %v5265_v50 = vpop.f32.mrb[18].mxu1 }
 0x392   : > { %v10101_v43 = vpop.f32.mrb[19].mxu1  ;;  %v5405_v58 = vsel %vm1380_vm1, %v12181_v42, -inf  ;;  %v5398_v61 = vadd.f32 %v5390_v10, %v5382_v21  ;;  %v5399_v48 = vadd.f32 %v5391_v59, %v5383_v35  ;;  %v5384_v41 = vmul.f32 0.35355338, %v5265_v50  ;;  %v5395_v21 = vld [vmem:[%s14547_s10 + $0x30] sm:$0xff]  ;;  %v14628_v50 = vld [vmem:[#allocation13_spill] sm:$0xff] }
 0x393   : > { %5406 = vmax.xlane.f32.xlu1 %v5405_v58  ;;  %v14629_v59 = vld [vmem:[#allocation16_spill] sm:$0xff]  ;;  %v14630_v58 = vld [vmem:[#allocation15_spill] sm:$0xff] }
 0x394   : > { %v5408_v46 = vsel %vm1380_vm1, %v5398_v61, -inf  ;;  %v5411_v55 = vsel %vm1380_vm1, %v5399_v48, -inf  ;;  %v5400_v22 = vadd.f32 %v5392_v11, %v5384_v41 }
 0x395   : > { %5409 = vmax.xlane.f32.xlu0 %v5408_v46  ;;  %v5394_v46 = vld [vmem:[%s14547_s10 + $0x28] sm:$0xff] }
 0x396   : > { %v5414_v8 = vsel %vm1380_vm1, %v5400_v22, -inf }
 0x399   : > { %5412 = vmax.xlane.f32.xlu0 %v5411_v55 }
 0x3a4   : > { %1675 = vrot.lane.b32.xlu1 %v14627_v37, %s10582_s30 }
 0x3ad   : > { %v5318_v28 = vpop.f32.mrb[16].mxu0 }
 0x3ae   : > { %v10112_v1 = vpop.f32.mrb[17].mxu0  ;;  %v5385_v33 = vmul.f32 0.35355338, %v5318_v28 }
 0x3af   : > { %v5321_v2 = vpop.f32.mrb[18].mxu0  ;;  %v5374_v44 = vpop.f32.mrb[20].mxu1  ;;  %1667 = vrot.lane.b32.xlu0 %v14627_v37, %s10580_s16  ;;  %v5396_v1 = vld [vmem:[%s14547_s10 + $0x38] sm:$0xff] }
 0x3b0   : > { %v10113_v5 = vpop.f32.mrb[19].mxu0  ;;  %v10124_v40 = vpop.f32.mrb[21].mxu1  ;;  %v5387_v15 = vmul.f32 0.35355338, %v5374_v44  ;;  %v5401_v10 = vadd.f32 %v5393_v6, %v5385_v33  ;;  %v5386_v43 = vmul.f32 0.35355338, %v5321_v2 }
 0x3b1   : > { %v5377_v17 = vpop.f32.mrb[22].mxu1 }
 0x3b2   : > { %v10125_v7 = vpop.f32.mrb[23].mxu1  ;;  %v5417_v35 = vsel %vm1380_vm1, %v5401_v10, -inf  ;;  %v5403_v32 = vadd.f32 %v5395_v21, %v5387_v15  ;;  %v5388_v55 = vmul.f32 0.35355338, %v5377_v17  ;;  %v5402_v28 = vadd.f32 %v5394_v46, %v5386_v43 }
 0x3b4   : > { %v5423_v60 = vsel %vm1380_vm1, %v5403_v32, -inf  ;;  %v5420_v44 = vsel %vm1380_vm1, %v5402_v28, -inf  ;;  %v5404_v5 = vadd.f32 %v5396_v1, %v5388_v55 }
 0x3b6   : > { %v5426_v40 = vsel %vm1380_vm1, %v5404_v5, -inf }
 0x3c8   : > { %5415 = vmax.xlane.f32.xlu1 %v5414_v8 }
 0x3ce   : > { %5418 = vmax.xlane.f32.xlu0 %v5417_v35 }
 0x3d2   : > { %5424 = vmax.xlane.f32.xlu0 %v5423_v60 }
 0x3d9   : > { %1683 = vrot.lane.b32.xlu1 %v14627_v37, %s10581_s24 }
 0x3e8   : > { %1669 = vrot.lane.b32.xlu0 %v14628_v50, %s10580_s16 }
 0x3ec   : > { %1685 = vrot.lane.b32.xlu0 %v14628_v50, %s10581_s24 }
 0x3f0   : > { %1679 = vrot.lane.b32.xlu0 %v14629_v59, %s10582_s30 }
 0x3f4   : > { %1673 = vrot.lane.b32.xlu0 %v14630_v58, %s10580_s16 }
 0x3fd   : > { %5421 = vmax.xlane.f32.xlu1 %v5420_v44 }
 0x401   : > { %5427 = vmax.xlane.f32.xlu1 %v5426_v40 }
 0x412   : > { %1677 = vrot.lane.b32.xlu1 %v14628_v50, %s10582_s30 }
 0x416   : > { %1671 = vrot.lane.b32.xlu1 %v14629_v59, %s10580_s16 }
 0x41a   : > { %1687 = vrot.lane.b32.xlu1 %v14629_v59, %s10581_s24 }
 0x420   : > { %v5407_v7 = vpop.xlane.xlu1 %5406 }
 0x421   : > { %v5429_v6 = vsub.f32 %v12181_v42, %v5407_v7 }
 0x422   : > { %v5410_v2 = vpop.xlane.xlu0 %5409 }
 0x423   : > { %v5430_v17 = vsub.f32 %v5398_v61, %v5410_v2  ;;  %v5437_v15 = vmul.f32 1.442695, %v5429_v6 }
 0x425   : > { %v5439_v41 = vmul.f32 1.442695, %v5430_v17 }
 0x426   : > { %v5413_v11 = vpop.xlane.xlu0 %5412 }
 0x427   : > { %10352 = vpow2.f32 %v5439_v41  ;;  %v5431_v33 = vsub.f32 %v5399_v48, %v5413_v11  ;;  %v12237_v48 = vpop.permute.xlu1 %1675 }
 0x429   : > { %v5441_v8 = vmul.f32 1.442695, %v5431_v33 }
 0x42a   : > { %v12239_v1 = vpop.permute.xlu0 %1667 }
 0x42b   : > { %10354 = vpow2.f32 %v5441_v8  ;;  %v1693_v0 = vpack.i.b16 %v12239_v1, %v14627_v37 }
 0x42c   : > { %10356 = vpow2.f32 %v5437_v15 }
 0x42d   : > { %v1761_v27 = vcombine.high %v1693_v0, %v11193_v52 }
 0x431   : > { %v10353_v21 = vpop.eup %10352 }
 0x432   : > { %v5456_v35 = vsel %vm1380_vm1, %v10353_v21, 0.0 }
 0x433   : > { %5457 = vadd.xlane.f32.xlu0 %v5456_v35 }
 0x435   : > { %v12232_v60 = vpop.eup %10354 }
 0x436   : > { %v5459_v61 = vsel %vm1380_vm1, %v12232_v60, 0.0  ;;  %v10357_v43 = vpop.eup %10356 }
 0x437   : > { %5460 = vadd.xlane.f32.xlu0 %v5459_v61  ;;  %v5453_v46 = vsel %vm1380_vm1, %v10357_v43, 0.0 }
 0x43e   : > { %5454 = vadd.xlane.f32.xlu1 %v5453_v46 }
 0x455   : > { %v5416_v42 = vpop.xlane.xlu1 %5415 }
 0x456   : > { %v5432_v55 = vsub.f32 %v5400_v22, %v5416_v42 }
 0x458   : > { %v5443_v44 = vmul.f32 1.442695, %v5432_v55 }
 0x459   : > { %v1684_v35 = vpop.permute.xlu1 %1683 }
 0x45a   : > { %10358 = vpow2.f32 %v5443_v44  ;;  %v1701_v25 = vpack.i.b16 %v1684_v35, %v12237_v48  ;;  %v1704_v45 = vshrl.u32 %v1684_v35, 16 }
 0x45b   : > { %v5419_v40 = vpop.xlane.xlu0 %5418 }
 0x45c   : > { %v5433_v2 = vsub.f32 %v5401_v10, %v5419_v40 }
 0x45e   : > { %v5445_v17 = vmul.f32 1.442695, %v5433_v2 }
 0x45f   : > { %v5425_v7 = vpop.xlane.xlu0 %5424 }
 0x460   : > { %10360 = vpow2.f32 %v5445_v17  ;;  %v5435_v11 = vsub.f32 %v5403_v32, %v5425_v7 }
 0x462   : > { %v5449_v6 = vmul.f32 1.442695, %v5435_v11 }
 0x463   : > { %v12263_v11 = vpop.permute.xlu0 %1669 }
 0x464   : > { %v12241_v41 = vpop.eup %10358  ;;  %10362 = vpow2.f32 %v5449_v6 }
 0x465   : > { %v5462_v33 = vsel %vm1380_vm1, %v12241_v41, 0.0 }
 0x466   : > { %5463 = vadd.xlane.f32.xlu1 %v5462_v33 }
 0x46a   : > { %v12245_v8 = vpop.eup %10360 }
 0x46b   : > { %v5465_v22 = vsel %vm1380_vm1, %v12245_v8, 0.0 }
 0x46c   : > { %5466 = vadd.xlane.f32.xlu0 %v5465_v22 }
 0x46e   : > { %v12249_v15 = vpop.eup %10362 }
 0x46f   : > { %v5471_v10 = vsel %vm1380_vm1, %v12249_v15, 0.0 }
 0x470   : > { %5472 = vadd.xlane.f32.xlu0 %v5471_v10 }
 0x486   : > { %1689 = vrot.lane.b32.xlu0 %v14630_v58, %s10581_s24 }
 0x48a   : > { %v5422_v32 = vpop.xlane.xlu1 %5421 }
 0x48b   : > { %v5434_v61 = vsub.f32 %v5402_v28, %v5422_v32  ;;  %v12265_v28 = vpop.permute.xlu0 %1685 }
 0x48d   : > { %v5447_v55 = vmul.f32 1.442695, %v5434_v61 }
 0x48e   : > { %v5428_v46 = vpop.xlane.xlu1 %5427 }
 0x48f   : > { %v5436_v42 = vsub.f32 %v5404_v5, %v5428_v46  ;;  %10364 = vpow2.f32 %v5447_v55  ;;  %v12271_v33 = vpop.permute.xlu0 %1679 }
 0x491   : > { %v5451_v44 = vmul.f32 1.442695, %v5436_v42 }
 0x492   : > { %v12269_v5 = vpop.permute.xlu1 %1677 }
 0x493   : > { %10366 = vpow2.f32 %v5451_v44  ;;  %v12275_v22 = vpop.permute.xlu0 %1673 }
 0x496   : > { %v12273_v6 = vpop.permute.xlu1 %1671 }
 0x499   : > { %v12255_v40 = vpop.eup %10364 }
 0x49a   : > { %v5468_v17 = vsel %vm1380_vm1, %v12255_v40, 0.0  ;;  %v12277_v10 = vpop.permute.xlu1 %1687 }
 0x49b   : > { %5469 = vadd.xlane.f32.xlu1 %v5468_v17 }
 0x49d   : > { %v12257_v2 = vpop.eup %10366 }
 0x49e   : > { %v5474_v7 = vsel %vm1380_vm1, %v12257_v2, 0.0 }
 0x49f   : > { %5475 = vadd.xlane.f32.xlu1 %v5474_v7 }
 0x4b0   : > { %1681 = vrot.lane.b32.xlu1 %v14630_v58, %s10582_s30  ;;  %s14492_s30 = scalar_lea.hbm %s14552_s15, %s9908_s26 }
 0x4c0   : > { %v5458_v32 = vpop.xlane.xlu0 %5457 }
 0x4c1   : > { %10368 = vrcp.f32 %v5458_v32  ;;  %v1695_v32 = vshrl.u32 %v14627_v37, 16 }
 0x4c4   : > { %v5461_v34 = vpop.xlane.xlu0 %5460 }
 0x4cb   : > { %v5455_v61 = vpop.xlane.xlu1 %5454  ;;  %v10369_v46 = vpop.eup %10368 }
 0x4cc   : > { %10370 = vrcp.f32 %v5455_v61  ;;  %v5486_v55 = vmul.f32 %v10369_v46, %v10353_v21  ;;  %v1696_v21 = vshrl.u32 %v12239_v1, 16  ;;  %v1775_v46 = vrot.slane %v1761_v27, %v14613_v13 }
 0x4cd   : > { %10372 = vrcp.f32 %v5461_v34  ;;  %v1768_v1 = vrot.slane %v1693_v0, %v14613_v13 }
 0x4ce   : > { %v1697_v35 = vpack.i.b16 %v1696_v21, %v1695_v32  ;;  %v1718_v32 = vshrl.u32 %v12263_v11, 16 }
 0x4d6   : > { %v10371_v42 = vpop.eup %10370 }
 0x4d7   : > { %v5485_v44 = vmul.f32 %v10371_v42, %v10357_v43  ;;  %v1783_v42 = vrot.slane %v1701_v25, %v14613_v13 }
 0x4d9   : > { %v5493_v17 = vpack.c.bf16 %v5486_v55, %v5485_v44  ;;  %v1827_v55 = vcombine.high %v1697_v35, %v11193_v52  ;;  %v1791_v44 = vcombine.low %v1768_v1, %v1783_v42 }
 0x4db   : > { %10135 = vmatmul.mubr.msk.bf16.vlgmr.msra.gmra.mrb[20].mxu0 %vm1380_vm1, %v5493_v17  ;;  %v1792_v17 = vcombine.high %v1768_v1, %v1783_v42 }
 0x4dc   : > { %10151 = vmatpush3.bf16.msra.mxu0 %v4835_v18  ;;  %10158 = vmatprep.mubr.msk.bf16.mxu0 %vm10584_vm10, %v14626_v26  ;;  %v10373_v18 = vpop.eup %10372 }
 0x4dd   : > { %10152 = vmatprep.subr.bf16.mxu0 %v14626_v26 }
 0x4e0   : > { %10153 = vmatpush3.bf16.msra.mxu0 %v4851_v39  ;;  %v1776_v39 = vcombine.high %v1701_v25, %v11193_v52 }
 0x4e1   : > { %10154 = vmatprep.subr.bf16.mxu0 %v14626_v26 }
 0x4e2   : > { %v1790_v43 = vrot.slane %v1776_v39, %v14613_v13  ;;  %v1841_v39 = vrot.slane %v1827_v55, %v14613_v13 }
 0x4e4   : > { %10155 = vmatpush3.bf16.msra.mxu0 %v4867_v57  ;;  %v5487_v57 = vmul.f32 %v10373_v18, %v12232_v60  ;;  %v1807_v60 = vcombine.low %v1775_v46, %v1790_v43 }
 0x4e5   : > { %10156 = vmatprep.subr.bf16.mxu0 %v14626_v26 }
 0x4e6   : > { %v1815_v34 = vrot.slane %v1807_v60, %v10774_v30  ;;  %v1717_v60 = vshrl.u32 %v14628_v50, 16 }
 0x4e8   : > { %10157 = vmatpush3.bf16.msra.mxu0 %v4883_v47  ;;  %v1703_v47 = vshrl.u32 %v12237_v48, 16  ;;  %v1808_v48 = vcombine.high %v1775_v46, %v1790_v43 }
 0x4e9   : > { %10286 = vmatprep.subr.msk.bf16.mxu0 %vm5156_vm9, %v11749_v38 }
 0x4ea   : > { %v1705_v61 = vpack.i.b16 %v1704_v45, %v1703_v47  ;;  %v1806_v45 = vrot.slane %v1792_v17, %v10774_v30  ;;  %v1719_v17 = vpack.i.b16 %v1718_v32, %v1717_v60 }
 0x4ec   : > { %v1842_v37 = vcombine.high %v1705_v61, %v11193_v52 }
 0x4ee   : > { %v1856_v25 = vrot.slane %v1842_v37, %v14613_v13  ;;  %v1723_v37 = vpack.i.b16 %v12265_v28, %v12269_v5 }
 0x4f3   : > { %v5464_v31 = vpop.xlane.xlu1 %5463 }
 0x4f4   : > { %10374 = vrcp.f32 %v5464_v31  ;;  %v1822_v31 = vrot.slane %v1808_v48, %v10774_v30 }
 0x4f6   : > { %v9706_v27 = vcombine.high %v1815_v34, %v1822_v31 }
 0x4f8   : > { %v2320_v46 = vrot.slane %v9706_v27, %v14613_v13 }
 0x4fe   : > { %v10375_v4 = vpop.eup %10374 }
 0x4ff   : > { %v5488_v23 = vmul.f32 %v10375_v4, %v12241_v41  ;;  %v1849_v41 = vrot.slane %v1705_v61, %v14613_v13  ;;  %v1799_v4 = vrot.slane %v1791_v44, %v10774_v30  ;;  %v1725_v61 = vshrl.u32 %v12269_v5, 16 }
 0x500   : > { %v1715_v44 = vpack.i.b16 %v12263_v11, %v14628_v50  ;;  %v12357_v5 = vsel %vm5156_vm9, %v11749_v38, 0  ;;  %v12371_v38 = vsel %vm5156_vm9, %v11757_v14, 0 }
 0x501   : > { %v5494_v7 = vpack.c.bf16 %v5488_v23, %v5487_v57  ;;  %v1873_v57 = vcombine.low %v1841_v39, %v1856_v25  ;;  %v1874_v23 = vcombine.high %v1841_v39, %v1856_v25  ;;  %v2289_v43 = vcombine.low %v1799_v4, %v1806_v45 }
 0x502   : > { %v1742_v39 = vshrl.u32 %v12277_v10, 16  ;;  %v1893_v11 = vcombine.high %v1715_v44, %v11193_v52 }
 0x503   : > { %10147 = vmatmul.mubr.msk.bf16.vlgmr.msra.gmra.mrb[24].mxu1 %vm1380_vm1, %v5494_v7  ;;  %v9705_v7 = vcombine.high %v1799_v4, %v1806_v45  ;;  %v1888_v42 = vrot.slane %v1874_v23, %v10774_v30  ;;  %v1741_v45 = vshrl.u32 %v12271_v33, 16 }
 0x504   : > { %10163 = vmatpush3.bf16.msra.mxu1 %v12159_v36  ;;  %10170 = vmatprep.mubr.msk.bf16.mxu1 %vm10584_vm10, %v14626_v26  ;;  %v1834_v36 = vrot.slane %v1697_v35, %v14613_v13  ;;  %v1881_v35 = vrot.slane %v1873_v57, %v10774_v30  ;;  %v1959_v57 = vcombine.high %v1719_v17, %v11193_v52 }
 0x505   : > { %10164 = vmatprep.subr.bf16.mxu1 %v14626_v26  ;;  %v2304_v55 = vrot.slane %v9705_v7, %v14613_v13 }
 0x506   : > { %v1857_v0 = vcombine.low %v1834_v36, %v1849_v41  ;;  %v1858_v18 = vcombine.high %v1834_v36, %v1849_v41  ;;  %v2296_v41 = vrot.slane %v2289_v43, %v14613_v13  ;;  %v2355_v25 = vcombine.low %v1881_v35, %v1888_v42 }
 0x507   : > { %v1743_v43 = vpack.i.b16 %v1742_v39, %v1741_v45 }
 0x508   : > { %10165 = vmatpush3.bf16.msra.mxu1 %v12166_v12  ;;  %v2305_v12 = vcombine.low %v1815_v34, %v1822_v31  ;;  %v1865_v47 = vrot.slane %v1857_v0, %v10774_v30  ;;  %v1872_v21 = vrot.slane %v1858_v18, %v10774_v30  ;;  %v9708_v0 = vcombine.high %v1881_v35, %v1888_v42 }
 0x509   : > { %10166 = vmatprep.subr.bf16.mxu1 %v14626_v26  ;;  %v1733_v18 = vshrl.u32 %v14629_v59, 16  ;;  %v2321_v27 = vcombine.low %v2296_v41, %v2304_v55  ;;  %v2362_v7 = vrot.slane %v2355_v25, %v14613_v13  ;;  %v1907_v42 = vrot.slane %v1893_v11, %v14613_v13 }
 0x50a   : > { %v2339_v48 = vcombine.low %v1865_v47, %v1872_v21  ;;  %v9707_v1 = vcombine.high %v1865_v47, %v1872_v21  ;;  %v1915_v21 = vrot.slane %v1723_v37, %v14613_v13  ;;  %v2370_v32 = vrot.slane %v9708_v0, %v14613_v13 }
 0x50b   : > { %v1731_v41 = vpack.i.b16 %v12273_v6, %v14629_v59  ;;  %v12401_v0 = vpack.i.b16 %v12275_v22, %v14630_v58 }
 0x50c   : > { %10167 = vmatpush3.bf16.msra.mxu1 %v12168_v63  ;;  %v2312_v63 = vrot.slane %v2305_v12, %v14613_v13  ;;  %v2346_v4 = vrot.slane %v2339_v48, %v14613_v13  ;;  %v2354_v50 = vrot.slane %v9707_v1, %v14613_v13  ;;  %v1734_v12 = vshrl.u32 %v12273_v6, 16 }
 0x50d   : > { %10168 = vmatprep.subr.bf16.mxu1 %v14626_v26  ;;  %v12383_v48 = vrot.slane %v2321_v27, %v10774_v30  ;;  %v1966_v1 = vrot.slane %v1719_v17, %v14613_v13 }
 0x50e   : > { %v2329_v31 = vcombine.low %v2312_v63, %v2320_v46  ;;  %v1739_v46 = vpack.i.b16 %v12277_v10, %v12271_v33  ;;  %v2371_v35 = vcombine.low %v2346_v4, %v2354_v50  ;;  %v1735_v60 = vpack.i.b16 %v1734_v12, %v1733_v18 }
 0x50f   : > { %v2106_v33 = vcombine.high %v1743_v43, %v11193_v52  ;;  %v2025_v50 = vcombine.high %v1731_v41, %v11193_v52 }
 0x510   : > { %10169 = vmatpush3.bf16.msra.mxu1 %v12172_v19  ;;  %v1726_v19 = vshrl.u32 %v12265_v28, 16  ;;  %v1908_v28 = vcombine.high %v1723_v37, %v11193_v52  ;;  %v12367_v47 = vrot.slane %v2329_v31, %v10774_v30  ;;  %v2040_v25 = vcombine.high %v1739_v46, %v11193_v52 }
 0x511   : > { %10287 = vmatprep.subr.msk.bf16.mxu1 %vm5156_vm9, %v11757_v14  ;;  %v12397_v17 = vrot.slane %v2371_v35, %v10774_v30  ;;  %v2091_v18 = vcombine.high %v1735_v60, %v11193_v52  ;;  %v2120_v12 = vrot.slane %v2106_v33, %v14613_v13  ;;  %v2113_v35 = vrot.slane %v1743_v43, %v14613_v13 }
 0x512   : > { %v1727_v34 = vpack.i.b16 %v1726_v19, %v1725_v61  ;;  %v1900_v61 = vrot.slane %v1715_v44, %v14613_v13  ;;  %v1922_v63 = vrot.slane %v1908_v28, %v14613_v13  ;;  %v1973_v19 = vrot.slane %v1959_v57, %v14613_v13 }
 0x513   : > { %v12393_v10 = vcombine.low %v12383_v48, %v12367_v47  ;;  %v2379_v44 = vcombine.low %v2362_v7, %v2370_v32  ;;  %v2054_v7 = vrot.slane %v2040_v25, %v14613_v13 }
 0x514   : > { %v1974_v23 = vcombine.high %v1727_v34, %v11193_v52  ;;  %v1981_v14 = vrot.slane %v1727_v34, %v14613_v13  ;;  %v1923_v55 = vcombine.low %v1900_v61, %v1915_v21  ;;  %v1924_v34 = vcombine.high %v1900_v61, %v1915_v21 }
 0x515   : > { %v1939_v31 = vcombine.low %v1907_v42, %v1922_v63  ;;  %v1940_v59 = vcombine.high %v1907_v42, %v1922_v63  ;;  %v12409_v27 = vrot.slane %v2379_v44, %v10774_v30  ;;  %v2047_v21 = vrot.slane %v1739_v46, %v14613_v13 }
 0x516   : > { %v1988_v37 = vrot.slane %v1974_v23, %v14613_v13  ;;  %v1989_v6 = vcombine.low %v1966_v1, %v1981_v14  ;;  %v1990_v28 = vcombine.high %v1966_v1, %v1981_v14  ;;  %v1931_v11 = vrot.slane %v1923_v55, %v10774_v30 }
 0x517   : > { %v1938_v57 = vrot.slane %v1924_v34, %v10774_v30  ;;  %v1947_v23 = vrot.slane %v1939_v31, %v10774_v30  ;;  %v1954_v32 = vrot.slane %v1940_v59, %v10774_v30  ;;  %v2105_v63 = vrot.slane %v2091_v18, %v14613_v13  ;;  %v5467_v59 = vpop.xlane.xlu0 %5466 }
 0x518   : > { %v2005_v4 = vcombine.low %v1973_v19, %v1988_v37  ;;  %v2006_v45 = vcombine.high %v1973_v19, %v1988_v37  ;;  %v1997_v61 = vrot.slane %v1989_v6, %v10774_v30  ;;  %v2004_v42 = vrot.slane %v1990_v28, %v10774_v30 }
 0x519   : > { %v2032_v1 = vrot.slane %v1731_v41, %v14613_v13  ;;  %v2039_v19 = vrot.slane %v2025_v50, %v14613_v13  ;;  %v2098_v37 = vrot.slane %v1735_v60, %v14613_v13  ;;  %v2137_v55 = vcombine.low %v2105_v63, %v2120_v12 }
 0x51a   : > { %v2013_v14 = vrot.slane %v2005_v4, %v10774_v30  ;;  %v2020_v46 = vrot.slane %v2006_v45, %v10774_v30  ;;  %v2138_v33 = vcombine.high %v2105_v63, %v2120_v12  ;;  %v2389_v43 = vcombine.low %v1931_v11, %v1938_v57 }
 0x51b   : > { %v2055_v44 = vcombine.low %v2032_v1, %v2047_v21  ;;  %v2056_v34 = vcombine.high %v2032_v1, %v2047_v21  ;;  %v2071_v31 = vcombine.low %v2039_v19, %v2054_v7  ;;  %v2072_v25 = vcombine.high %v2039_v19, %v2054_v7  ;;  %v5473_v1 = vpop.xlane.xlu0 %5472 }
 0x51c   : > { %v9709_v6 = vcombine.high %v1931_v11, %v1938_v57  ;;  %v2121_v18 = vcombine.low %v2098_v37, %v2113_v35  ;;  %v2122_v28 = vcombine.high %v2098_v37, %v2113_v35  ;;  %v2405_v4 = vcombine.low %v1947_v23, %v1954_v32 }
 0x51d   : > { %v9710_v39 = vcombine.high %v1947_v23, %v1954_v32  ;;  %v2439_v41 = vcombine.low %v1997_v61, %v2004_v42  ;;  %v9711_v36 = vcombine.high %v1997_v61, %v2004_v42  ;;  %v2455_v50 = vcombine.low %v2013_v14, %v2020_v46 }
 0x51e   : > { %v9712_v16 = vcombine.high %v2013_v14, %v2020_v46  ;;  %v2145_v45 = vrot.slane %v2137_v55, %v10774_v30  ;;  %v2152_v60 = vrot.slane %v2138_v33, %v10774_v30  ;;  %v2063_v12 = vrot.slane %v2055_v44, %v10774_v30 }
 0x51f   : > { %v2070_v21 = vrot.slane %v2056_v34, %v10774_v30  ;;  %v2079_v7 = vrot.slane %v2071_v31, %v10774_v30  ;;  %v2086_v11 = vrot.slane %v2072_v25, %v10774_v30  ;;  %v2396_v57 = vrot.slane %v2389_v43, %v14613_v13 }
 0x520   : > { %v2404_v23 = vrot.slane %v9709_v6, %v14613_v13  ;;  %v2129_v32 = vrot.slane %v2121_v18, %v10774_v30  ;;  %v2136_v61 = vrot.slane %v2122_v28, %v10774_v30  ;;  %v2412_v63 = vrot.slane %v2405_v4, %v14613_v13 }
 0x521   : > { %v2420_v35 = vrot.slane %v9710_v39, %v14613_v13  ;;  %v2446_v42 = vrot.slane %v2439_v41, %v14613_v13  ;;  %v2454_v14 = vrot.slane %v9711_v36, %v14613_v13  ;;  %v2462_v19 = vrot.slane %v2455_v50, %v14613_v13 }
 0x522   : > { %v2470_v46 = vrot.slane %v9712_v16, %v14613_v13  ;;  %v2555_v37 = vcombine.low %v2145_v45, %v2152_v60  ;;  %v9716_v55 = vcombine.high %v2145_v45, %v2152_v60  ;;  %v2489_v33 = vcombine.low %v2063_v12, %v2070_v21 }
 0x523   : > { %v9713_v44 = vcombine.high %v2063_v12, %v2070_v21  ;;  %v2505_v34 = vcombine.low %v2079_v7, %v2086_v11  ;;  %10376 = vrcp.f32 %v5467_v59  ;;  %v9714_v31 = vcombine.high %v2079_v7, %v2086_v11 }
 0x524   : > { %v2539_v25 = vcombine.low %v2129_v32, %v2136_v61  ;;  %v9715_v43 = vcombine.high %v2129_v32, %v2136_v61  ;;  %10378 = vrcp.f32 %v5473_v1  ;;  %v14631_v6 = vshrl.u32 %v14630_v58, 16 }
 0x525   : > { %v14632_v36 = vshrl.u32 %v12275_v22, 16  ;;  %v2157_v28 = vcombine.high %v12401_v0, %v11193_v52  ;;  %v12449_v16 = vcombine.low %v12397_v17, %v12409_v27  ;;  %v2429_v4 = vcombine.low %v2412_v63, %v2420_v35 }
 0x526   : > { %v2479_v59 = vcombine.low %v2462_v19, %v2470_v46  ;;  %v2562_v41 = vrot.slane %v2555_v37, %v14613_v13  ;;  %v2570_v50 = vrot.slane %v9716_v55, %v14613_v13  ;;  %v2421_v45 = vcombine.low %v2396_v57, %v2404_v23  ;;  %v1690_v23 = vpop.permute.xlu0 %1689 }
 0x527   : > { %v1751_v18 = vpack.i.b16 %v14632_v36, %v14631_v6  ;;  %v2471_v60 = vcombine.low %v2446_v42, %v2454_v14  ;;  %v2496_v58 = vrot.slane %v2489_v33, %v14613_v13  ;;  %v2504_v22 = vrot.slane %v9713_v44, %v14613_v13 }
 0x528   : > { %v5470_v39 = vpop.xlane.xlu1 %5469  ;;  %v2512_v21 = vrot.slane %v2505_v34, %v14613_v13  ;;  %v2520_v7 = vrot.slane %v9714_v31, %v14613_v13  ;;  %v2546_v11 = vrot.slane %v2539_v25, %v14613_v13  ;;  %v2554_v32 = vrot.slane %v9715_v43, %v14613_v13 }
 0x529   : > { %10380 = vrcp.f32 %v5470_v39  ;;  %v2164_v61 = vrot.slane %v12401_v0, %v14613_v13  ;;  %v2223_v63 = vcombine.high %v1751_v18, %v11193_v52  ;;  %v2692_v57 = vshrl.u32 %v12393_v10, 16 }
 0x52a   : > { %v2693_v35 = vshrl.u32 %v12449_v16, 16  ;;  %v12465_v42 = vrot.slane %v2429_v4, %v10774_v30  ;;  %v12468_v14 = vrot.slane %v2479_v59, %v10774_v30  ;;  %v2579_v1 = vcombine.low %v2562_v41, %v2570_v50 }
 0x52b   : > { %v2171_v19 = vrot.slane %v2157_v28, %v14613_v13  ;;  %v2230_v46 = vrot.slane %v1751_v18, %v14613_v13  ;;  %v2691_v0 = vpack.i.b16 %v12449_v16, %v12393_v10  ;;  %v2521_v37 = vcombine.low %v2496_v58, %v2504_v22 }
 0x52c   : > { %v5476_v12 = vpop.xlane.xlu1 %5475  ;;  %v12475_v33 = vrot.slane %v2421_v45, %v10774_v30  ;;  %v12478_v44 = vrot.slane %v2471_v60, %v10774_v30  ;;  %v2529_v34 = vcombine.low %v2512_v21, %v2520_v7  ;;  %v2571_v31 = vcombine.low %v2546_v11, %v2554_v32 }
 0x52d   : > { %10382 = vrcp.f32 %v5476_v12  ;;  %v10377_v25 = vpop.eup %10376  ;;  %v2237_v43 = vrot.slane %v2223_v63, %v14613_v13  ;;  %v1758_v39 = vshrl.u32 %v1690_v23, 16  ;;  %v12481_v28 = vpack.i.b16 %v2693_v35, %v2692_v57 }
 0x52e   : > { %v10379_v18 = vpop.eup %10378  ;;  %v12485_v10 = vcombine.low %v12475_v33, %v12465_v42  ;;  %v12489_v16 = vcombine.low %v12478_v44, %v12468_v14  ;;  %v12492_v4 = vrot.slane %v2579_v1, %v10774_v30  ;;  %v12497_v60 = vrot.slane %v2521_v37, %v10774_v30 }
 0x52f   : > { %v5489_v58 = vmul.f32 %v10377_v25, %v12245_v8  ;;  %v12502_v12 = vrot.slane %v2529_v34, %v10774_v30  ;;  %v12505_v21 = vrot.slane %v2571_v31, %v10774_v30  ;;  %v5491_v57 = vmul.f32 %v10379_v18, %v12249_v15 }
 0x530   : > { %v1682_v55 = vpop.permute.xlu1 %1681 }
 0x531   : > { %v1755_v6 = vpack.i.b16 %v1690_v23, %v1682_v55  ;;  %v1757_v36 = vshrl.u32 %v1682_v55, 16  ;;  %v12513_v8 = vcombine.low %v12505_v21, %v12492_v4 }
 0x533   : > { %v10381_v59 = vpop.eup %10380  ;;  %v1759_v41 = vpack.i.b16 %v1758_v39, %v1757_v36  ;;  %v2172_v50 = vcombine.high %v1755_v6, %v11193_v52  ;;  %v2179_v45 = vrot.slane %v1755_v6, %v14613_v13 }
 0x534   : > { %v5490_v22 = vmul.f32 %v10381_v59, %v12255_v40 }
 0x535   : > { %v2186_v7 = vrot.slane %v2172_v50, %v14613_v13  ;;  %v2187_v11 = vcombine.low %v2164_v61, %v2179_v45  ;;  %v2188_v32 = vcombine.high %v2164_v61, %v2179_v45  ;;  %v2238_v63 = vcombine.high %v1759_v41, %v11193_v52 }
 0x536   : > { %v2245_v23 = vrot.slane %v1759_v41, %v14613_v13  ;;  %v5495_v35 = vpack.c.bf16 %v5490_v22, %v5489_v58 }
 0x537   : > { %v10383_v40 = vpop.eup %10382  ;;  %v2195_v1 = vrot.slane %v2187_v11, %v10774_v30  ;;  %v2202_v37 = vrot.slane %v2188_v32, %v10774_v30  ;;  %v2203_v55 = vcombine.low %v2171_v19, %v2186_v7  ;;  %v2204_v34 = vcombine.high %v2171_v19, %v2186_v7 }
 0x538   : > { %v5492_v61 = vmul.f32 %v10383_v40, %v12257_v2  ;;  %v2252_v52 = vrot.slane %v2238_v63, %v14613_v13  ;;  %v2253_v31 = vcombine.low %v2230_v46, %v2245_v23  ;;  %v2254_v15 = vcombine.high %v2230_v46, %v2245_v23  ;;  %10159 = vmatmul.mubr.msk.bf16.vlgmr.msra.gmra.mrb[24].mxu0 %vm1380_vm1, %v5495_v35 }
 0x539   : > { %v2211_v25 = vrot.slane %v2203_v55, %v10774_v30  ;;  %v2218_v39 = vrot.slane %v2204_v34, %v10774_v30  ;;  %v2589_v6 = vcombine.low %v2195_v1, %v2202_v37  ;;  %v9717_v36 = vcombine.high %v2195_v1, %v2202_v37  ;;  %10175 = vmatpush3.bf16.xpose.msra.mxu0 %v12357_v5 }
 0x53a   : > { %v2261_v18 = vrot.slane %v2253_v31, %v10774_v30  ;;  %v2268_v19 = vrot.slane %v2254_v15, %v10774_v30  ;;  %v2269_v59 = vcombine.low %v2237_v43, %v2252_v52  ;;  %v2270_v2 = vcombine.high %v2237_v43, %v2252_v52  ;;  %10176 = vmatprep.mubr.msk.bf16.mxu0 %vm5156_vm9, %v2691_v0 }
 0x53b   : > { %v2596_v46 = vrot.slane %v2589_v6, %v14613_v13  ;;  %v2604_v41 = vrot.slane %v9717_v36, %v14613_v13  ;;  %v2605_v50 = vcombine.low %v2211_v25, %v2218_v39  ;;  %v9718_v45 = vcombine.high %v2211_v25, %v2218_v39  ;;  %10288 = vmatprep.subr.msk.bf16.mxu0 %vm5156_vm9, %v11795_v56 }
 0x53c   : > { %v2277_v58 = vrot.slane %v2269_v59, %v10774_v30  ;;  %v2284_v5 = vrot.slane %v2270_v2, %v10774_v30  ;;  %v2639_v22 = vcombine.low %v2261_v18, %v2268_v19  ;;  %v9719_v7 = vcombine.high %v2261_v18, %v2268_v19 }
 0x53d   : > { %v5496_v11 = vpack.c.bf16 %v5492_v61, %v5491_v57  ;;  %v2537_v43 = vcombine.low %v12497_v60, %v12502_v12  ;;  %v2612_v0 = vrot.slane %v2605_v50, %v14613_v13  ;;  %v2620_v32 = vrot.slane %v9718_v45, %v14613_v13 }
 0x53e   : > { %v2655_v63 = vcombine.low %v2277_v58, %v2284_v5  ;;  %v9720_v23 = vcombine.high %v2277_v58, %v2284_v5  ;;  %v2646_v35 = vrot.slane %v2639_v22, %v14613_v13  ;;  %v2654_v40 = vrot.slane %v9719_v7, %v14613_v13 }
 0x53f   : > { %10171 = vmatmul.mubr.msk.bf16.vlgmr.msra.gmra.mrb[28].mxu1 %vm1380_vm1, %v5496_v11  ;;  %v2703_v1 = vpack.i.b16 %v12489_v16, %v12485_v10  ;;  %v2715_v57 = vpack.i.b16 %v12513_v8, %v2537_v43  ;;  %v2621_v37 = vcombine.low %v2596_v46, %v2604_v41  ;;  %v2629_v55 = vcombine.low %v2612_v0, %v2620_v32 }
 0x540   : > { %10185 = vmatpush3.bf16.xpose.msra.mxu1 %v12371_v38  ;;  %10186 = vmatprep.mubr.msk.bf16.mxu1 %vm5156_vm9, %v12481_v28  ;;  %v2662_v34 = vrot.slane %v2655_v63, %v14613_v13  ;;  %v2670_v61 = vrot.slane %v9720_v23, %v14613_v13  ;;  %v2671_v52 = vcombine.low %v2646_v35, %v2654_v40  ;;  %v5270_v31 = vsel %vm5156_vm9, %v11795_v56, 0 }
 0x541   : > { %10289 = vmatprep.subr.msk.bf16.mxu1 %vm5156_vm9, %v11799_v62  ;;  %10177 = vmatmul.mubr.msk.bf16.vlgmr.msra.gmra.mrb[28].mxu0 %vm5156_vm9, %v2703_v1  ;;  %v2705_v15 = vshrl.u32 %v12489_v16, 16  ;;  %v2636_v38 = vrot.slane %v2629_v55, %v10774_v30  ;;  %v2717_v28 = vshrl.u32 %v12513_v8, 16  ;;  %v2704_v39 = vshrl.u32 %v12485_v10, 16 }
 0x542   : > { %10195 = vmatpush3.bf16.xpose.msra.mxu0 %v5270_v31  ;;  %10180 = vmatprep.mubr.msk.bf16.mxu0 %vm5156_vm9, %v2715_v57  ;;  %v2679_v25 = vcombine.low %v2662_v34, %v2670_v61  ;;  %v2628_v6 = vrot.slane %v2621_v37, %v10774_v30  ;;  %v2716_v36 = vshrl.u32 %v2537_v43, 16  ;;  %v2678_v18 = vrot.slane %v2671_v52, %v10774_v30 }
 0x543   : > { %v2706_v56 = vpack.i.b16 %v2705_v15, %v2704_v39  ;;  %v2388_v16 = vcombine.high %v12397_v17, %v12409_v27  ;;  %v5326_v8 = vsel %vm5156_vm9, %v11799_v62, 0  ;;  %v2338_v10 = vcombine.high %v12383_v48, %v12367_v47 }
 0x544   : > { %v2686_v19 = vrot.slane %v2679_v25, %v10774_v30  ;;  %v2637_v59 = vcombine.low %v2628_v6, %v2636_v38  ;;  %v2718_v2 = vpack.i.b16 %v2717_v28, %v2716_v36  ;;  %v2488_v5 = vcombine.high %v12478_v44, %v12468_v14 }
 0x545   : > { %v2697_v45 = vpack.i.b16 %v2388_v16, %v2338_v10  ;;  %v2699_v17 = vshrl.u32 %v2388_v16, 16  ;;  %v2698_v62 = vshrl.u32 %v2338_v10, 16  ;;  %v2588_v47 = vcombine.high %v12505_v21, %v12492_v4 }
 0x546   : > { %v2687_v46 = vcombine.low %v2678_v18, %v2686_v19  ;;  %v2728_v58 = vshrl.u32 %v2637_v59, 16  ;;  %v2438_v48 = vcombine.high %v12475_v33, %v12465_v42  ;;  %v2538_v7 = vcombine.high %v12497_v60, %v12502_v12 }
 0x547   : > { %10187 = vmatmul.mubr.msk.bf16.vlgmr.msra.gmra.mrb[32].mxu1 %vm5156_vm9, %v2706_v56  ;;  %v2700_v22 = vpack.i.b16 %v2699_v17, %v2698_v62  ;;  %v2711_v0 = vshrl.u32 %v2488_v5, 16  ;;  %v2723_v14 = vshrl.u32 %v2588_v47, 16  ;;  %v2688_v21 = vcombine.high %v2678_v18, %v2686_v19  ;;  %v6015_v56 = vld [vmem:[%s14548_s11 + $0x10] sm:$0xff]  ;;  %v6016_v17 = vld [vmem:[%s14548_s11 + $0x18] sm:$0xff] }
 0x548   : > { %10205 = vmatpush3.bf16.xpose.msra.mxu1 %v5326_v8  ;;  %10190 = vmatprep.mubr.msk.bf16.mxu1 %vm5156_vm9, %v2718_v2  ;;  %v2727_v41 = vpack.i.b16 %v2687_v46, %v2637_v59  ;;  %v2729_v50 = vshrl.u32 %v2687_v46, 16  ;;  %v2709_v11 = vpack.i.b16 %v2488_v5, %v2438_v48  ;;  %v2721_v43 = vpack.i.b16 %v2588_v47, %v2538_v7  ;;  %v6013_v8 = vld [vmem:[%s14548_s11] sm:$0xff] }
 0x549   : > { %v2710_v44 = vshrl.u32 %v2438_v48, 16  ;;  %v2722_v4 = vshrl.u32 %v2538_v7, 16  ;;  %v2638_v32 = vcombine.high %v2628_v6, %v2636_v38  ;;  %v2735_v12 = vshrl.u32 %v2688_v21, 16  ;;  %v6023_v48 = vld [vmem:[%s14548_s11 + $0x50] sm:$0xff] }
 0x54a   : > { %10181 = vmatmul.mubr.msk.bf16.gmra.mrb[32].mxu0 %vm5156_vm9, %v2727_v41  ;;  %v2730_v27 = vpack.i.b16 %v2729_v50, %v2728_v58 }
 0x54b   : > { %10196 = vmatprep.mubr.msk.bf16.mxu0 %vm5156_vm9, %v2697_v45  ;;  %v2712_v42 = vpack.i.b16 %v2711_v0, %v2710_v44  ;;  %v2724_v33 = vpack.i.b16 %v2723_v14, %v2722_v4  ;;  %v2733_v60 = vpack.i.b16 %v2688_v21, %v2638_v32  ;;  %v2734_v63 = vshrl.u32 %v2638_v32, 16  ;;  %v6014_v14 = vld [vmem:[%s14548_s11 + $0x8] sm:$0xff]  ;;  %v6024_v44 = vld [vmem:[%s14548_s11 + $0x58] sm:$0xff] }
 0x54d   : > { %v2736_v23 = vpack.i.b16 %v2735_v12, %v2734_v63 }
 0x54f   : > { %10191 = vmatmul.mubr.msk.bf16.gmra.mrb[36].mxu1 %vm5156_vm9, %v2730_v27 }
 0x550   : > { %10206 = vmatprep.mubr.msk.bf16.mxu1 %vm5156_vm9, %v2700_v22 }
 0x552   : > { %10197 = vmatmul.mubr.msk.bf16.vlgmr.msra.gmra.mrb[36].mxu0 %vm5156_vm9, %v2709_v11 }
 0x553   : > { %10200 = vmatprep.mubr.msk.bf16.mxu0 %vm5156_vm9, %v2721_v43 }
 0x557   : > { %10207 = vmatmul.mubr.msk.bf16.vlgmr.msra.gmra.mrb[40].mxu1 %vm5156_vm9, %v2712_v42 }
 0x558   : > { %10210 = vmatprep.mubr.msk.bf16.mxu1 %vm5156_vm9, %v2724_v33 }
 0x55a   : > { %10201 = vmatmul.mubr.msk.bf16.gmra.mrb[40].mxu0 %vm5156_vm9, %v2733_v60 }
 0x55f   : > { %10211 = vmatmul.mubr.msk.bf16.gmra.mrb[44].mxu1 %vm5156_vm9, %v2736_v23 }
 0x5ae   : > { %v5534_v35 = vpop.f32.mrb[20].mxu0 }
 0x5af   : > { %v10136_v40 = vpop.f32.mrb[21].mxu0 }
 0x5b0   : > { %v5537_v1 = vpop.f32.mrb[22].mxu0 }
 0x5b1   : > { %v6446_v57 = vpack.c.bf16 %v5537_v1, %v5534_v35  ;;  %v10137_v37 = vpop.f32.mrb[23].mxu0 }
 0x5b3   : > { %10214 = vmatprep.subr.bf16.mxu0 %v6446_v57 }
 0x5b4   : > { %10215 = vmatpush3.bf16.msra.mxu0 %v6446_v57  ;;  %v6022_v57 = vld [vmem:[%s14548_s11 + $0x48] sm:$0xff] }
 0x5d6   : > { %v5578_v55 = vpop.f32.mrb[24].mxu1 }
 0x5d7   : > { %v10148_v34 = vpop.f32.mrb[25].mxu1 }
 0x5d8   : > { %v5581_v61 = vpop.f32.mrb[26].mxu1 }
 0x5d9   : > { %v6447_v52 = vpack.c.bf16 %v5581_v61, %v5578_v55  ;;  %v10149_v31 = vpop.f32.mrb[27].mxu1  ;;  %v6021_v55 = vld [vmem:[%s14548_s11 + $0x40] sm:$0xff] }
 0x5db   : > { %10224 = vmatprep.subr.bf16.mxu1 %v6447_v52 }
 0x5dc   : > { %10225 = vmatpush3.bf16.msra.mxu1 %v6447_v52 }
 0x60b   : > { %v5622_v15 = vpop.f32.mrb[24].mxu0 }
 0x60c   : > { %v10160_v38 = vpop.f32.mrb[25].mxu0 }
 0x60d   : > { %v5625_v28 = vpop.f32.mrb[26].mxu0 }
 0x60e   : > { %v12586_v25 = vpack.c.bf16 %v5625_v28, %v5622_v15  ;;  %v10161_v39 = vpop.f32.mrb[27].mxu0 }
 0x610   : > { %10234 = vmatprep.subr.bf16.mxu0 %v12586_v25 }
 0x612   : > { %v5666_v6 = vpop.f32.mrb[28].mxu1 }
 0x613   : > { %v10172_v36 = vpop.f32.mrb[29].mxu1 }
 0x614   : > { %v5669_v18 = vpop.f32.mrb[30].mxu1  ;;  %v10178_v19 = vpop.f32.mrb[28].mxu0 }
 0x615   : > { %v12592_v59 = vpack.c.bf16 %v5669_v18, %v5666_v6  ;;  %v10173_v16 = vpop.f32.mrb[31].mxu1  ;;  %v5983_v2 = vmul.f32 0.35355338, %v10178_v19  ;;  %v5719_v46 = vpop.f32.mrb[29].mxu0  ;;  %v6020_v6 = vld [vmem:[%s14548_s11 + $0x38] sm:$0xff]  ;;  %v6019_v18 = vld [vmem:[%s14548_s11 + $0x30] sm:$0xff] }
 0x616   : > { %v5981_v10 = vmul.f32 0.35355338, %v5719_v46  ;;  %v10179_v41 = vpop.f32.mrb[30].mxu0 }
 0x617   : > { %10244 = vmatprep.subr.bf16.mxu1 %v12592_v59  ;;  %v5984_v50 = vmul.f32 0.35355338, %v10179_v41  ;;  %v5722_v45 = vpop.f32.mrb[31].mxu0  ;;  %v12598_v58 = vadd.f32 %v6015_v56, %v5983_v2 }
 0x618   : > { %v12603_v27 = vadd.f32 %v6013_v8, %v5981_v10  ;;  %v5982_v7 = vmul.f32 0.35355338, %v5722_v45 }
 0x619   : > { %v6084_v5 = vsel %vm6077_vm12, %v12598_v58, -inf  ;;  %v12612_v22 = vadd.f32 %v6016_v17, %v5984_v50  ;;  %v6018_v17 = vld [vmem:[%s14548_s11 + $0x28] sm:$0xff] }
 0x61a   : > { %v10188_v62 = vpop.f32.mrb[32].mxu1  ;;  %6085 = vmax.xlane.f32.xlu0 %v6084_v5  ;;  %v6078_v47 = vsel %vm6077_vm12, %v12603_v27, -inf  ;;  %v12626_v40 = vadd.f32 %v6014_v14, %v5982_v7 }
 0x61b   : > { %v5991_v11 = vmul.f32 0.35355338, %v10188_v62  ;;  %v5796_v43 = vpop.f32.mrb[33].mxu1  ;;  %6079 = vmax.xlane.f32.xlu1 %v6078_v47  ;;  %v6087_v12 = vsel %vm6077_vm12, %v12612_v22, -inf  ;;  %v6017_v62 = vld [vmem:[%s14548_s11 + $0x20] sm:$0xff] }
 0x61c   : > { %v10189_v0 = vpop.f32.mrb[34].mxu1  ;;  %v5989_v63 = vmul.f32 0.35355338, %v5796_v43  ;;  %v6081_v28 = vsel %vm6077_vm12, %v12626_v40, -inf }
 0x61d   : > { %v5992_v4 = vmul.f32 0.35355338, %v10189_v0  ;;  %v5799_v21 = vpop.f32.mrb[35].mxu1  ;;  %v10182_v42 = vpop.f32.mrb[32].mxu0  ;;  %v12620_v33 = vadd.f32 %v6023_v48, %v5991_v11 }
 0x61e   : > { %v5990_v32 = vmul.f32 0.35355338, %v5799_v21  ;;  %v5735_v60 = vpop.f32.mrb[33].mxu0  ;;  %v5987_v15 = vmul.f32 0.35355338, %v10182_v42  ;;  %v12642_v39 = vadd.f32 %v6021_v55, %v5989_v63  ;;  %v6027_v42 = vld [vmem:[%s14548_s11 + $0x70] sm:$0xff] }
 0x61f   : > { %v6108_v23 = vsel %vm6077_vm12, %v12620_v33, -inf  ;;  %6088 = vmax.xlane.f32.xlu1 %v6087_v12  ;;  %v10183_v35 = vpop.f32.mrb[34].mxu0  ;;  %v12628_v1 = vadd.f32 %v6024_v44, %v5992_v4  ;;  %v5985_v10 = vmul.f32 0.35355338, %v5735_v60  ;;  %v6028_v4 = vld [vmem:[%s14548_s11 + $0x78] sm:$0xff] }
 0x620   : > { %6109 = vmax.xlane.f32.xlu0 %v6108_v23  ;;  %v5738_v37 = vpop.f32.mrb[35].mxu0  ;;  %v5988_v34 = vmul.f32 0.35355338, %v10183_v35  ;;  %v12638_v31 = vadd.f32 %v6022_v57, %v5990_v32  ;;  %v6102_v41 = vsel %vm6077_vm12, %v12642_v39, -inf  ;;  %v12656_v45 = vadd.f32 %v6019_v18, %v5987_v15  ;;  %v6025_v15 = vld [vmem:[%s14548_s11 + $0x60] sm:$0xff] }
 0x621   : > { %v6111_v52 = vsel %vm6077_vm12, %v12628_v1, -inf  ;;  %v5986_v16 = vmul.f32 0.35355338, %v5738_v37  ;;  %v12670_v44 = vadd.f32 %v6017_v62, %v5985_v10  ;;  %v6032_v10 = vld [vmem:[%s14548_s11 + $0x98] sm:$0xff] }
 0x622   : > { %v10192_v61 = vpop.f32.mrb[36].mxu1  ;;  %v6105_v46 = vsel %vm6077_vm12, %v12638_v31, -inf  ;;  %v12652_v8 = vadd.f32 %v6020_v6, %v5988_v34  ;;  %v6096_v14 = vsel %vm6077_vm12, %v12656_v45, -inf }
 0x623   : > { %v5812_v38 = vpop.f32.mrb[37].mxu1  ;;  %6112 = vmax.xlane.f32.xlu1 %v6111_v52  ;;  %v12666_v11 = vadd.f32 %v6018_v17, %v5986_v16  ;;  %v5995_v43 = vmul.f32 0.35355338, %v10192_v61  ;;  %v6090_v37 = vsel %vm6077_vm12, %v12670_v44, -inf  ;;  %v6026_v61 = vld [vmem:[%s14548_s11 + $0x68] sm:$0xff] }
 0x624   : > { %v10193_v36 = vpop.f32.mrb[38].mxu1  ;;  %6082 = vmax.xlane.f32.xlu0 %v6081_v28  ;;  %v6099_v7 = vsel %vm6077_vm12, %v12652_v8, -inf  ;;  %v5993_v57 = vmul.f32 0.35355338, %v5812_v38 }
 0x625   : > { %v5815_v19 = vpop.f32.mrb[39].mxu1  ;;  %v10198_v56 = vpop.f32.mrb[36].mxu0  ;;  %v5996_v47 = vmul.f32 0.35355338, %v10193_v36  ;;  %v6093_v23 = vsel %vm6077_vm12, %v12666_v11, -inf  ;;  %v12686_v34 = vadd.f32 %v6027_v42, %v5995_v43 }
 0x626   : > { %v5873_v2 = vpop.f32.mrb[37].mxu0  ;;  %v5994_v12 = vmul.f32 0.35355338, %v5815_v19  ;;  %v5999_v18 = vmul.f32 0.35355338, %v10198_v56 }
 0x627   : > { %6106 = vmax.xlane.f32.xlu1 %v6105_v46  ;;  %v10199_v50 = vpop.f32.mrb[38].mxu0  ;;  %v12682_v35 = vadd.f32 %v6028_v4, %v5996_v47  ;;  %v6120_v16 = vsel %vm6077_vm12, %v12686_v34, -inf  ;;  %v12702_v46 = vadd.f32 %v6025_v15, %v5993_v57  ;;  %v6030_v4 = vld [vmem:[%s14548_s11 + $0x88] sm:$0xff] }
 0x628   : > { %6103 = vmax.xlane.f32.xlu0 %v6102_v41  ;;  %v5876_v5 = vpop.f32.mrb[39].mxu0  ;;  %v6000_v28 = vmul.f32 0.35355338, %v10199_v50  ;;  %v12698_v36 = vadd.f32 %v6026_v61, %v5994_v12  ;;  %v6031_v50 = vld [vmem:[%s14548_s11 + $0x90] sm:$0xff]  ;;  %v6040_v61 = vld [vmem:[%s14548_s11 + $0xd8] sm:$0xff] }
 0x629   : > { %v6123_v38 = vsel %vm6077_vm12, %v12682_v35, -inf  ;;  %v5998_v56 = vmul.f32 0.35355338, %v5876_v5  ;;  %v6114_v43 = vsel %vm6077_vm12, %v12702_v46, -inf  ;;  %v6029_v5 = vld [vmem:[%s14548_s11 + $0x80] sm:$0xff] }
 0x62a   : > { %v10208_v48 = vpop.f32.mrb[40].mxu1  ;;  %v6117_v62 = vsel %vm6077_vm12, %v12698_v36, -inf  ;;  %v12714_v47 = vadd.f32 %v6032_v10, %v6000_v28  ;;  %v6038_v10 = vld [vmem:[%s14548_s11 + $0xc8] sm:$0xff] }
 0x62b   : > { %v5950_v0 = vpop.f32.mrb[41].mxu1  ;;  %6100 = vmax.xlane.f32.xlu1 %v6099_v7  ;;  %v5997_v7 = vmul.f32 0.35355338, %v5873_v2  ;;  %v12728_v2 = vadd.f32 %v6030_v4, %v5998_v56  ;;  %v6036_v4 = vld [vmem:[%s14548_s11 + $0xb8] sm:$0xff] }
 0x62c   : > { %v10209_v21 = vpop.f32.mrb[42].mxu1  ;;  %6097 = vmax.xlane.f32.xlu0 %v6096_v14  ;;  %v12718_v14 = vadd.f32 %v6031_v50, %v5999_v18  ;;  %v6135_v12 = vsel %vm6077_vm12, %v12714_v47, -inf }
 0x62d   : > { %v5953_v32 = vpop.f32.mrb[43].mxu1  ;;  %v10202_v60 = vpop.f32.mrb[40].mxu0  ;;  %v6008_v42 = vmul.f32 0.35355338, %v10209_v21  ;;  %v6039_v21 = vld [vmem:[%s14548_s11 + $0xd0] sm:$0xff]  ;;  %v6129_v28 = vsel %vm6077_vm12, %v12728_v2, -inf }
 0x62e   : > { %v12678_v63 = vpop.f32.mrb[41].mxu0  ;;  %v6132_v57 = vsel %vm6077_vm12, %v12718_v14, -inf  ;;  %v6006_v15 = vmul.f32 0.35355338, %v5953_v32  ;;  %v6037_v32 = vld [vmem:[%s14548_s11 + $0xc0] sm:$0xff] }
 0x62f   : > { %6094 = vmax.xlane.f32.xlu1 %v6093_v23  ;;  %v10203_v55 = vpop.f32.mrb[42].mxu0  ;;  %v6007_v23 = vmul.f32 0.35355338, %v10208_v48  ;;  %v12742_v48 = vadd.f32 %v6040_v61, %v6008_v42  ;;  %v6034_v61 = vld [vmem:[%s14548_s11 + $0xa8] sm:$0xff] }
 0x630   : > { %6091 = vmax.xlane.f32.xlu0 %v6090_v37  ;;  %v5892_v52 = vpop.f32.mrb[43].mxu0  ;;  %v12732_v37 = vadd.f32 %v6029_v5, %v5997_v7  ;;  %v6004_v50 = vmul.f32 0.35355338, %v10203_v55  ;;  %v6035_v55 = vld [vmem:[%s14548_s11 + $0xb0] sm:$0xff] }
 0x631   : > { %v6159_v56 = vsel %vm6077_vm12, %v12742_v48, -inf  ;;  %v6002_v5 = vmul.f32 0.35355338, %v5892_v52  ;;  %v6033_v52 = vld [vmem:[%s14548_s11 + $0xa0] sm:$0xff] }
 0x632   : > { %v12694_v6 = vpop.f32.mrb[44].mxu1  ;;  %v6126_v18 = vsel %vm6077_vm12, %v12732_v37, -inf }
 0x633   : > { %v5966_v19 = vpop.f32.mrb[45].mxu1  ;;  %6124 = vmax.xlane.f32.xlu1 %v6123_v38  ;;  %v6005_v38 = vmul.f32 0.35355338, %v5950_v0  ;;  %v12756_v0 = vadd.f32 %v6038_v10, %v6006_v15  ;;  %v6042_v10 = vld [vmem:[%s14548_s11 + $0xe8] sm:$0xff] }
 0x634   : > { %v12707_v41 = vpop.f32.mrb[46].mxu1  ;;  %6121 = vmax.xlane.f32.xlu0 %v6120_v16  ;;  %v12746_v16 = vadd.f32 %v6039_v21, %v6007_v23 }
 0x635   : > { %v5969_v17 = vpop.f32.mrb[47].mxu1  ;;  %v6153_v42 = vsel %vm6077_vm12, %v12756_v0, -inf }
 0x636   : > { %v6156_v7 = vsel %vm6077_vm12, %v12746_v16, -inf  ;;  %v6010_v21 = vmul.f32 0.35355338, %v5969_v17  ;;  %v6041_v17 = vld [vmem:[%s14548_s11 + $0xe0] sm:$0xff] }
 0x637   : > { %6118 = vmax.xlane.f32.xlu1 %v6117_v62  ;;  %v6003_v62 = vmul.f32 0.35355338, %v10202_v60  ;;  %v12770_v60 = vadd.f32 %v6036_v4, %v6004_v50  ;;  %v6044_v4 = vld [vmem:[%s14548_s11 + $0xf8] sm:$0xff] }
 0x638   : > { %6115 = vmax.xlane.f32.xlu0 %v6114_v43  ;;  %v12760_v43 = vadd.f32 %v6037_v32, %v6005_v38  ;;  %v6012_v32 = vmul.f32 0.35355338, %v12707_v41  ;;  %v12800_v50 = vadd.f32 %v6042_v10, %v6010_v21  ;;  %v6043_v41 = vld [vmem:[%s14548_s11 + $0xf0] sm:$0xff] }
 0x639   : > { %v6147_v15 = vsel %vm6077_vm12, %v12770_v60, -inf }
 0x63a   : > { %v6150_v23 = vsel %vm6077_vm12, %v12760_v43, -inf }
 0x63b   : > { %6136 = vmax.xlane.f32.xlu1 %v6135_v12  ;;  %v6001_v12 = vmul.f32 0.35355338, %v12678_v63  ;;  %v12785_v63 = vadd.f32 %v6034_v61, %v6002_v5  ;;  %v12815_v5 = vadd.f32 %v6044_v4, %v6012_v32 }
 0x63c   : > { %6133 = vmax.xlane.f32.xlu0 %v6132_v57  ;;  %v12775_v57 = vadd.f32 %v6035_v55, %v6003_v62  ;;  %v6165_v55 = vsel %vm6077_vm12, %v12800_v50, -inf }
 0x63e   : > { %v6144_v38 = vsel %vm6077_vm12, %v12775_v57, -inf }
 0x63f   : > { %6130 = vmax.xlane.f32.xlu1 %v6129_v28  ;;  %v6009_v28 = vmul.f32 0.35355338, %v5966_v19  ;;  %v6141_v19 = vsel %vm6077_vm12, %v12785_v63, -inf }
 0x640   : > { %6127 = vmax.xlane.f32.xlu0 %v6126_v18  ;;  %v12789_v18 = vadd.f32 %v6033_v52, %v6001_v12  ;;  %v6171_v12 = vsel %vm6077_vm12, %v12815_v5, -inf }
 0x642   : > { %v6138_v62 = vsel %vm6077_vm12, %v12789_v18, -inf }
 0x643   : > { %6160 = vmax.xlane.f32.xlu1 %v6159_v56  ;;  %v6011_v56 = vmul.f32 0.35355338, %v12694_v6 }
 0x644   : > { %6157 = vmax.xlane.f32.xlu0 %v6156_v7  ;;  %v12805_v7 = vadd.f32 %v6041_v17, %v6009_v28 }
 0x646   : > { %v6162_v6 = vsel %vm6077_vm12, %v12805_v7, -inf }
 0x647   : > { %6154 = vmax.xlane.f32.xlu1 %v6153_v42  ;;  %v12819_v42 = vadd.f32 %v6043_v41, %v6011_v56 }
 0x648   : > { %6151 = vmax.xlane.f32.xlu0 %v6150_v23 }
 0x649   : > { %v6168_v23 = vsel %vm6077_vm12, %v12819_v42, -inf }
 0x64b   : > { %6148 = vmax.xlane.f32.xlu1 %v6147_v15 }
 0x64c   : > { %6145 = vmax.xlane.f32.xlu0 %v6144_v38 }
 0x64f   : > { %6142 = vmax.xlane.f32.xlu1 %v6141_v19 }
 0x650   : > { %6139 = vmax.xlane.f32.xlu0 %v6138_v62 }
 0x653   : > { %6166 = vmax.xlane.f32.xlu1 %v6165_v55 }
 0x654   : > { %6163 = vmax.xlane.f32.xlu0 %v6162_v6 }
 0x657   : > { %6172 = vmax.xlane.f32.xlu1 %v6171_v12 }
 0x658   : > { %6169 = vmax.xlane.f32.xlu0 %v6168_v23 }
 0x6a7   : > { %v6086_v61 = vpop.xlane.xlu0 %6085 }
 0x6a8   : > { %v6176_v52 = vsub.f32 %v12598_v58, %v6086_v61  ;;  %v6080_v21 = vpop.xlane.xlu1 %6079 }
 0x6a9   : > { %v6174_v15 = vsub.f32 %v12603_v27, %v6080_v21 }
 0x6aa   : > { %v6210_v28 = vmul.f32 1.442695, %v6176_v52 }
 0x6ab   : > { %v6206_v38 = vmul.f32 1.442695, %v6174_v15 }
 0x6ac   : > { %10384 = vpow2.f32 %v6210_v28  ;;  %v6089_v10 = vpop.xlane.xlu1 %6088 }
 0x6ad   : > { %v6110_v17 = vpop.xlane.xlu0 %6109  ;;  %v6177_v32 = vsub.f32 %v12612_v22, %v6089_v10  ;;  %10386 = vpow2.f32 %v6206_v38 }
 0x6ae   : > { %v6184_v19 = vsub.f32 %v12620_v33, %v6110_v17 }
 0x6af   : > { %v6212_v56 = vmul.f32 1.442695, %v6177_v32 }
 0x6b0   : > { %v6226_v62 = vmul.f32 1.442695, %v6184_v19  ;;  %v6113_v4 = vpop.xlane.xlu1 %6112 }
 0x6b1   : > { %10388 = vpow2.f32 %v6212_v56  ;;  %v6083_v41 = vpop.xlane.xlu0 %6082  ;;  %v6185_v58 = vsub.f32 %v12628_v1, %v6113_v4 }
 0x6b2   : > { %10390 = vpow2.f32 %v6226_v62  ;;  %v6175_v27 = vsub.f32 %v12626_v40, %v6083_v41 }
 0x6b3   : > { %v6228_v6 = vmul.f32 1.442695, %v6185_v58 }
 0x6b4   : > { %v6208_v55 = vmul.f32 1.442695, %v6175_v27  ;;  %v6107_v12 = vpop.xlane.xlu1 %6106 }
 0x6b5   : > { %v6104_v23 = vpop.xlane.xlu0 %6103  ;;  %v6183_v61 = vsub.f32 %v12638_v31, %v6107_v12 }
 0x6b6   : > { %v12832_v22 = vpop.eup %10384  ;;  %10392 = vpow2.f32 %v6208_v55  ;;  %v6182_v33 = vsub.f32 %v12642_v39, %v6104_v23 }
 0x6b7   : > { %v6276_v52 = vsel %vm6077_vm12, %v12832_v22, 0.0  ;;  %v12837_v21 = vpop.eup %10386  ;;  %10394 = vpow2.f32 %v6228_v6  ;;  %v6224_v15 = vmul.f32 1.442695, %v6183_v61 }
 0x6b8   : > { %v6222_v1 = vmul.f32 1.442695, %v6182_v33  ;;  %v6101_v40 = vpop.xlane.xlu1 %6100  ;;  %6277 = vadd.xlane.f32.xlu0 %v6276_v52  ;;  %v6270_v39 = vsel %vm6077_vm12, %v12837_v21, 0.0 }
 0x6b9   : > { %v6098_v28 = vpop.xlane.xlu0 %6097  ;;  %v6181_v38 = vsub.f32 %v12652_v8, %v6101_v40 }
 0x6ba   : > { %10396 = vpow2.f32 %v6222_v1  ;;  %v6180_v31 = vsub.f32 %v12656_v45, %v6098_v28 }
 0x6bb   : > { %v12841_v10 = vpop.eup %10388  ;;  %10398 = vpow2.f32 %v6224_v15  ;;  %v6220_v19 = vmul.f32 1.442695, %v6181_v38 }
 0x6bc   : > { %v12845_v17 = vpop.eup %10390  ;;  %v6218_v32 = vmul.f32 1.442695, %v6180_v31  ;;  %v6095_v56 = vpop.xlane.xlu1 %6094  ;;  %6271 = vadd.xlane.f32.xlu0 %v6270_v39  ;;  %v6279_v62 = vsel %vm6077_vm12, %v12841_v10, 0.0 }
 0x6bd   : > { %v6092_v4 = vpop.xlane.xlu0 %6091  ;;  %v6179_v8 = vsub.f32 %v12666_v11, %v6095_v56  ;;  %6280 = vadd.xlane.f32.xlu1 %v6279_v62  ;;  %v6300_v41 = vsel %vm6077_vm12, %v12845_v17, 0.0 }
 0x6be   : > { %10400 = vpow2.f32 %v6218_v32  ;;  %v6178_v45 = vsub.f32 %v12670_v44, %v6092_v4 }
 0x6bf   : > { %10402 = vpow2.f32 %v6220_v19  ;;  %v6216_v55 = vmul.f32 1.442695, %v6179_v8 }
 0x6c0   : > { %v12853_v58 = vpop.eup %10392  ;;  %v6214_v27 = vmul.f32 1.442695, %v6178_v45  ;;  %v6125_v6 = vpop.xlane.xlu1 %6124  ;;  %6301 = vadd.xlane.f32.xlu0 %v6300_v41 }
 0x6c1   : > { %v6122_v12 = vpop.xlane.xlu0 %6121  ;;  %v6189_v23 = vsub.f32 %v12682_v35, %v6125_v6  ;;  %v6273_v11 = vsel %vm6077_vm12, %v12853_v58, 0.0  ;;  %v12858_v61 = vpop.eup %10394 }
 0x6c2   : > { %10404 = vpow2.f32 %v6214_v27  ;;  %v6188_v44 = vsub.f32 %v12686_v34, %v6122_v12  ;;  %6274 = vadd.xlane.f32.xlu1 %v6273_v11  ;;  %v6303_v38 = vsel %vm6077_vm12, %v12858_v61, 0.0 }
 0x6c3   : > { %10406 = vpow2.f32 %v6216_v55  ;;  %v6236_v1 = vmul.f32 1.442695, %v6189_v23 }
 0x6c4   : > { %v12861_v33 = vpop.eup %10396  ;;  %v6234_v52 = vmul.f32 1.442695, %v6188_v44  ;;  %v6119_v15 = vpop.xlane.xlu1 %6118 }
 0x6c5   : > { %v6116_v40 = vpop.xlane.xlu0 %6115  ;;  %v6187_v28 = vsub.f32 %v12698_v36, %v6119_v15  ;;  %v6294_v35 = vsel %vm6077_vm12, %v12861_v33, 0.0  ;;  %v12868_v31 = vpop.eup %10398 }
 0x6c6   : > { %10408 = vpow2.f32 %v6234_v52  ;;  %v6186_v34 = vsub.f32 %v12702_v46, %v6116_v40  ;;  %6295 = vadd.xlane.f32.xlu0 %v6294_v35  ;;  %6304 = vadd.xlane.f32.xlu1 %v6303_v38  ;;  %v6297_v8 = vsel %vm6077_vm12, %v12868_v31, 0.0 }
 0x6c7   : > { %10410 = vpow2.f32 %v6236_v1  ;;  %v6232_v19 = vmul.f32 1.442695, %v6187_v28 }
 0x6c8   : > { %v12871_v39 = vpop.eup %10400  ;;  %v6230_v32 = vmul.f32 1.442695, %v6186_v34  ;;  %v6137_v56 = vpop.xlane.xlu1 %6136 }
 0x6c9   : > { %v6134_v36 = vpop.xlane.xlu0 %6133  ;;  %v6193_v62 = vsub.f32 %v12714_v47, %v6137_v56  ;;  %v6288_v4 = vsel %vm6077_vm12, %v12871_v39, 0.0  ;;  %v12878_v45 = vpop.eup %10402 }
 0x6ca   : > { %10412 = vpow2.f32 %v6230_v32  ;;  %v6192_v46 = vsub.f32 %v12718_v14, %v6134_v36  ;;  %6289 = vadd.xlane.f32.xlu0 %v6288_v4  ;;  %6298 = vadd.xlane.f32.xlu1 %v6297_v8  ;;  %v6291_v11 = vsel %vm6077_vm12, %v12878_v45, 0.0 }
 0x6cb   : > { %10414 = vpow2.f32 %v6232_v19  ;;  %v6244_v55 = vmul.f32 1.442695, %v6193_v62 }
 0x6cc   : > { %v12881_v41 = vpop.eup %10404  ;;  %v6242_v27 = vmul.f32 1.442695, %v6192_v46  ;;  %v6131_v6 = vpop.xlane.xlu1 %6130 }
 0x6cd   : > { %v6128_v47 = vpop.xlane.xlu0 %6127  ;;  %v6191_v12 = vsub.f32 %v12728_v2, %v6131_v6  ;;  %v6282_v23 = vsel %vm6077_vm12, %v12881_v41, 0.0  ;;  %v12888_v44 = vpop.eup %10406 }
 0x6ce   : > { %10416 = vpow2.f32 %v6242_v27  ;;  %v6190_v14 = vsub.f32 %v12732_v37, %v6128_v47  ;;  %6283 = vadd.xlane.f32.xlu0 %v6282_v23  ;;  %6292 = vadd.xlane.f32.xlu1 %v6291_v11  ;;  %v6285_v38 = vsel %vm6077_vm12, %v12888_v44, 0.0 }
 0x6cf   : > { %10418 = vpow2.f32 %v6244_v55  ;;  %v6240_v15 = vmul.f32 1.442695, %v6191_v12 }
 0x6d0   : > { %v12891_v52 = vpop.eup %10408  ;;  %v6238_v1 = vmul.f32 1.442695, %v6190_v14  ;;  %v6161_v40 = vpop.xlane.xlu1 %6160 }
 0x6d1   : > { %v6158_v2 = vpop.xlane.xlu0 %6157  ;;  %v6201_v28 = vsub.f32 %v12742_v48, %v6161_v40  ;;  %v6312_v35 = vsel %vm6077_vm12, %v12891_v52, 0.0  ;;  %v12898_v34 = vpop.eup %10410 }
 0x6d2   : > { %10420 = vpow2.f32 %v6238_v1  ;;  %v6200_v37 = vsub.f32 %v12746_v16, %v6158_v2  ;;  %6313 = vadd.xlane.f32.xlu0 %v6312_v35  ;;  %6286 = vadd.xlane.f32.xlu1 %v6285_v38  ;;  %v6315_v8 = vsel %vm6077_vm12, %v12898_v34, 0.0 }
 0x6d3   : > { %10422 = vpow2.f32 %v6240_v15  ;;  %v6260_v56 = vmul.f32 1.442695, %v6201_v28 }
 0x6d4   : > { %v12901_v32 = vpop.eup %10412  ;;  %v6258_v19 = vmul.f32 1.442695, %v6200_v37  ;;  %v6155_v36 = vpop.xlane.xlu1 %6154 }
 0x6d5   : > { %v6152_v48 = vpop.xlane.xlu0 %6151  ;;  %v6199_v62 = vsub.f32 %v12756_v0, %v6155_v36  ;;  %v6306_v4 = vsel %vm6077_vm12, %v12901_v32, 0.0  ;;  %v12908_v46 = vpop.eup %10414 }
 0x6d6   : > { %10424 = vpow2.f32 %v6258_v19  ;;  %v6198_v16 = vsub.f32 %v12760_v43, %v6152_v48  ;;  %6307 = vadd.xlane.f32.xlu0 %v6306_v4  ;;  %6316 = vadd.xlane.f32.xlu1 %v6315_v8  ;;  %v6309_v11 = vsel %vm6077_vm12, %v12908_v46, 0.0 }
 0x6d7   : > { %10426 = vpow2.f32 %v6260_v56  ;;  %v6256_v6 = vmul.f32 1.442695, %v6199_v62 }
 0x6d8   : > { %v12911_v27 = vpop.eup %10416  ;;  %v6254_v55 = vmul.f32 1.442695, %v6198_v16  ;;  %v6149_v47 = vpop.xlane.xlu1 %6148 }
 0x6d9   : > { %v6146_v0 = vpop.xlane.xlu0 %6145  ;;  %v6324_v12 = vsel %vm6077_vm12, %v12911_v27, 0.0  ;;  %v6197_v23 = vsub.f32 %v12770_v60, %v6149_v47  ;;  %v12918_v14 = vpop.eup %10418 }
 0x6da   : > { %10428 = vpow2.f32 %v6254_v55  ;;  %v6196_v43 = vsub.f32 %v12775_v57, %v6146_v0  ;;  %6325 = vadd.xlane.f32.xlu0 %v6324_v12  ;;  %6310 = vadd.xlane.f32.xlu1 %v6309_v11  ;;  %v6327_v38 = vsel %vm6077_vm12, %v12918_v14, 0.0 }
 0x6db   : > { %10430 = vpow2.f32 %v6256_v6  ;;  %v6252_v40 = vmul.f32 1.442695, %v6197_v23 }
 0x6dc   : > { %v12921_v1 = vpop.eup %10420  ;;  %v6250_v15 = vmul.f32 1.442695, %v6196_v43  ;;  %v6143_v2 = vpop.xlane.xlu1 %6142 }
 0x6dd   : > { %v6140_v28 = vpop.xlane.xlu0 %6139  ;;  %v6318_v60 = vsel %vm6077_vm12, %v12921_v1, 0.0  ;;  %v6195_v35 = vsub.f32 %v12785_v63, %v6143_v2  ;;  %v12928_v37 = vpop.eup %10422 }
 0x6de   : > { %10432 = vpow2.f32 %v6250_v15  ;;  %v6194_v57 = vsub.f32 %v12789_v18, %v6140_v28  ;;  %6319 = vadd.xlane.f32.xlu0 %v6318_v60  ;;  %6328 = vadd.xlane.f32.xlu1 %v6327_v38  ;;  %v6321_v8 = vsel %vm6077_vm12, %v12928_v37, 0.0 }
 0x6df   : > { %10434 = vpow2.f32 %v6252_v40  ;;  %v6248_v36 = vmul.f32 1.442695, %v6195_v35 }
 0x6e0   : > { %v12931_v19 = vpop.eup %10424  ;;  %v6246_v56 = vmul.f32 1.442695, %v6194_v57  ;;  %v6167_v48 = vpop.xlane.xlu1 %6166 }
 0x6e1   : > { %v6164_v62 = vpop.xlane.xlu0 %6163  ;;  %v6348_v63 = vsel %vm6077_vm12, %v12931_v19, 0.0  ;;  %v6203_v4 = vsub.f32 %v12800_v50, %v6167_v48  ;;  %v12938_v16 = vpop.eup %10426 }
 0x6e2   : > { %10436 = vpow2.f32 %v6246_v56  ;;  %v6202_v18 = vsub.f32 %v12805_v7, %v6164_v62  ;;  %6349 = vadd.xlane.f32.xlu0 %v6348_v63  ;;  %6322 = vadd.xlane.f32.xlu1 %v6321_v8  ;;  %v6351_v11 = vsel %vm6077_vm12, %v12938_v16, 0.0 }
 0x6e3   : > { %10438 = vpow2.f32 %v6248_v36  ;;  %v6264_v47 = vmul.f32 1.442695, %v6203_v4 }
 0x6e4   : > { %v12941_v55 = vpop.eup %10428  ;;  %v6262_v6 = vmul.f32 1.442695, %v6202_v18  ;;  %v6173_v0 = vpop.xlane.xlu1 %6172 }
 0x6e5   : > { %v6170_v12 = vpop.xlane.xlu0 %6169  ;;  %v6342_v50 = vsel %vm6077_vm12, %v12941_v55, 0.0  ;;  %v6205_v23 = vsub.f32 %v12815_v5, %v6173_v0  ;;  %v12948_v43 = vpop.eup %10430  ;;  %v9814_v0 = vld [vmem:[%s14549_s12 + $0x40] sm:$0xff] }
 0x6e6   : > { %10440 = vpow2.f32 %v6262_v6  ;;  %v6204_v7 = vsub.f32 %v12819_v42, %v6170_v12  ;;  %6343 = vadd.xlane.f32.xlu0 %v6342_v50  ;;  %6352 = vadd.xlane.f32.xlu1 %v6351_v11  ;;  %v6345_v5 = vsel %vm6077_vm12, %v12948_v43, 0.0  ;;  %v9816_v12 = vld [vmem:[%s14549_s12 + $0x50] sm:$0xff]  ;;  %v9828_v50 = vld [vmem:[%s14549_s12 + $0xa0] sm:$0xff]  ;;  %v8003_v11 = vld [vmem:[%s14549_s12 + $0x8] sm:$0xff] }
 0x6e7   : > { %10442 = vpow2.f32 %v6264_v47  ;;  %v6268_v2 = vmul.f32 1.442695, %v6205_v23  ;;  %v9815_v47 = vld [vmem:[%s14549_s12 + $0x48] sm:$0xff]  ;;  %v9817_v23 = vld [vmem:[%s14549_s12 + $0x58] sm:$0xff] }
 0x6e8   : > { %v12951_v15 = vpop.eup %10432  ;;  %v6266_v40 = vmul.f32 1.442695, %v6204_v7  ;;  %v9818_v7 = vld [vmem:[%s14549_s12 + $0x60] sm:$0xff] }
 0x6e9   : > { %v6336_v28 = vsel %vm6077_vm12, %v12951_v15, 0.0  ;;  %v12957_v60 = vpop.eup %10434 }
 0x6ea   : > { %10444 = vpow2.f32 %v6266_v40  ;;  %6337 = vadd.xlane.f32.xlu0 %v6336_v28  ;;  %6346 = vadd.xlane.f32.xlu1 %v6345_v5  ;;  %v6339_v38 = vsel %vm6077_vm12, %v12957_v60, 0.0  ;;  %v9845_v40 = vld [vmem:[%s14549_s12 + $0x108] sm:$0xff]  ;;  %v8004_v28 = vld [vmem:[%s14549_s12 + $0x10] sm:$0xff] }
 0x6eb   : > { %10446 = vpow2.f32 %v6268_v2  ;;  %v9824_v2 = vld [vmem:[%s14549_s12 + $0x80] sm:$0xff]  ;;  %v9825_v5 = vld [vmem:[%s14549_s12 + $0x88] sm:$0xff] }
 0x6ec   : > { %v12959_v35 = vpop.eup %10436 }
 0x6ed   : > { %v6330_v42 = vsel %vm6077_vm12, %v12959_v35, 0.0  ;;  %v12965_v57 = vpop.eup %10438 }
 0x6ee   : > { %6331 = vadd.xlane.f32.xlu0 %v6330_v42  ;;  %6340 = vadd.xlane.f32.xlu1 %v6339_v38  ;;  %v6333_v48 = vsel %vm6077_vm12, %v12965_v57, 0.0  ;;  %v9847_v42 = vld [vmem:[%s14549_s12 + $0x118] sm:$0xff]  ;;  %v9826_v38 = vld [vmem:[%s14549_s12 + $0x90] sm:$0xff] }
 0x6f0   : > { %v12967_v56 = vpop.eup %10440 }
 0x6f1   : > { %v6354_v36 = vsel %vm6077_vm12, %v12967_v56, 0.0  ;;  %v12973_v62 = vpop.eup %10442 }
 0x6f2   : > { %6355 = vadd.xlane.f32.xlu0 %v6354_v36  ;;  %6334 = vadd.xlane.f32.xlu1 %v6333_v48  ;;  %v6357_v8 = vsel %vm6077_vm12, %v12973_v62, 0.0  ;;  %v9819_v36 = vld [vmem:[%s14549_s12 + $0x68] sm:$0xff]  ;;  %v9827_v48 = vld [vmem:[%s14549_s12 + $0x98] sm:$0xff] }
 0x6f4   : > { %v12975_v63 = vpop.eup %10444 }
 0x6f5   : > { %v6360_v4 = vsel %vm6077_vm12, %v12975_v63, 0.0  ;;  %v12981_v18 = vpop.eup %10446 }
 0x6f6   : > { %6361 = vadd.xlane.f32.xlu0 %v6360_v4  ;;  %6358 = vadd.xlane.f32.xlu1 %v6357_v8  ;;  %v6363_v6 = vsel %vm6077_vm12, %v12981_v18, 0.0  ;;  %v9854_v4 = vld [vmem:[%s14549_s12 + $0x140] sm:$0xff] }
 0x6f7   : > { %v8002_v8 = vld [vmem:[%s14549_s12] sm:$0xff] }
 0x6fa   : > { %6364 = vadd.xlane.f32.xlu1 %v6363_v6  ;;  %v9856_v6 = vld [vmem:[%s14549_s12 + $0x150] sm:$0xff] }
 0x70b   : > { %8096 = vperm.xlu1 %10343, %v9815_v47   ;;  %v9844_v47 = vld [vmem:[%s14549_s12 + $0x100] sm:$0xff] }
 0x70c   : > { %8092 = vperm.xlu0 %10342, %v9814_v0   ;;  %v9857_v0 = vld [vmem:[%s14549_s12 + $0x158] sm:$0xff] }
 0x70f   : > { %8100 = vperm.xlu1 %10343, %v9816_v12   ;;  %v9846_v12 = vld [vmem:[%s14549_s12 + $0x110] sm:$0xff] }
 0x710   : > { %8242 = vperm.xlu0 %10342, %v9828_v50   ;;  %v9829_v50 = vld [vmem:[%s14549_s12 + $0xa8] sm:$0xff] }
 0x713   : > { %8104 = vperm.xlu1 %10343, %v9817_v23   ;;  %v8005_v23 = vld [vmem:[%s14549_s12 + $0x18] sm:$0xff] }
 0x714   : > { %8017 = vperm.xlu0 %10342, %v8003_v11   ;;  %v9834_v11 = vld [vmem:[%s14549_s12 + $0xc0] sm:$0xff] }
 0x717   : > { %8108 = vperm.xlu1 %10343, %v9818_v7   ;;  %v9848_v7 = vld [vmem:[%s14549_s12 + $0x120] sm:$0xff] }
 0x718   : > { %8446 = vperm.xlu0 %10342, %v9845_v40   ;;  %v9831_v40 = vld [vmem:[%s14549_s12 + $0xb8] sm:$0xff] }
 0x71b   : > { %8226 = vperm.xlu1 %10343, %v9824_v2   ;;  %v9820_v2 = vld [vmem:[%s14549_s12 + $0x70] sm:$0xff] }
 0x71c   : > { %8022 = vperm.xlu0 %10342, %v8004_v28   ;;  %v9837_v28 = vld [vmem:[%s14549_s12 + $0xd8] sm:$0xff] }
 0x71f   : > { %8230 = vperm.xlu1 %10343, %v9825_v5   ;;  %v9855_v5 = vld [vmem:[%s14549_s12 + $0x148] sm:$0xff] }
 0x720   : > { %8454 = vperm.xlu0 %10342, %v9847_v42   ;;  %v9875_v42 = vld [vmem:[%s14549_s12 + $0x1c8] sm:$0xff] }
 0x723   : > { %8234 = vperm.xlu1 %10343, %v9826_v38   ;;  %v9821_v38 = vld [vmem:[%s14549_s12 + $0x78] sm:$0xff] }
 0x724   : > { %8112 = vperm.xlu0 %10342, %v9819_v36  }
 0x727   : > { %8238 = vperm.xlu1 %10343, %v9827_v48   ;;  %v9877_v48 = vld [vmem:[%s14549_s12 + $0x1d8] sm:$0xff] }
 0x728   : > { %8575 = vperm.xlu0 %10342, %v9854_v4   ;;  %v9858_v4 = vld [vmem:[%s14549_s12 + $0x160] sm:$0xff] }
 0x72b   : > { %8012 = vperm.xlu1 %10343, %v8002_v8  }
 0x72c   : > { %8583 = vperm.xlu0 %10342, %v9856_v6   ;;  %v8006_v6 = vld [vmem:[%s14549_s12 + $0x20] sm:$0xff] }
 0x72f   : > { %8442 = vperm.xlu1 %10343, %v9844_v47  }
 0x730   : > { %8587 = vperm.xlu0 %10342, %v9857_v0   ;;  %v9830_v0 = vld [vmem:[%s14549_s12 + $0xb0] sm:$0xff] }
 0x733   : > { %8450 = vperm.xlu1 %10343, %v9846_v12  }
 0x734   : > { %8246 = vperm.xlu0 %10342, %v9829_v50   ;;  %v9849_v50 = vld [vmem:[%s14549_s12 + $0x128] sm:$0xff] }
 0x737   : > { %8027 = vperm.xlu1 %10343, %v8005_v23  }
 0x738   : > { %8361 = vperm.xlu0 %10342, %v9834_v11   ;;  %v9835_v11 = vld [vmem:[%s14549_s12 + $0xc8] sm:$0xff] }
 0x73b   : > { %8458 = vperm.xlu1 %10343, %v9848_v7   ;;  %v9884_v7 = vld [vmem:[%s14549_s12 + $0x200] sm:$0xff] }
 0x73c   : > { %8254 = vperm.xlu0 %10342, %v9831_v40  }
 0x73f   : > { %8116 = vperm.xlu1 %10343, %v9820_v2  }
 0x740   : > { %8376 = vperm.xlu0 %10342, %v9837_v28   ;;  %v9836_v28 = vld [vmem:[%s14549_s12 + $0xd0] sm:$0xff] }
 0x743   : > { %8579 = vperm.xlu1 %10343, %v9855_v5   ;;  %v9886_v5 = vld [vmem:[%s14549_s12 + $0x210] sm:$0xff] }
 0x744   : > { %8793 = vperm.xlu0 %10342, %v9875_v42  }
 0x745   : > { %v6278_v36 = vpop.xlane.xlu0 %6277 }
 0x747   : > { %8120 = vperm.xlu1 %10343, %v9821_v38  }
 0x748   : > { %8801 = vperm.xlu0 %10342, %v9877_v48  }
 0x749   : > { %v6272_v8 = vpop.xlane.xlu0 %6271 }
 0x74a   : > { %v6281_v47 = vpop.xlane.xlu1 %6280 }
 0x74b   : > { %8591 = vperm.xlu1 %10343, %v9858_v4   ;;  %10448 = vrcp.f32 %v6281_v47  ;;  %v9874_v4 = vld [vmem:[%s14549_s12 + $0x1c0] sm:$0xff] }
 0x74c   : > { %8032 = vperm.xlu0 %10342, %v8006_v6   ;;  %10450 = vrcp.f32 %v6272_v8  ;;  %v8009_v6 = vld [vmem:[%s14549_s12 + $0x38] sm:$0xff] }
 0x74d   : > { %v6302_v12 = vpop.xlane.xlu0 %6301  ;;  %10452 = vrcp.f32 %v6278_v36 }
 0x74f   : > { %v6275_v23 = vpop.xlane.xlu1 %6274  ;;  %8250 = vperm.xlu1 %10343, %v9830_v0  }
 0x750   : > { %8462 = vperm.xlu0 %10342, %v9849_v50   ;;  %10454 = vrcp.f32 %v6275_v23 }
 0x753   : > { %v6296_v40 = vpop.xlane.xlu0 %6295  ;;  %v6305_v2 = vpop.xlane.xlu1 %6304  ;;  %8366 = vperm.xlu1 %10343, %v9835_v11  }
 0x754   : > { %8922 = vperm.xlu0 %10342, %v9884_v7   ;;  %10456 = vrcp.f32 %v6305_v2  ;;  %v9887_v2 = vld [vmem:[%s14549_s12 + $0x218] sm:$0xff] }
 0x755   : > { %v10449_v42 = vpop.eup %10448  ;;  %10458 = vrcp.f32 %v6296_v40  ;;  %v9876_v40 = vld [vmem:[%s14549_s12 + $0x1d0] sm:$0xff] }
 0x756   : > { %v10451_v48 = vpop.eup %10450  ;;  %10460 = vrcp.f32 %v6302_v12  ;;  %v6401_v0 = vmul.f32 %v10449_v42, %v12841_v10 }
 0x757   : > { %v6290_v38 = vpop.xlane.xlu0 %6289  ;;  %v6299_v36 = vpop.xlane.xlu1 %6298  ;;  %8371 = vperm.xlu1 %10343, %v9836_v28   ;;  %v6398_v11 = vmul.f32 %v10451_v48, %v12837_v21 }
 0x758   : > { %8930 = vperm.xlu0 %10342, %v9886_v5   ;;  %v10453_v8 = vpop.eup %10452  ;;  %10462 = vrcp.f32 %v6299_v36  ;;  %v9859_v36 = vld [vmem:[%s14549_s12 + $0x168] sm:$0xff] }
 0x759   : > { %v6400_v7 = vmul.f32 %v10453_v8, %v12832_v22  ;;  %v9878_v22 = vld [vmem:[%s14549_s12 + $0x1e0] sm:$0xff] }
 0x75a   : > { %v10455_v47 = vpop.eup %10454 }
 0x75b   : > { %v6284_v50 = vpop.xlane.xlu0 %6283  ;;  %v6293_v23 = vpop.xlane.xlu1 %6292  ;;  %8789 = vperm.xlu1 %10343, %v9874_v4   ;;  %v6399_v12 = vmul.f32 %v10455_v47, %v12853_v58  ;;  %v6431_v10 = vpack.c.bf16 %v6401_v0, %v6400_v7 }
 0x75c   : > { %8047 = vperm.xlu0 %10342, %v8009_v6   ;;  %10464 = vrcp.f32 %v6293_v23  ;;  %v9864_v23 = vld [vmem:[%s14549_s12 + $0x180] sm:$0xff] }
 0x75d   : > { %v6430_v28 = vpack.c.bf16 %v6399_v12, %v6398_v11  ;;  %10466 = vrcp.f32 %v6284_v50 }
 0x75e   : > { %v10457_v58 = vpop.eup %10456  ;;  %10468 = vrcp.f32 %v6290_v38 }
 0x75f   : > { %v6314_v5 = vpop.xlane.xlu0 %6313  ;;  %10216 = vmatprep.mubr.msk.bf16.mxu0 %vm6077_vm12, %v6430_v28  ;;  %v6287_v21 = vpop.xlane.xlu1 %6286  ;;  %8797 = vperm.xlu1 %10343, %v9876_v40   ;;  %v6409_v8 = vmul.f32 %v10457_v58, %v12858_v61  ;;  %v9861_v40 = vld [vmem:[%s14549_s12 + $0x178] sm:$0xff] }
 0x760   : > { %8934 = vperm.xlu0 %10342, %v9887_v2   ;;  %10217 = vmatmul.mubr.msk.bf16.vlgmr.msra.gmra.mrb[44].mxu0 %vm6077_vm12, %v6431_v10  ;;  %v10459_v42 = vpop.eup %10458  ;;  %10470 = vrcp.f32 %v6287_v21 }
 0x761   : > { %10235 = vmatpush3.bf16.msra.mxu0 %v12586_v25  ;;  %v10461_v48 = vpop.eup %10460  ;;  %v6406_v47 = vmul.f32 %v10459_v42, %v12861_v33  ;;  %v8007_v25 = vld [vmem:[%s14549_s12 + $0x28] sm:$0xff] }
 0x762   : > { %v10463_v4 = vpop.eup %10462  ;;  %v6408_v50 = vmul.f32 %v10461_v48, %v12845_v17  ;;  %v9850_v17 = vld [vmem:[%s14549_s12 + $0x130] sm:$0xff]  ;;  %v9885_v42 = vld [vmem:[%s14549_s12 + $0x208] sm:$0xff] }
 0x763   : > { %v6308_v38 = vpop.xlane.xlu0 %6307  ;;  %v6317_v6 = vpop.xlane.xlu1 %6316  ;;  %8805 = vperm.xlu1 %10343, %v9878_v22   ;;  %v6407_v0 = vmul.f32 %v10463_v4, %v12868_v31 }
 0x764   : > { %8595 = vperm.xlu0 %10342, %v9859_v36   ;;  %10472 = vrcp.f32 %v6317_v6  ;;  %v6435_v11 = vpack.c.bf16 %v6409_v8, %v6408_v50  ;;  %v9867_v36 = vld [vmem:[%s14549_s12 + $0x198] sm:$0xff] }
 0x765   : > { %v6434_v61 = vpack.c.bf16 %v6407_v0, %v6406_v47  ;;  %10474 = vrcp.f32 %v6308_v38 }
 0x766   : > { %v10465_v33 = vpop.eup %10464  ;;  %10476 = vrcp.f32 %v6314_v5 }
 0x767   : > { %v6326_v12 = vpop.xlane.xlu0 %6325  ;;  %v6311_v7 = vpop.xlane.xlu1 %6310  ;;  %8037 = vperm.xlu1 %10343, %v8007_v25   ;;  %10226 = vmatprep.mubr.msk.bf16.mxu1 %vm6077_vm12, %v6434_v61  ;;  %v6405_v21 = vmul.f32 %v10465_v33, %v12878_v45 }
 0x768   : > { %8708 = vperm.xlu0 %10342, %v9864_v23   ;;  %v10467_v31 = vpop.eup %10466  ;;  %10478 = vrcp.f32 %v6311_v7  ;;  %10227 = vmatmul.mubr.msk.bf16.vlgmr.msra.gmra.mrb[48].mxu1 %vm6077_vm12, %v6435_v11  ;;  %v9851_v11 = vld [vmem:[%s14549_s12 + $0x138] sm:$0xff] }
 0x769   : > { %v10469_v2 = vpop.eup %10468  ;;  %10245 = vmatpush3.bf16.msra.mxu1 %v12592_v59  ;;  %v6402_v58 = vmul.f32 %v10467_v31, %v12881_v41 }
 0x76a   : > { %v10471_v28 = vpop.eup %10470  ;;  %v6404_v59 = vmul.f32 %v10469_v2, %v12871_v39  ;;  %v9839_v39 = vld [vmem:[%s14549_s12 + $0xe8] sm:$0xff] }
 0x76b   : > { %v6320_v10 = vpop.xlane.xlu0 %6319  ;;  %v6329_v5 = vpop.xlane.xlu1 %6328  ;;  %8466 = vperm.xlu1 %10343, %v9850_v17   ;;  %v6403_v22 = vmul.f32 %v10471_v28, %v12888_v44  ;;  %v8008_v44 = vld [vmem:[%s14549_s12 + $0x30] sm:$0xff] }
 0x76c   : > { %8603 = vperm.xlu0 %10342, %v9861_v40   ;;  %10480 = vrcp.f32 %v6329_v5  ;;  %v6433_v8 = vpack.c.bf16 %v6405_v21, %v6404_v59  ;;  %v9889_v59 = vld [vmem:[%s14549_s12 + $0x228] sm:$0xff] }
 0x76d   : > { %v6432_v48 = vpack.c.bf16 %v6403_v22, %v6402_v58  ;;  %10482 = vrcp.f32 %v6320_v10 }
 0x76e   : > { %v10473_v41 = vpop.eup %10472  ;;  %10484 = vrcp.f32 %v6326_v12  ;;  %v9841_v12 = vld [vmem:[%s14549_s12 + $0xf8] sm:$0xff] }
 0x76f   : > { %v6350_v4 = vpop.xlane.xlu0 %6349  ;;  %v6323_v45 = vpop.xlane.xlu1 %6322  ;;  %8926 = vperm.xlu1 %10343, %v9885_v42   ;;  %10220 = vmatprep.mubr.msk.bf16.mxu0 %vm6077_vm12, %v6432_v48  ;;  %v6413_v50 = vmul.f32 %v10473_v41, %v12898_v34  ;;  %v9860_v42 = vld [vmem:[%s14549_s12 + $0x170] sm:$0xff] }
 0x770   : > { %8723 = vperm.xlu0 %10342, %v9867_v36   ;;  %v10475_v38 = vpop.eup %10474  ;;  %10486 = vrcp.f32 %v6323_v45  ;;  %10221 = vmatmul.mubr.msk.bf16.gmra.mrb[48].mxu0 %vm6077_vm12, %v6433_v8  ;;  %v9891_v8 = vld [vmem:[%s14549_s12 + $0x238] sm:$0xff] }
 0x771   : > { %v10477_v6 = vpop.eup %10476  ;;  %v6410_v23 = vmul.f32 %v10475_v38, %v12901_v32 }
 0x772   : > { %v10479_v47 = vpop.eup %10478  ;;  %v6412_v7 = vmul.f32 %v10477_v6, %v12891_v52  ;;  %v9880_v52 = vld [vmem:[%s14549_s12 + $0x1f0] sm:$0xff] }
 0x773   : > { %v6344_v0 = vpop.xlane.xlu0 %6343  ;;  %v6353_v25 = vpop.xlane.xlu1 %6352  ;;  %8042 = vperm.xlu1 %10343, %v8008_v44   ;;  %v6411_v61 = vmul.f32 %v10479_v47, %v12908_v46  ;;  %v9888_v46 = vld [vmem:[%s14549_s12 + $0x220] sm:$0xff] }
 0x774   : > { %8386 = vperm.xlu0 %10342, %v9839_v39   ;;  %10488 = vrcp.f32 %v6353_v25  ;;  %v6437_v31 = vpack.c.bf16 %v6413_v50, %v6412_v7  ;;  %v9866_v25 = vld [vmem:[%s14549_s12 + $0x190] sm:$0xff] }
 0x775   : > { %v6436_v33 = vpack.c.bf16 %v6411_v61, %v6410_v23  ;;  %10490 = vrcp.f32 %v6344_v0 }
 0x776   : > { %v10481_v32 = vpop.eup %10480  ;;  %10492 = vrcp.f32 %v6350_v4 }
 0x777   : > { %v6338_v17 = vpop.xlane.xlu0 %6337  ;;  %v6347_v34 = vpop.xlane.xlu1 %6346  ;;  %8470 = vperm.xlu1 %10343, %v9851_v11   ;;  %10230 = vmatprep.mubr.msk.bf16.mxu1 %vm6077_vm12, %v6436_v33  ;;  %v6417_v10 = vmul.f32 %v10481_v32, %v12918_v14 }
 0x778   : > { %8396 = vperm.xlu0 %10342, %v9841_v12   ;;  %v10483_v40 = vpop.eup %10482  ;;  %10494 = vrcp.f32 %v6347_v34  ;;  %10231 = vmatmul.mubr.msk.bf16.gmra.mrb[52].mxu1 %vm6077_vm12, %v6437_v31 }
 0x779   : > { %v10485_v2 = vpop.eup %10484  ;;  %v6414_v58 = vmul.f32 %v10483_v40, %v12921_v1 }
 0x77a   : > { %v10487_v28 = vpop.eup %10486  ;;  %v6416_v36 = vmul.f32 %v10485_v2, %v12911_v27  ;;  %v9865_v27 = vld [vmem:[%s14549_s12 + $0x188] sm:$0xff]  ;;  %v9840_v2 = vld [vmem:[%s14549_s12 + $0xf0] sm:$0xff] }
 0x77b   : > { %v6332_v5 = vpop.xlane.xlu0 %6331  ;;  %v6341_v21 = vpop.xlane.xlu1 %6340  ;;  %8938 = vperm.xlu1 %10343, %v9888_v46   ;;  %v6415_v22 = vmul.f32 %v10487_v28, %v12928_v37 }
 0x77c   : > { %8813 = vperm.xlu0 %10342, %v9880_v52   ;;  %10496 = vrcp.f32 %v6341_v21  ;;  %v6439_v48 = vpack.c.bf16 %v6417_v10, %v6416_v36 }
 0x77d   : > { %v6438_v14 = vpack.c.bf16 %v6415_v22, %v6414_v58  ;;  %10498 = vrcp.f32 %v6332_v5  ;;  %v14633_v5 = vrot.slane %v11652_v3, 7  ;;  %v13245_v3 = vld [vmem:[%s14550_s13 + $0x1] ss:$0 sm:$0xff] }
 0x77e   : > { %v10489_v1 = vpop.eup %10488  ;;  %10500 = vrcp.f32 %v6338_v17 }
 0x77f   : > { %v6356_v4 = vpop.xlane.xlu0 %6355  ;;  %v6335_v45 = vpop.xlane.xlu1 %6334  ;;  %8599 = vperm.xlu1 %10343, %v9860_v42   ;;  %10236 = vmatprep.mubr.msk.bf16.mxu0 %vm6077_vm12, %v6438_v14  ;;  %v6425_v38 = vmul.f32 %v10489_v1, %v12938_v16  ;;  %v9869_v16 = vld [vmem:[%s14549_s12 + $0x1a8] sm:$0xff]  ;;  %v13234_v21 = vsel %vm7975_vm11, 0.0, %v14633_v5 }
 0x780   : > { %8942 = vperm.xlu0 %10342, %v9889_v59   ;;  %v10491_v37 = vpop.eup %10490  ;;  %10502 = vrcp.f32 %v6335_v45  ;;  %10237 = vmatmul.mubr.msk.bf16.vlgmr.msra.gmra.mrb[52].mxu0 %vm6077_vm12, %v6439_v48 }
 0x781   : > { %v10493_v41 = vpop.eup %10492  ;;  %10504 = vrcp.f32 %v6356_v4  ;;  %v6422_v47 = vmul.f32 %v10491_v37, %v12941_v55  ;;  %v9838_v55 = vld [vmem:[%s14549_s12 + $0xe0] sm:$0xff]  ;;  %v9879_v4 = vld [vmem:[%s14549_s12 + $0x1e8] sm:$0xff] }
 0x782   : > { %v10495_v44 = vpop.eup %10494  ;;  %v6424_v50 = vmul.f32 %v10493_v41, %v12931_v19 }
 0x783   : > { %v6362_v39 = vpop.xlane.xlu0 %6361  ;;  %v6359_v6 = vpop.xlane.xlu1 %6358  ;;  %8713 = vperm.xlu1 %10343, %v9865_v27   ;;  %v6423_v0 = vmul.f32 %v10495_v44, %v12948_v43  ;;  %v9871_v43 = vld [vmem:[%s14549_s12 + $0x1b8] sm:$0xff] }
 0x784   : > { %8950 = vperm.xlu0 %10342, %v9891_v8   ;;  %10506 = vrcp.f32 %v6359_v6  ;;  %v6443_v61 = vpack.c.bf16 %v6425_v38, %v6424_v50  ;;  %v9881_v6 = vld [vmem:[%s14549_s12 + $0x1f8] sm:$0xff] }
 0x785   : > { %10508 = vrcp.f32 %v6362_v39  ;;  %v6442_v23 = vpack.c.bf16 %v6423_v0, %v6422_v47  ;;  %v13270_v0 = vld [vmem:[%s14550_s13] ss:$0 sm:$0xff] }
 0x786   : > { %v10497_v12 = vpop.eup %10496 }
 0x787   : > { %v6365_v11 = vpop.xlane.xlu1 %6364  ;;  %8718 = vperm.xlu1 %10343, %v9866_v25   ;;  %10246 = vmatprep.mubr.msk.bf16.mxu1 %vm6077_vm12, %v6442_v23  ;;  %v10499_v19 = vpop.eup %10498  ;;  %v6421_v31 = vmul.f32 %v10497_v12, %v12957_v60 }
 0x788   : > { %8733 = vperm.xlu0 %10342, %v9869_v16   ;;  %10510 = vrcp.f32 %v6365_v11  ;;  %10247 = vmatmul.mubr.msk.bf16.vlgmr.msra.gmra.mrb[56].mxu1 %vm6077_vm12, %v6443_v61  ;;  %v10501_v7 = vpop.eup %10500  ;;  %v6418_v40 = vmul.f32 %v10499_v19, %v12959_v35 }
 0x789   : > { %v6420_v10 = vmul.f32 %v10501_v7, %v12951_v15 }
 0x78a   : > { %v10503_v33 = vpop.eup %10502 }
 0x78b   : > { %v13221_v17 = vpop.permute.xlu0 %8092  ;;  %v8097_v34 = vpop.permute.xlu1 %8096  ;;  %8381 = vperm.xlu1 %10343, %v9838_v55   ;;  %v6419_v52 = vmul.f32 %v10503_v33, %v12965_v57  ;;  %v6441_v36 = vpack.c.bf16 %v6421_v31, %v6420_v10  ;;  %v9890_v55 = vld [vmem:[%s14549_s12 + $0x230] sm:$0xff] }
 0x78c   : > { %v8122_v32 = vrot.slane %v13221_v17, 7  ;;  %8743 = vperm.xlu0 %10342, %v9871_v43   ;;  %v8123_v46 = vrot.slane %v8097_v34, 7  ;;  %v10505_v28 = vpop.eup %10504 }
 0x78d   : > { %v6440_v58 = vpack.c.bf16 %v6419_v52, %v6418_v40  ;;  %v6426_v14 = vmul.f32 %v10505_v28, %v12967_v56  ;;  %v9868_v28 = vld [vmem:[%s14549_s12 + $0x1a0] sm:$0xff] }
 0x78e   : > { %v8124_v60 = vsel %vm7975_vm11, %v8122_v32, %v8123_v46  ;;  %v10507_v35 = vpop.eup %10506 }
 0x78f   : > { %v8147_v57 = vmul.f32 %v8124_v60, %v13234_v21  ;;  %v13240_v22 = vpop.permute.xlu0 %8242  ;;  %v8101_v42 = vpop.permute.xlu1 %8100  ;;  %8391 = vperm.xlu1 %10343, %v9840_v2   ;;  %10240 = vmatprep.mubr.msk.bf16.mxu0 %vm6077_vm12, %v6440_v58  ;;  %v6427_v48 = vmul.f32 %v10507_v35, %v12973_v62  ;;  %v13300_v58 = vld [vmem:[%s14550_s13 + $0x2] ss:$0 sm:$0xff] }
 0x790   : > { %v10509_v59 = vpop.eup %10508  ;;  %v8125_v15 = vrot.slane %v8101_v42, 7  ;;  %10241 = vmatmul.mubr.msk.bf16.gmra.mrb[56].mxu0 %vm6077_vm12, %v6441_v36  ;;  %v8264_v17 = vrot.slane %v13240_v22, 6 }
 0x791   : > { %v6444_v27 = vpack.c.bf16 %v6427_v48, %v6426_v14  ;;  %v13256_v37 = vmul.f32 %v13245_v3, %v8147_v57  ;;  %v6428_v56 = vmul.f32 %v10509_v59, %v12975_v63  ;;  %v9870_v14 = vld [vmem:[%s14549_s12 + $0x1b0] sm:$0xff] }
 0x792   : > { %v10511_v45 = vpop.eup %10510  ;;  %v8126_v1 = vsel %vm7975_vm11, %v8123_v46, %v8125_v15 }
 0x793   : > { %v8148_v8 = vmul.f32 %v8126_v1, %v11666_v53  ;;  %v8018_v41 = vpop.permute.xlu0 %8017  ;;  %v8105_v44 = vpop.permute.xlu1 %8104  ;;  %8809 = vperm.xlu1 %10343, %v9879_v4   ;;  %v6429_v62 = vmul.f32 %v10511_v45, %v12981_v18  ;;  %10250 = vmatprep.mubr.msk.bf16.mxu1 %vm6077_vm12, %v6444_v27  ;;  %v8183_v18 = vrot.slane %v13256_v37, 1  ;;  %v8146_v45 = vmul.f32 0.0, %v8122_v32 }
 0x794   : > { %v8051_v38 = vmul.f32 %v8018_v41, %v13234_v21  ;;  %v8127_v39 = vrot.slane %v8105_v44, 7 }
 0x795   : > { %v8165_v47 = vmul.f32 %v13245_v3, %v8148_v8  ;;  %v6445_v25 = vpack.c.bf16 %v6429_v62, %v6428_v56 }
 0x796   : > { %v8128_v63 = vsel %vm7975_vm11, %v8125_v15, %v8127_v39  ;;  %v8066_v11 = vmul.f32 %v13270_v0, %v8051_v38 }
 0x797   : > { %v8185_v50 = vrot.slane %v8165_v47, 1  ;;  %v8149_v16 = vmul.f32 %v8128_v63, %v11669_v54  ;;  %v13275_v23 = vpop.permute.xlu0 %8446  ;;  %10251 = vmatmul.mubr.msk.bf16.gmra.mrb[60].mxu1 %vm6077_vm12, %v6445_v25  ;;  %v8109_v61 = vpop.permute.xlu1 %8108  ;;  %8817 = vperm.xlu1 %10343, %v9881_v6  }
 0x798   : > { %v8129_v12 = vrot.slane %v8109_v61, 7 }
 0x799   : > { %v8186_v19 = vsel %vm8181_vm13, %v8183_v18, %v8185_v50  ;;  %v8166_v43 = vmul.f32 %v13245_v3, %v8149_v16 }
 0x79a   : > { %v13286_v7 = vadd.f32 %v8186_v19, %v8066_v11  ;;  %v8130_v33 = vsel %vm7975_vm11, %v8127_v39, %v8129_v12  ;;  %v8163_v39 = vmul.f32 %v13245_v3, %v8146_v45 }
 0x79b   : > { %v8187_v34 = vrot.slane %v8166_v43, 1  ;;  %v8150_v31 = vmul.f32 %v8130_v33, %v11661_v9  ;;  %v8023_v46 = vpop.permute.xlu0 %8022  ;;  %v8227_v40 = vpop.permute.xlu1 %8226  ;;  %8946 = vperm.xlu1 %10343, %v9890_v55  }
 0x79c   : > { %v8052_v52 = vmul.f32 %v8023_v46, %v11666_v53  ;;  %v8257_v2 = vrot.slane %v8227_v40, 6  ;;  %v8182_v19 = vrot.slane %v8163_v39, 1 }
 0x79d   : > { %v8167_v10 = vmul.f32 %v13245_v3, %v8150_v31  ;;  %v8188_v5 = vsel %vm8181_vm13, %v8185_v50, %v8187_v34 }
 0x79e   : > { %v8067_v60 = vmul.f32 %v13270_v0, %v8052_v52  ;;  %v8281_v35 = vmul.f32 0.0, %v8257_v2  ;;  %v8184_v45 = vsel %vm8181_vm13, %v8182_v19, %v8183_v18 }
 0x79f   : > { %v8189_v57 = vrot.slane %v8167_v10, 1  ;;  %v13302_v42 = vpop.permute.xlu0 %8454  ;;  %v8231_v36 = vpop.permute.xlu1 %8230  ;;  %8728 = vperm.xlu1 %10343, %v9868_v28  }
 0x7a0   : > { %v13304_v59 = vadd.f32 %v8188_v5, %v8067_v60  ;;  %v8258_v15 = vrot.slane %v8231_v36, 6  ;;  %v8298_v48 = vmul.f32 %v13300_v58, %v8281_v35  ;;  %v8473_v35 = vrot.slane %v13275_v23, 7  ;;  %v13364_v23 = vld [vmem:[%s14550_s13 + $0x4] ss:$0 sm:$0xff] }
 0x7a1   : > { %v13311_v4 = vsel %vm8181_vm13, %v8187_v34, %v8189_v57 }
 0x7a2   : > { %v8259_v1 = vsel %vm8256_vm14, %v8257_v2, %v8258_v15  ;;  %v8317_v62 = vrot.slane %v8298_v48, 2 }
 0x7a3   : > { %v8282_v27 = vmul.f32 %v8259_v1, %v13234_v21  ;;  %v13317_v8 = vpop.permute.xlu0 %8112  ;;  %v8235_v41 = vpop.permute.xlu1 %8234  ;;  %8738 = vperm.xlu1 %10343, %v9870_v14  }
 0x7a4   : > { %v8131_v44 = vrot.slane %v13317_v8, 7  ;;  %v8260_v56 = vrot.slane %v8235_v41, 6 }
 0x7a5   : > { %v8299_v38 = vmul.f32 %v13300_v58, %v8282_v27 }
 0x7a6   : > { %v8132_v32 = vsel %vm7975_vm11, %v8129_v12, %v8131_v44  ;;  %v8261_v6 = vsel %vm8256_vm14, %v8258_v15, %v8260_v56 }
 0x7a7   : > { %v8318_v47 = vrot.slane %v8299_v38, 2  ;;  %v8151_v25 = vmul.f32 %v8132_v32, %v11686_v29  ;;  %v8283_v63 = vmul.f32 %v8261_v6, %v11666_v53  ;;  %v13329_v50 = vpop.permute.xlu0 %8575  ;;  %v8239_v16 = vpop.permute.xlu1 %8238 }
 0x7a8   : > { %v8262_v61 = vrot.slane %v8239_v16, 6 }
 0x7a9   : > { %v13332_v11 = vmul.f32 %v13245_v3, %v8151_v25  ;;  %v8300_v22 = vmul.f32 %v13300_v58, %v8283_v63  ;;  %v8319_v55 = vsel %vm8316_vm15, %v8317_v62, %v8318_v47  ;;  %v8477_v62 = vrot.slane %v13302_v42, 7 }
 0x7aa   : > { %v8263_v12 = vsel %vm8256_vm14, %v8260_v56, %v8262_v61  ;;  %v8265_v43 = vsel %vm8256_vm14, %v8262_v61, %v8264_v17 }
 0x7ab   : > { %v8191_v33 = vrot.slane %v13332_v11, 1  ;;  %v8320_v34 = vrot.slane %v8300_v22, 2  ;;  %v8284_v31 = vmul.f32 %v8263_v12, %v11669_v54  ;;  %v8285_v46 = vmul.f32 %v8265_v43, %v11661_v9  ;;  %v13341_v40 = vpop.permute.xlu0 %8583  ;;  %v8013_v52 = vpop.permute.xlu1 %8012 }
 0x7ac   : > { %v8050_v2 = vmul.f32 0.0, %v8013_v52 }
 0x7ad   : > { %v8301_v28 = vmul.f32 %v13300_v58, %v8284_v31  ;;  %v8302_v10 = vmul.f32 %v13300_v58, %v8285_v46  ;;  %v13348_v5 = vsel %vm8181_vm13, %v8189_v57, %v8191_v33  ;;  %v8321_v60 = vsel %vm8316_vm15, %v8318_v47, %v8320_v34 }
 0x7ae   : > { %v8065_v36 = vmul.f32 %v13270_v0, %v8050_v2  ;;  %v13354_v15 = vadd.f32 %v8321_v60, %v13286_v7 }
 0x7af   : > { %v8322_v14 = vrot.slane %v8301_v28, 2  ;;  %v8324_v48 = vrot.slane %v8302_v10, 2  ;;  %v13359_v1 = vpop.permute.xlu0 %8587  ;;  %v8443_v27 = vpop.permute.xlu1 %8442 }
 0x7b0   : > { %v8207_v57 = vadd.f32 %v8184_v45, %v8065_v36  ;;  %v8472_v41 = vrot.slane %v8443_v27, 7  ;;  %v8608_v45 = vrot.slane %v13341_v40, 6  ;;  %v8610_v27 = vrot.slane %v13359_v1, 6 }
 0x7b1   : > { %v8325_v56 = vsel %vm8316_vm15, %v8322_v14, %v8324_v48  ;;  %v8323_v7 = vsel %vm8316_vm15, %v8320_v34, %v8322_v14  ;;  %v13390_v34 = vld [vmem:[%s14550_s13 + $0x3] ss:$0 sm:$0xff] }
 0x7b2   : > { %v8342_v38 = vadd.f32 %v8319_v55, %v8207_v57  ;;  %v8474_v37 = vsel %vm7975_vm11, %v8472_v41, %v8473_v35  ;;  %v8496_v18 = vmul.f32 %v8472_v41, %v13234_v21  ;;  %v13375_v47 = vadd.f32 %v8323_v7, %v13304_v59 }
 0x7b3   : > { %v8497_v39 = vmul.f32 %v8474_v37, %v11666_v53  ;;  %v13372_v32 = vpop.permute.xlu0 %8246  ;;  %v8451_v6 = vpop.permute.xlu1 %8450 }
 0x7b4   : > { %v8513_v25 = vmul.f32 %v13364_v23, %v8496_v18  ;;  %v8266_v63 = vrot.slane %v13372_v32, 6  ;;  %v8475_v16 = vrot.slane %v8451_v6, 7 }
 0x7b5   : > { %v8514_v42 = vmul.f32 %v13364_v23, %v8497_v39 }
 0x7b6   : > { %v8531_v61 = vrot.slane %v8513_v25, 1  ;;  %v8267_v22 = vsel %vm8256_vm14, %v8264_v17, %v8266_v63  ;;  %v8476_v55 = vsel %vm7975_vm11, %v8473_v35, %v8475_v16  ;;  %v8478_v19 = vsel %vm7975_vm11, %v8475_v16, %v8477_v62 }
 0x7b7   : > { %v8532_v12 = vrot.slane %v8514_v42, 1  ;;  %v8286_v59 = vmul.f32 %v8267_v22, %v11686_v29  ;;  %v8498_v43 = vmul.f32 %v8476_v55, %v11669_v54  ;;  %v8362_v31 = vpop.permute.xlu0 %8361  ;;  %v8028_v46 = vpop.permute.xlu1 %8027  ;;  %v8499_v52 = vmul.f32 %v8478_v19, %v11661_v9 }
 0x7b8   : > { %v8399_v17 = vmul.f32 %v8362_v31, %v13234_v21  ;;  %v8053_v2 = vmul.f32 %v8028_v46, %v11669_v54  ;;  %v8605_v16 = vrot.slane %v13329_v50, 6  ;;  %v8611_v50 = vsel %vm8256_vm14, %v8608_v45, %v8610_v27  ;;  %v13442_v46 = vld [vmem:[%s14550_s13 + $0x5] ss:$0 sm:$0xff] }
 0x7b9   : > { %v13396_v28 = vmul.f32 %v13300_v58, %v8286_v59  ;;  %v8515_v10 = vmul.f32 %v13364_v23, %v8498_v43  ;;  %v8533_v60 = vsel %vm8181_vm13, %v8531_v61, %v8532_v12  ;;  %v8516_v35 = vmul.f32 %v13364_v23, %v8499_v52 }
 0x7ba   : > { %v8415_v36 = vmul.f32 %v13390_v34, %v8399_v17  ;;  %v8068_v14 = vmul.f32 %v13270_v0, %v8053_v2  ;;  %v8632_v52 = vmul.f32 %v8611_v50, %v11661_v9 }
 0x7bb   : > { %v8326_v57 = vrot.slane %v13396_v28, 2  ;;  %v8534_v41 = vrot.slane %v8515_v10, 1  ;;  %v13406_v7 = vpop.permute.xlu0 %8254  ;;  %v13408_v37 = vpop.permute.xlu1 %8458  ;;  %v8536_v18 = vrot.slane %v8516_v35, 1 }
 0x7bc   : > { %v8423_v39 = vadd.f32 %v8415_v36, %v8342_v38  ;;  %v8210_v6 = vadd.f32 %v13311_v4, %v8068_v14  ;;  %v8270_v25 = vrot.slane %v13406_v7, 6  ;;  %v8479_v42 = vrot.slane %v13408_v37, 7 }
 0x7bd   : > { %v13415_v40 = vsel %vm8181_vm13, %v8532_v12, %v8534_v41  ;;  %v13420_v61 = vsel %vm8316_vm15, %v8324_v48, %v8326_v57  ;;  %v13428_v55 = vsel %vm8181_vm13, %v8534_v41, %v8536_v18 }
 0x7be   : > { %v8556_v22 = vadd.f32 %v8533_v60, %v8423_v39  ;;  %v13425_v38 = vmul.f32 %v8270_v25, %v11697_v49  ;;  %v8345_v4 = vadd.f32 %v8325_v56, %v8210_v6  ;;  %v8480_v19 = vsel %vm7975_vm11, %v8477_v62, %v8479_v42 }
 0x7bf   : > { %v8377_v48 = vpop.permute.xlu0 %8376  ;;  %v8117_v12 = vpop.permute.xlu1 %8116  ;;  %v8500_v59 = vmul.f32 %v8480_v19, %v11686_v29  ;;  %v8629_v56 = vmul.f32 %v8605_v16, %v13234_v21  ;;  %v8649_v6 = vmul.f32 %v13442_v46, %v8632_v52 }
 0x7c0   : > { %v8402_v43 = vmul.f32 %v8377_v48, %v11661_v9  ;;  %v8133_v31 = vrot.slane %v8117_v12, 7 }
 0x7c1   : > { %v13446_v17 = vmul.f32 %v13364_v23, %v8500_v59  ;;  %v8646_v41 = vmul.f32 %v13442_v46, %v8629_v56 }
 0x7c2   : > { %v8418_v62 = vmul.f32 %v13390_v34, %v8402_v43  ;;  %v8134_v2 = vsel %vm7975_vm11, %v8131_v44, %v8133_v31 }
 0x7c3   : > { %v8152_v10 = vmul.f32 %v8134_v2, %v11700_v51  ;;  %v13453_v60 = vpop.permute.xlu0 %8793  ;;  %v8580_v21 = vpop.permute.xlu1 %8579  ;;  %v8538_v35 = vrot.slane %v13446_v17, 1 }
 0x7c4   : > { %v8426_v36 = vadd.f32 %v8418_v62, %v8345_v4  ;;  %v8606_v14 = vrot.slane %v8580_v21, 6 }
 0x7c5   : > { %v8169_v39 = vmul.f32 %v13245_v3, %v8152_v10  ;;  %v8539_v8 = vsel %vm8181_vm13, %v8536_v18, %v8538_v35  ;;  %v8669_v10 = vrot.slane %v8649_v6, 2 }
 0x7c6   : > { %v8607_v44 = vsel %vm8256_vm14, %v8605_v16, %v8606_v14  ;;  %v8609_v50 = vsel %vm8256_vm14, %v8606_v14, %v8608_v45  ;;  %v8559_v19 = vadd.f32 %v8539_v8, %v8426_v36  ;;  %v8664_v45 = vrot.slane %v8646_v41, 2 }
 0x7c7   : > { %v8193_v48 = vrot.slane %v8169_v39, 1  ;;  %v8630_v12 = vmul.f32 %v8607_v44, %v11666_v53  ;;  %v8631_v4 = vmul.f32 %v8609_v50, %v11669_v54  ;;  %v13466_v59 = vpop.permute.xlu0 %8801  ;;  %v8121_v43 = vpop.permute.xlu1 %8120 }
 0x7c8   : > { %v8135_v56 = vrot.slane %v8121_v43, 7 }
 0x7c9   : > { %v8647_v52 = vmul.f32 %v13442_v46, %v8630_v12  ;;  %v8648_v62 = vmul.f32 %v13442_v46, %v8631_v4  ;;  %v13473_v18 = vsel %vm8181_vm13, %v8191_v33, %v8193_v48 }
 0x7ca   : > { %v8136_v16 = vsel %vm7975_vm11, %v8133_v31, %v8135_v56  ;;  %v8154_v2 = vmul.f32 %v8135_v56, %v11697_v49 }
 0x7cb   : > { %v8665_v21 = vrot.slane %v8647_v52, 2  ;;  %v8667_v36 = vrot.slane %v8648_v62, 2  ;;  %v8153_v14 = vmul.f32 %v8136_v16, %v11703_v20  ;;  %v8033_v39 = vpop.permute.xlu0 %8032  ;;  %v13478_v8 = vpop.permute.xlu1 %8591 }
 0x7cc   : > { %v8171_v44 = vmul.f32 %v13245_v3, %v8154_v2  ;;  %v8054_v11 = vmul.f32 %v8033_v39, %v11661_v9  ;;  %v8612_v33 = vrot.slane %v13478_v8, 6 }
 0x7cd   : > { %v8170_v41 = vmul.f32 %v13245_v3, %v8153_v14  ;;  %v8666_v31 = vsel %vm8316_vm15, %v8664_v45, %v8665_v21  ;;  %v8668_v50 = vsel %vm8316_vm15, %v8665_v21, %v8667_v36  ;;  %v13487_v6 = vsel %vm8316_vm15, %v8667_v36, %v8669_v10 }
 0x7ce   : > { %v8197_v12 = vrot.slane %v8171_v44, 1  ;;  %v8069_v4 = vmul.f32 %v13270_v0, %v8054_v11  ;;  %v8613_v43 = vsel %vm8256_vm14, %v8610_v27, %v8612_v33  ;;  %v13495_v56 = vadd.f32 %v8666_v31, %v8556_v22 }
 0x7cf   : > { %v8195_v52 = vrot.slane %v8170_v41, 1  ;;  %v8633_v3 = vmul.f32 %v8613_v43, %v11686_v29  ;;  %v13498_v62 = vpop.permute.xlu0 %8462  ;;  %v8251_v45 = vpop.permute.xlu1 %8250  ;;  %v8306_v36 = vmul.f32 %v13300_v58, %v13425_v38 }
 0x7d0   : > { %v8211_v16 = vadd.f32 %v13348_v5, %v8069_v4  ;;  %v8481_v2 = vrot.slane %v13498_v62, 7  ;;  %v8268_v21 = vrot.slane %v8251_v45, 6 }
 0x7d1   : > { %v13505_v1 = vmul.f32 %v13442_v46, %v8633_v3  ;;  %v8198_v27 = vsel %vm8181_vm13, %v8195_v52, %v8197_v12  ;;  %v13509_v22 = vsel %vm8181_vm13, %v8193_v48, %v8195_v52  ;;  %v8332_v52 = vrot.slane %v8306_v36, 2 }
 0x7d2   : > { %v8482_v5 = vsel %vm7975_vm11, %v8479_v42, %v8481_v2  ;;  %v8269_v14 = vsel %vm8256_vm14, %v8266_v63, %v8268_v21  ;;  %v8271_v38 = vsel %vm8256_vm14, %v8268_v21, %v8270_v25  ;;  %v13523_v39 = vadd.f32 %v13420_v61, %v8211_v16 }
 0x7d3   : > { %v8671_v48 = vrot.slane %v13505_v1, 2  ;;  %v8501_v44 = vmul.f32 %v8482_v5, %v11700_v51  ;;  %v8287_v11 = vmul.f32 %v8269_v14, %v11700_v51  ;;  %v8288_v37 = vmul.f32 %v8271_v38, %v11703_v20  ;;  %v13529_v42 = vpop.permute.xlu0 %8922  ;;  %v8367_v32 = vpop.permute.xlu1 %8366 }
 0x7d4   : > { %v8952_v63 = vrot.slane %v13529_v42, 6  ;;  %v8400_v7 = vmul.f32 %v8367_v32, %v11666_v53 }
 0x7d5   : > { %v13534_v25 = vmul.f32 %v13364_v23, %v8501_v44  ;;  %v8304_v61 = vmul.f32 %v13300_v58, %v8287_v11  ;;  %v8305_v41 = vmul.f32 %v13300_v58, %v8288_v37  ;;  %v8672_v31 = vsel %vm8316_vm15, %v8669_v10, %v8671_v48 }
 0x7d6   : > { %v13544_v12 = vmul.f32 %v8952_v63, %v11666_v53  ;;  %v8416_v4 = vmul.f32 %v13390_v34, %v8400_v7  ;;  %v13547_v43 = vadd.f32 %v8672_v31, %v8559_v19 }
 0x7d7   : > { %v8540_v3 = vrot.slane %v13534_v25, 1  ;;  %v8328_v45 = vrot.slane %v8304_v61, 2  ;;  %v8330_v16 = vrot.slane %v8305_v41, 2  ;;  %v13550_v21 = vpop.permute.xlu0 %8930  ;;  %v8372_v58 = vpop.permute.xlu1 %8371  ;;  %v13581_v61 = vld [vmem:[%s14550_s13 + $0x7] ss:$0 sm:$0xff] }
 0x7d8   : > { %v8424_v5 = vadd.f32 %v8416_v4, %v13354_v15  ;;  %v8401_v10 = vmul.f32 %v8372_v58, %v11669_v54  ;;  %v8820_v15 = vrot.slane %v13453_v60, 7 }
 0x7d9   : > { %v13557_v14 = vsel %vm8316_vm15, %v8326_v57, %v8328_v45  ;;  %v8333_v19 = vsel %vm8316_vm15, %v8330_v16, %v8332_v52  ;;  %v13565_v36 = vsel %vm8181_vm13, %v8538_v35, %v8540_v3  ;;  %v13568_v38 = vsel %vm8316_vm15, %v8328_v45, %v8330_v16 }
 0x7da   : > { %v8557_v44 = vadd.f32 %v13415_v40, %v8424_v5  ;;  %v8417_v28 = vmul.f32 %v13390_v34, %v8401_v10  ;;  %v8824_v35 = vrot.slane %v13466_v59, 7 }
 0x7db   : > { %v8048_v57 = vpop.permute.xlu0 %8047  ;;  %v8790_v11 = vpop.permute.xlu1 %8789 }
 0x7dc   : > { %v8425_v37 = vadd.f32 %v8417_v28, %v13375_v47  ;;  %v8057_v32 = vmul.f32 %v8048_v57, %v11703_v20  ;;  %v8819_v7 = vrot.slane %v8790_v11, 7  ;;  %v13575_v17 = vadd.f32 %v8668_v50, %v8557_v44 }
 0x7de   : > { %v8558_v40 = vadd.f32 %v13428_v55, %v8425_v37  ;;  %v8072_v60 = vmul.f32 %v13270_v0, %v8057_v32  ;;  %v8821_v41 = vsel %vm7975_vm11, %v8819_v7, %v8820_v15  ;;  %v8843_v47 = vmul.f32 %v8819_v7, %v11666_v53 }
 0x7df   : > { %v8844_v31 = vmul.f32 %v8821_v41, %v11669_v54  ;;  %v13588_v4 = vpop.permute.xlu0 %8934  ;;  %v8798_v50 = vpop.permute.xlu1 %8797 }
 0x7e0   : > { %v8214_v52 = vadd.f32 %v8198_v27, %v8072_v60  ;;  %v8860_v59 = vmul.f32 %v13581_v61, %v8843_v47  ;;  %v8822_v45 = vrot.slane %v8798_v50, 7  ;;  %v13593_v58 = vadd.f32 %v13487_v6, %v8558_v40  ;;  %v13622_v50 = vld [vmem:[%s14550_s13 + $0x6] ss:$0 sm:$0xff] }
 0x7e1   : > { %v8861_v16 = vmul.f32 %v13581_v61, %v8844_v31 }
 0x7e2   : > { %v8878_v55 = vrot.slane %v8860_v59, 1  ;;  %v8823_v5 = vsel %vm7975_vm11, %v8820_v15, %v8822_v45  ;;  %v8825_v10 = vsel %vm7975_vm11, %v8822_v45, %v8824_v35  ;;  %v13605_v6 = vadd.f32 %v8333_v19, %v8214_v52 }
 0x7e3   : > { %v8879_v44 = vrot.slane %v8861_v16, 1  ;;  %v8845_v28 = vmul.f32 %v8823_v5, %v11661_v9  ;;  %v8846_v57 = vmul.f32 %v8825_v10, %v11686_v29  ;;  %v13599_v11 = vpop.permute.xlu0 %8595  ;;  %v13601_v27 = vpop.permute.xlu1 %8805  ;;  %v8955_v16 = vrot.slane %v13550_v21, 6 }
 0x7e4   : > { %v8614_v37 = vrot.slane %v13599_v11, 6  ;;  %v8826_v32 = vrot.slane %v13601_v27, 7  ;;  %v8957_v10 = vrot.slane %v13588_v4, 6 }
 0x7e5   : > { %v8862_v7 = vmul.f32 %v13581_v61, %v8845_v28  ;;  %v8863_v15 = vmul.f32 %v13581_v61, %v8846_v57  ;;  %v8880_v40 = vsel %vm8181_vm13, %v8878_v55, %v8879_v44 }
 0x7e6   : > { %v8615_v60 = vsel %vm8256_vm14, %v8612_v33, %v8614_v37  ;;  %v8827_v41 = vsel %vm7975_vm11, %v8824_v35, %v8826_v32 }
 0x7e7   : > { %v8881_v47 = vrot.slane %v8862_v7, 1  ;;  %v8883_v31 = vrot.slane %v8863_v15, 1  ;;  %v8634_v19 = vmul.f32 %v8615_v60, %v11700_v51  ;;  %v8709_v52 = vpop.permute.xlu0 %8708  ;;  %v8038_v59 = vpop.permute.xlu1 %8037  ;;  %v8847_v45 = vmul.f32 %v8827_v41, %v11700_v51 }
 0x7e8   : > { %v8746_v8 = vmul.f32 %v8709_v52, %v11666_v53  ;;  %v8055_v33 = vmul.f32 %v8038_v59, %v11686_v29  ;;  %v8958_v52 = vsel %vm8256_vm14, %v8955_v16, %v8957_v10 }
 0x7e9   : > { %v13629_v35 = vmul.f32 %v13442_v46, %v8634_v19  ;;  %v13632_v55 = vsel %vm8181_vm13, %v8879_v44, %v8881_v47  ;;  %v13635_v5 = vsel %vm8181_vm13, %v8881_v47, %v8883_v31  ;;  %v13639_v28 = vmul.f32 %v13581_v61, %v8847_v45 }
 0x7ea   : > { %v8762_v53 = vmul.f32 %v13622_v50, %v8746_v8  ;;  %v8070_v57 = vmul.f32 %v13270_v0, %v8055_v33 }
 0x7eb   : > { %v8673_v21 = vrot.slane %v13629_v35, 2  ;;  %v13644_v7 = vpop.permute.xlu0 %8603  ;;  %v8467_v15 = vpop.permute.xlu1 %8466  ;;  %v8885_v44 = vrot.slane %v13639_v28, 1 }
 0x7ec   : > { %v8770_v60 = vadd.f32 %v8762_v53, %v13495_v56  ;;  %v8212_v41 = vadd.f32 %v13473_v18, %v8070_v57  ;;  %v8483_v47 = vrot.slane %v8467_v15, 7 }
 0x7ed   : > { %v13654_v19 = vsel %vm8316_vm15, %v8671_v48, %v8673_v21  ;;  %v8886_v45 = vsel %vm8181_vm13, %v8883_v31, %v8885_v44  ;;  %v13669_v48 = vld [vmem:[%s14550_s13 + $0x8] ss:$0 sm:$0xff]  ;;  %v8979_v31 = vmul.f32 %v8958_v52, %v11686_v29 }
 0x7ee   : > { %v8903_v59 = vadd.f32 %v8880_v40, %v8770_v60  ;;  %v8347_v56 = vadd.f32 %v13557_v14, %v8212_v41  ;;  %v8484_v18 = vsel %vm7975_vm11, %v8481_v2, %v8483_v47  ;;  %v8993_v57 = vmul.f32 %v13669_v48, %v13544_v12 }
 0x7ef   : > { %v8724_v8 = vpop.permute.xlu0 %8723  ;;  %v8927_v1 = vpop.permute.xlu1 %8926  ;;  %v8502_v33 = vmul.f32 %v8484_v18, %v11703_v20  ;;  %v13687_v42 = vmul.f32 %v13669_v48, %v8979_v31 }
 0x7f0   : > { %v8749_v40 = vmul.f32 %v8724_v8, %v11686_v29  ;;  %v8953_v53 = vrot.slane %v8927_v1, 6  ;;  %v9011_v31 = vrot.slane %v8993_v57, 2 }
 0x7f1   : > { %v8519_v14 = vmul.f32 %v13364_v23, %v8502_v33  ;;  %v9016_v25 = vrot.slane %v13687_v42, 2 }
 0x7f2   : > { %v8765_v62 = vmul.f32 %v13622_v50, %v8749_v40  ;;  %v8954_v2 = vsel %vm8256_vm14, %v8952_v63, %v8953_v53  ;;  %v8956_v15 = vsel %vm8256_vm14, %v8953_v53, %v8955_v16 }
 0x7f3   : > { %v8977_v60 = vmul.f32 %v8954_v2, %v11669_v54  ;;  %v8387_v41 = vpop.permute.xlu0 %8386  ;;  %v8043_v18 = vpop.permute.xlu1 %8042  ;;  %v8542_v8 = vrot.slane %v8519_v14, 1  ;;  %v8978_v1 = vmul.f32 %v8956_v15, %v11661_v9  ;;  %v14634_v14 = vrot.slane %v11679_v24, 7 }
 0x7f4   : > { %v8773_v52 = vadd.f32 %v8765_v62, %v13547_v43  ;;  %v8404_v33 = vmul.f32 %v8387_v41, %v11700_v51  ;;  %v8056_v12 = vmul.f32 %v8043_v18, %v11700_v51 }
 0x7f5   : > { %v8994_v63 = vmul.f32 %v13669_v48, %v8977_v60  ;;  %v8995_v16 = vmul.f32 %v13669_v48, %v8978_v1  ;;  %v8543_v43 = vsel %vm8181_vm13, %v8540_v3, %v8542_v8  ;;  %v13699_v62 = vsel %vm7975_vm11, %v14634_v14, 0.0 }
 0x7f6   : > { %v8906_v40 = vadd.f32 %v8886_v45, %v8773_v52  ;;  %v8420_v53 = vmul.f32 %v13390_v34, %v8404_v33  ;;  %v8071_v15 = vmul.f32 %v13270_v0, %v8056_v12  ;;  %v8618_v3 = vrot.slane %v13644_v7, 6 }
 0x7f7   : > { %v9012_v2 = vrot.slane %v8994_v63, 2  ;;  %v8397_v60 = vpop.permute.xlu0 %8396  ;;  %v8471_v41 = vpop.permute.xlu1 %8470  ;;  %v9014_v45 = vrot.slane %v8995_v16, 2 }
 0x7f8   : > { %v8428_v18 = vadd.f32 %v8420_v53, %v8347_v56  ;;  %v8406_v52 = vmul.f32 %v8397_v60, %v11697_v49  ;;  %v8485_v1 = vrot.slane %v8471_v41, 7  ;;  %v8213_v24 = vadd.f32 %v13509_v22, %v8071_v15 }
 0x7f9   : > { %v9013_v33 = vsel %vm8316_vm15, %v9011_v31, %v9012_v2  ;;  %v13717_v7 = vsel %vm8316_vm15, %v9014_v45, %v9016_v25  ;;  %v8637_v31 = vmul.f32 %v8618_v3, %v13699_v62  ;;  %v9015_v60 = vsel %vm8316_vm15, %v9012_v2, %v9014_v45 }
 0x7fa   : > { %v8561_v14 = vadd.f32 %v8543_v43, %v8428_v18  ;;  %v8422_v57 = vmul.f32 %v13390_v34, %v8406_v52  ;;  %v8486_v0 = vsel %vm7975_vm11, %v8483_v47, %v8485_v1  ;;  %v8504_v63 = vmul.f32 %v8485_v1, %v13699_v62 }
 0x7fb   : > { %v8503_v56 = vmul.f32 %v8486_v0, %v11697_v49  ;;  %v13711_v12 = vpop.permute.xlu0 %8813  ;;  %v8939_v16 = vpop.permute.xlu1 %8938  ;;  %v13714_v42 = vadd.f32 %v13568_v38, %v8213_v24  ;;  %v13719_v22 = vadd.f32 %v9013_v33, %v8903_v59  ;;  %v8654_v33 = vmul.f32 %v13442_v46, %v8637_v31 }
 0x7fc   : > { %v8430_v53 = vadd.f32 %v8422_v57, %v13605_v6  ;;  %v8521_v43 = vmul.f32 %v13364_v23, %v8504_v63  ;;  %v8959_v47 = vrot.slane %v8939_v16, 6 }
 0x7fd   : > { %v8520_v15 = vmul.f32 %v13364_v23, %v8503_v56 }
 0x7fe   : > { %v8546_v41 = vrot.slane %v8521_v43, 1  ;;  %v8960_v38 = vsel %vm8256_vm14, %v8957_v10, %v8959_v47 }
 0x7ff   : > { %v8544_v18 = vrot.slane %v8520_v15, 1  ;;  %v8980_v59 = vmul.f32 %v8960_v38, %v11700_v51  ;;  %v13730_v52 = vpop.permute.xlu0 %8942  ;;  %v8600_v6 = vpop.permute.xlu1 %8599  ;;  %v8679_v38 = vrot.slane %v8654_v33, 2 }
 0x800   : > { %v8961_v1 = vrot.slane %v13730_v52, 6  ;;  %v8616_v24 = vrot.slane %v8600_v6, 6 }
 0x801   : > { %v8997_v23 = vmul.f32 %v13669_v48, %v8980_v59  ;;  %v8547_v2 = vsel %vm8181_vm13, %v8544_v18, %v8546_v41  ;;  %v8545_v45 = vsel %vm8181_vm13, %v8542_v8, %v8544_v18 }
 0x802   : > { %v8962_v4 = vsel %vm8256_vm14, %v8959_v47, %v8961_v1  ;;  %v8617_v10 = vsel %vm8256_vm14, %v8614_v37, %v8616_v24  ;;  %v8619_v57 = vsel %vm8256_vm14, %v8616_v24, %v8618_v3  ;;  %v8563_v0 = vadd.f32 %v8547_v2, %v8430_v53 }
 0x803   : > { %v9018_v63 = vrot.slane %v8997_v23, 2  ;;  %v8981_v56 = vmul.f32 %v8962_v4, %v11703_v20  ;;  %v8635_v16 = vmul.f32 %v8617_v10, %v11703_v20  ;;  %v8636_v43 = vmul.f32 %v8619_v57, %v11697_v49  ;;  %v13747_v31 = vpop.permute.xlu0 %8950  ;;  %v8714_v8 = vpop.permute.xlu1 %8713 }
 0x804   : > { %v8747_v15 = vmul.f32 %v8714_v8, %v11669_v54 }
 0x805   : > { %v13751_v47 = vmul.f32 %v13669_v48, %v8981_v56  ;;  %v8652_v11 = vmul.f32 %v13442_v46, %v8635_v16  ;;  %v8653_v37 = vmul.f32 %v13442_v46, %v8636_v43  ;;  %v9019_v3 = vsel %vm8316_vm15, %v9016_v25, %v9018_v63 }
 0x806   : > { %v8763_v53 = vmul.f32 %v13622_v50, %v8747_v15  ;;  %v13757_v41 = vadd.f32 %v9019_v3, %v8906_v40 }
 0x807   : > { %v9020_v18 = vrot.slane %v13751_v47, 2  ;;  %v8675_v59 = vrot.slane %v8652_v11, 2  ;;  %v8677_v6 = vrot.slane %v8653_v37, 2  ;;  %v8734_v24 = vpop.permute.xlu0 %8733  ;;  %v8719_v54 = vpop.permute.xlu1 %8718 }
 0x808   : > { %v8771_v23 = vadd.f32 %v8763_v53, %v13575_v17  ;;  %v8751_v2 = vmul.f32 %v8734_v24, %v11703_v20  ;;  %v8748_v4 = vmul.f32 %v8719_v54, %v11661_v9 }
 0x809   : > { %v8676_v46 = vsel %vm8316_vm15, %v8673_v21, %v8675_v59  ;;  %v8680_v40 = vsel %vm8316_vm15, %v8677_v6, %v8679_v38  ;;  %v8678_v25 = vsel %vm8316_vm15, %v8675_v59, %v8677_v6  ;;  %v13774_v9 = vsel %vm8316_vm15, %v9018_v63, %v9020_v18 }
 0x80a   : > { %v8904_v33 = vadd.f32 %v13632_v55, %v8771_v23  ;;  %v8694_v10 = vadd.f32 %v8676_v46, %v8561_v14  ;;  %v8767_v57 = vmul.f32 %v13622_v50, %v8751_v2  ;;  %v8764_v56 = vmul.f32 %v13622_v50, %v8748_v4 }
 0x80b   : > { %v8744_v17 = vpop.permute.xlu0 %8743  ;;  %v8696_v16 = vadd.f32 %v8680_v40, %v8563_v0  ;;  %v8382_v43 = vpop.permute.xlu1 %8381  ;;  %v8965_v6 = vrot.slane %v13747_v31, 6 }
 0x80c   : > { %v8775_v35 = vadd.f32 %v8767_v57, %v8694_v10  ;;  %v8753_v21 = vmul.f32 %v8744_v17, %v13699_v62  ;;  %v8403_v8 = vmul.f32 %v8382_v43, %v11686_v29  ;;  %v13778_v15 = vadd.f32 %v9015_v60, %v8904_v33 }
 0x80d   : > { %v8772_v55 = vadd.f32 %v8764_v56, %v13593_v58  ;;  %v8830_v29 = vrot.slane %v13711_v12, 7  ;;  %v8984_v2 = vmul.f32 0.0, %v8965_v6 }
 0x80e   : > { %v8769_v14 = vmul.f32 %v13622_v50, %v8753_v21  ;;  %v8419_v11 = vmul.f32 %v13390_v34, %v8403_v8 }
 0x80f   : > { %v8905_v0 = vadd.f32 %v13635_v5, %v8772_v55  ;;  %v8392_v37 = vpop.permute.xlu1 %8391 }
 0x810   : > { %v8777_v3 = vadd.f32 %v8769_v14, %v8696_v16  ;;  %v8427_v63 = vadd.f32 %v8419_v11, %v13523_v39  ;;  %v8405_v53 = vmul.f32 %v8392_v37, %v11703_v20 }
 0x811   : > { %v13787_v38 = vadd.f32 %v13717_v7, %v8905_v0 }
 0x812   : > { %v8560_v60 = vadd.f32 %v13565_v36, %v8427_v63  ;;  %v8421_v58 = vmul.f32 %v13390_v34, %v8405_v53 }
 0x813   : > { %v8810_v59 = vpop.permute.xlu1 %8809 }
 0x814   : > { %v8429_v5 = vadd.f32 %v8421_v58, %v13714_v42  ;;  %v8828_v24 = vrot.slane %v8810_v59, 7  ;;  %v8693_v54 = vadd.f32 %v13654_v19, %v8560_v60 }
 0x816   : > { %v8562_v39 = vadd.f32 %v8545_v45, %v8429_v5  ;;  %v8829_v7 = vsel %vm7975_vm11, %v8826_v32, %v8828_v24  ;;  %v8831_v23 = vsel %vm7975_vm11, %v8828_v24, %v8830_v29 }
 0x817   : > { %v8848_v12 = vmul.f32 %v8829_v7, %v11703_v20  ;;  %v8849_v36 = vmul.f32 %v8831_v23, %v11697_v49  ;;  %v8818_v34 = vpop.permute.xlu1 %8817  ;;  %v9001_v20 = vmul.f32 %v13669_v48, %v8984_v2 }
 0x818   : > { %v8832_v4 = vrot.slane %v8818_v34, 7  ;;  %v8695_v31 = vadd.f32 %v8678_v25, %v8562_v39 }
 0x819   : > { %v8865_v42 = vmul.f32 %v13581_v61, %v8848_v12  ;;  %v8866_v46 = vmul.f32 %v13581_v61, %v8849_v36  ;;  %v9026_v0 = vrot.slane %v9001_v20, 2 }
 0x81a   : > { %v8833_v19 = vsel %vm7975_vm11, %v8830_v29, %v8832_v4  ;;  %v8851_v45 = vmul.f32 0.0, %v8832_v4 }
 0x81b   : > { %v8887_v27 = vrot.slane %v8865_v42, 1  ;;  %v8889_v40 = vrot.slane %v8866_v46, 1  ;;  %v8850_v32 = vmul.f32 %v8833_v19, %v13699_v62  ;;  %v8947_v33 = vpop.permute.xlu1 %8946 }
 0x81c   : > { %v8868_v10 = vmul.f32 %v13581_v61, %v8851_v45  ;;  %v8963_v57 = vrot.slane %v8947_v33, 6 }
 0x81d   : > { %v8867_v56 = vmul.f32 %v13581_v61, %v8850_v32  ;;  %v8888_v25 = vsel %vm8181_vm13, %v8885_v44, %v8887_v27  ;;  %v8890_v17 = vsel %vm8181_vm13, %v8887_v27, %v8889_v40 }
 0x81e   : > { %v8893_v16 = vrot.slane %v8868_v10, 1  ;;  %v8964_v43 = vsel %vm8256_vm14, %v8961_v1, %v8963_v57  ;;  %v8966_v21 = vsel %vm8256_vm14, %v8963_v57, %v8965_v6  ;;  %v8908_v8 = vadd.f32 %v8890_v17, %v8775_v35 }
 0x81f   : > { %v8891_v55 = vrot.slane %v8867_v56, 1  ;;  %v8982_v14 = vmul.f32 %v8964_v43, %v11697_v49  ;;  %v8983_v11 = vmul.f32 %v8966_v21, %v13699_v62  ;;  %v8729_v61 = vpop.permute.xlu1 %8728 }
 0x820   : > { %v8750_v28 = vmul.f32 %v8729_v61, %v11700_v51 }
 0x821   : > { %v8894_v44 = vsel %vm8181_vm13, %v8891_v55, %v8893_v16  ;;  %v8999_v37 = vmul.f32 %v13669_v48, %v8982_v14  ;;  %v9000_v52 = vmul.f32 %v13669_v48, %v8983_v11  ;;  %v8892_v1 = vsel %vm8181_vm13, %v8889_v40, %v8891_v55 }
 0x822   : > { %v8766_v63 = vmul.f32 %v13622_v50, %v8750_v28  ;;  %v8910_v35 = vadd.f32 %v8894_v44, %v8777_v3 }
 0x823   : > { %v9022_v53 = vrot.slane %v8999_v37, 2  ;;  %v9024_v29 = vrot.slane %v9000_v52, 2  ;;  %v8739_v60 = vpop.permute.xlu1 %8738 }
 0x824   : > { %v8774_v58 = vadd.f32 %v8766_v63, %v8693_v54  ;;  %v8752_v62 = vmul.f32 %v8739_v60, %v11697_v49 }
 0x825   : > { %v9023_v51 = vsel %vm8316_vm15, %v9020_v18, %v9022_v53  ;;  %v9025_v59 = vsel %vm8316_vm15, %v9022_v53, %v9024_v29  ;;  %v9027_v6 = vsel %vm8316_vm15, %v9024_v29, %v9026_v0 }
 0x826   : > { %v8907_v48 = vadd.f32 %v8888_v25, %v8774_v58  ;;  %v8768_v5 = vmul.f32 %v13622_v50, %v8752_v62  ;;  %v13831_v24 = vadd.f32 %v9023_v51, %v8908_v8  ;;  %v13833_v3 = vadd.f32 %v9027_v6, %v8910_v35 }
 0x828   : > { %v8776_v39 = vadd.f32 %v8768_v5, %v8695_v31  ;;  %v13836_v54 = vadd.f32 %v13774_v9, %v8907_v48 }
 0x82a   : > { %v8909_v49 = vadd.f32 %v8892_v1, %v8776_v39 }
 0x82c   : > { %v13838_v7 = vadd.f32 %v9025_v59, %v8909_v49 }
 0x833   : > { %v10218_v47 = vpop.f32.mrb[44].mxu0 }
 0x834   : > { %v6496_v18 = vpop.f32.mrb[45].mxu0 }
 0x835   : > { %v10219_v23 = vpop.f32.mrb[46].mxu0 }
 0x836   : > { %v6499_v12 = vpop.f32.mrb[47].mxu0 }
 0x83b   : > { %v10228_v36 = vpop.f32.mrb[48].mxu1 }
 0x83c   : > { %v6573_v34 = vpop.f32.mrb[49].mxu1 }
 0x83d   : > { %v13840_v2 = vpop.f32.mrb[50].mxu1 }
 0x83e   : > { %v13842_v50 = vpop.f32.mrb[51].mxu1 }
 0x843   : > { %v13844_v4 = vpop.f32.mrb[48].mxu0 }
 0x844   : > { %v13846_v42 = vpop.f32.mrb[49].mxu0 }
 0x845   : > { %v13848_v31 = vpop.f32.mrb[50].mxu0 }
 0x846   : > { %v13850_v9 = vpop.f32.mrb[51].mxu0 }
 0x84b   : > { %v13852_v46 = vpop.f32.mrb[52].mxu1 }
 0x84c   : > { %v13854_v19 = vpop.f32.mrb[53].mxu1 }
 0x84d   : > { %v13856_v45 = vpop.f32.mrb[54].mxu1 }
 0x84e   : > { %v13858_v27 = vpop.f32.mrb[55].mxu1 }
 0x853   : > { %v10238_v40 = vpop.f32.mrb[52].mxu0 }
 0x854   : > { %v6894_v32 = vcombine.low %v10218_v47, %v10238_v40  ;;  %v6895_v33 = vcombine.high %v10218_v47, %v10238_v40  ;;  %v6650_v20 = vpop.f32.mrb[53].mxu0 }
 0x855   : > { %v6758_v10 = vcombine.low %v6496_v18, %v6650_v20  ;;  %v6759_v57 = vcombine.high %v6496_v18, %v6650_v20  ;;  %v10239_v56 = vpop.f32.mrb[54].mxu0 }
 0x856   : > { %v6962_v25 = vcombine.low %v10219_v23, %v10239_v56  ;;  %v6963_v17 = vcombine.high %v10219_v23, %v10239_v56  ;;  %v6653_v16 = vpop.f32.mrb[55].mxu0  ;;  %v6902_v8 = vrot.slane %v6894_v32, %v14613_v13  ;;  %v6909_v55 = vrot.slane %v6895_v33, %v14613_v13 }
 0x857   : > { %v6826_v43 = vcombine.low %v6499_v12, %v6653_v16  ;;  %v6827_v21 = vcombine.high %v6499_v12, %v6653_v16  ;;  %v6766_v14 = vrot.slane %v6758_v10, %v14613_v13  ;;  %v6773_v11 = vrot.slane %v6759_v57, %v14613_v13 }
 0x858   : > { %v13865_v0 = vrot.slane %v6962_v25, %v14613_v13  ;;  %v13868_v28 = vrot.slane %v6963_v17, %v14613_v13 }
 0x859   : > { %v13871_v1 = vrot.slane %v6826_v43, %v14613_v13  ;;  %v13874_v63 = vrot.slane %v6827_v21, %v14613_v13 }
 0x85b   : > { %v10248_v61 = vpop.f32.mrb[56].mxu1 }
 0x85c   : > { %v6910_v44 = vcombine.low %v10228_v36, %v10248_v61  ;;  %v6911_v37 = vcombine.high %v10228_v36, %v10248_v61  ;;  %v6727_v52 = vpop.f32.mrb[57].mxu1 }
 0x85d   : > { %v6774_v35 = vcombine.low %v6573_v34, %v6727_v52  ;;  %v6775_v53 = vcombine.high %v6573_v34, %v6727_v52  ;;  %v10249_v29 = vpop.f32.mrb[58].mxu1 }
 0x85e   : > { %v6918_v60 = vrot.slane %v6910_v44, %v14613_v13  ;;  %v6925_v58 = vrot.slane %v6911_v37, %v14613_v13  ;;  %v6978_v62 = vcombine.low %v13840_v2, %v10249_v29  ;;  %v6979_v51 = vcombine.high %v13840_v2, %v10249_v29  ;;  %v6730_v59 = vpop.f32.mrb[59].mxu1 }
 0x85f   : > { %v6782_v6 = vrot.slane %v6774_v35, %v14613_v13  ;;  %v6789_v48 = vrot.slane %v6775_v53, %v14613_v13  ;;  %v6842_v5 = vcombine.low %v13842_v50, %v6730_v59  ;;  %v6843_v39 = vcombine.high %v13842_v50, %v6730_v59 }
 0x860   : > { %v6926_v49 = vcombine.low %v6902_v8, %v6918_v60  ;;  %v6927_v47 = vcombine.high %v6902_v8, %v6918_v60  ;;  %v6942_v18 = vcombine.low %v6909_v55, %v6925_v58  ;;  %v6943_v23 = vcombine.high %v6909_v55, %v6925_v58 }
 0x861   : > { %v6790_v12 = vcombine.low %v6766_v14, %v6782_v6  ;;  %v6791_v36 = vcombine.high %v6766_v14, %v6782_v6  ;;  %v6806_v34 = vcombine.low %v6773_v11, %v6789_v48  ;;  %v6807_v40 = vcombine.high %v6773_v11, %v6789_v48 }
 0x862   : > { %v6934_v32 = vrot.slane %v6926_v49, %v10774_v30  ;;  %v6941_v2 = vrot.slane %v6927_v47, %v10774_v30  ;;  %v6950_v33 = vrot.slane %v6942_v18, %v10774_v30  ;;  %v6957_v20 = vrot.slane %v6943_v23, %v10774_v30 }
 0x863   : > { %v6798_v10 = vrot.slane %v6790_v12, %v10774_v30  ;;  %v6805_v50 = vrot.slane %v6791_v36, %v10774_v30  ;;  %v6814_v57 = vrot.slane %v6806_v34, %v10774_v30  ;;  %v6821_v56 = vrot.slane %v6807_v40, %v10774_v30  ;;  %v13892_v25 = vpop.f32.mrb[56].mxu0 }
 0x864   : > { %v7438_v17 = vcombine.low %v6934_v32, %v6941_v2  ;;  %v9801_v16 = vcombine.high %v6934_v32, %v6941_v2  ;;  %v7454_v43 = vcombine.low %v6950_v33, %v6957_v20  ;;  %v9802_v21 = vcombine.high %v6950_v33, %v6957_v20  ;;  %v13894_v8 = vpop.f32.mrb[57].mxu0 }
 0x865   : > { %v7302_v55 = vcombine.low %v6798_v10, %v6805_v50  ;;  %v9797_v14 = vcombine.high %v6798_v10, %v6805_v50  ;;  %v7318_v11 = vcombine.low %v6814_v57, %v6821_v56  ;;  %v9798_v61 = vcombine.high %v6814_v57, %v6821_v56  ;;  %v13896_v44 = vpop.f32.mrb[58].mxu0 }
 0x866   : > { %v13899_v37 = vrot.slane %v7438_v17, %v14613_v13  ;;  %v13902_v52 = vrot.slane %v9801_v16, %v14613_v13  ;;  %v13905_v35 = vrot.slane %v7454_v43, %v14613_v13  ;;  %v13908_v53 = vrot.slane %v9802_v21, %v14613_v13  ;;  %v13910_v29 = vpop.f32.mrb[59].mxu0 }
 0x867   : > { %v13913_v60 = vrot.slane %v7302_v55, %v14613_v13  ;;  %v13916_v58 = vrot.slane %v9797_v14, %v14613_v13  ;;  %v13919_v59 = vrot.slane %v7318_v11, %v14613_v13  ;;  %v13922_v6 = vrot.slane %v9798_v61, %v14613_v13 }
 0x868   : > { %v6986_v48 = vrot.slane %v6978_v62, %v14613_v13  ;;  %v6993_v49 = vrot.slane %v6979_v51, %v14613_v13  ;;  %v6850_v47 = vrot.slane %v6842_v5, %v14613_v13  ;;  %v6857_v18 = vrot.slane %v6843_v39, %v14613_v13 }
 0x869   : > { %v7166_v23 = vcombine.low %v13844_v4, %v13892_v25  ;;  %v7167_v12 = vcombine.high %v13844_v4, %v13892_v25  ;;  %v7030_v36 = vcombine.low %v13846_v42, %v13894_v8  ;;  %v7031_v34 = vcombine.high %v13846_v42, %v13894_v8 }
 0x86a   : > { %v10252_v40 = vpop.f32.mrb[60].mxu1  ;;  %v6994_v62 = vcombine.low %v13865_v0, %v6986_v48  ;;  %v6995_v51 = vcombine.high %v13865_v0, %v6986_v48  ;;  %v7010_v5 = vcombine.low %v13868_v28, %v6993_v49  ;;  %v7011_v39 = vcombine.high %v13868_v28, %v6993_v49 }
 0x86b   : > { %v6743_v32 = vpop.f32.mrb[61].mxu1  ;;  %v6858_v2 = vcombine.low %v13871_v1, %v6850_v47  ;;  %v6859_v4 = vcombine.high %v13871_v1, %v6850_v47  ;;  %v6874_v33 = vcombine.low %v13874_v63, %v6857_v18  ;;  %v6875_v20 = vcombine.high %v13874_v63, %v6857_v18 }
 0x86c   : > { %v13944_v10 = vpop.f32.mrb[62].mxu1  ;;  %v7002_v42 = vrot.slane %v6994_v62, %v10774_v30  ;;  %v7009_v50 = vrot.slane %v6995_v51, %v10774_v30  ;;  %v7018_v0 = vrot.slane %v7010_v5, %v10774_v30  ;;  %v7025_v57 = vrot.slane %v7011_v39, %v10774_v30 }
 0x86d   : > { %v13950_v28 = vpop.f32.mrb[63].mxu1  ;;  %v6866_v56 = vrot.slane %v6858_v2, %v10774_v30  ;;  %v6873_v1 = vrot.slane %v6859_v4, %v10774_v30  ;;  %v6882_v25 = vrot.slane %v6874_v33, %v10774_v30  ;;  %v6889_v63 = vrot.slane %v6875_v20, %v10774_v30 }
 0x86e   : > { %v7506_v17 = vcombine.low %v7002_v42, %v7009_v50  ;;  %v9803_v16 = vcombine.high %v7002_v42, %v7009_v50  ;;  %v7522_v43 = vcombine.low %v7018_v0, %v7025_v57  ;;  %v9804_v21 = vcombine.high %v7018_v0, %v7025_v57 }
 0x86f   : > { %v7370_v8 = vcombine.low %v6866_v56, %v6873_v1  ;;  %v9799_v55 = vcombine.high %v6866_v56, %v6873_v1  ;;  %v7386_v14 = vcombine.low %v6882_v25, %v6889_v63  ;;  %v9800_v11 = vcombine.high %v6882_v25, %v6889_v63 }
 0x870   : > { %v13957_v61 = vrot.slane %v7506_v17, %v14613_v13  ;;  %v13960_v48 = vrot.slane %v9803_v16, %v14613_v13  ;;  %v13963_v49 = vrot.slane %v7522_v43, %v14613_v13  ;;  %v13966_v47 = vrot.slane %v9804_v21, %v14613_v13 }
 0x871   : > { %v13969_v18 = vrot.slane %v7370_v8, %v14613_v13  ;;  %v13972_v62 = vrot.slane %v9799_v55, %v14613_v13  ;;  %v13975_v51 = vrot.slane %v7386_v14, %v14613_v13  ;;  %v13978_v5 = vrot.slane %v9800_v11, %v14613_v13 }
 0x872   : > { %v7174_v39 = vrot.slane %v7166_v23, %v14613_v13  ;;  %v7181_v2 = vrot.slane %v7167_v12, %v14613_v13  ;;  %v7038_v4 = vrot.slane %v7030_v36, %v14613_v13  ;;  %v7045_v33 = vrot.slane %v7031_v34, %v14613_v13 }
 0x873   : > { %v7234_v20 = vcombine.low %v13848_v31, %v13896_v44  ;;  %v7235_v42 = vcombine.high %v13848_v31, %v13896_v44  ;;  %v7098_v50 = vcombine.low %v13850_v9, %v13910_v29  ;;  %v7099_v0 = vcombine.high %v13850_v9, %v13910_v29 }
 0x874   : > { %v7182_v23 = vcombine.low %v13852_v46, %v10252_v40  ;;  %v7183_v12 = vcombine.high %v13852_v46, %v10252_v40  ;;  %v7046_v36 = vcombine.low %v13854_v19, %v6743_v32  ;;  %v7047_v34 = vcombine.high %v13854_v19, %v6743_v32 }
 0x875   : > { %v7242_v57 = vrot.slane %v7234_v20, %v14613_v13  ;;  %v13998_v56 = vrot.slane %v7235_v42, %v14613_v13  ;;  %v14001_v31 = vrot.slane %v7098_v50, %v14613_v13  ;;  %v14004_v44 = vrot.slane %v7099_v0, %v14613_v13 }
 0x876   : > { %v7190_v9 = vrot.slane %v7182_v23, %v14613_v13  ;;  %v7197_v29 = vrot.slane %v7183_v12, %v14613_v13  ;;  %v7054_v46 = vrot.slane %v7046_v36, %v14613_v13  ;;  %v7061_v40 = vrot.slane %v7047_v34, %v14613_v13 }
 0x877   : > { %v7250_v19 = vcombine.low %v13856_v45, %v13944_v10  ;;  %v7251_v32 = vcombine.high %v13856_v45, %v13944_v10  ;;  %v7114_v1 = vcombine.low %v13858_v27, %v13950_v28  ;;  %v7115_v25 = vcombine.high %v13858_v27, %v13950_v28 }
 0x878   : > { %v7198_v63 = vcombine.low %v7174_v39, %v7190_v9  ;;  %v7199_v17 = vcombine.high %v7174_v39, %v7190_v9  ;;  %v7214_v16 = vcombine.low %v7181_v2, %v7197_v29  ;;  %v7215_v43 = vcombine.high %v7181_v2, %v7197_v29 }
 0x879   : > { %v7062_v21 = vcombine.low %v7038_v4, %v7054_v46  ;;  %v7063_v8 = vcombine.high %v7038_v4, %v7054_v46  ;;  %v7078_v55 = vcombine.low %v7045_v33, %v7061_v40  ;;  %v7079_v14 = vcombine.high %v7045_v33, %v7061_v40 }
 0x87a   : > { %v7206_v11 = vrot.slane %v7198_v63, %v10774_v30  ;;  %v7213_v20 = vrot.slane %v7199_v17, %v10774_v30  ;;  %v7222_v45 = vrot.slane %v7214_v16, %v10774_v30  ;;  %v7229_v10 = vrot.slane %v7215_v43, %v10774_v30 }
 0x87b   : > { %v7070_v42 = vrot.slane %v7062_v21, %v10774_v30  ;;  %v7077_v27 = vrot.slane %v7063_v8, %v10774_v30  ;;  %v7086_v28 = vrot.slane %v7078_v55, %v10774_v30  ;;  %v7093_v39 = vrot.slane %v7079_v14, %v10774_v30 }
 0x87c   : > { %v7710_v2 = vcombine.low %v7206_v11, %v7213_v20  ;;  %v9809_v4 = vcombine.high %v7206_v11, %v7213_v20  ;;  %v7726_v50 = vcombine.low %v7222_v45, %v7229_v10  ;;  %v9810_v33 = vcombine.high %v7222_v45, %v7229_v10 }
 0x87d   : > { %v7574_v0 = vcombine.low %v7070_v42, %v7077_v27  ;;  %v9805_v23 = vcombine.high %v7070_v42, %v7077_v27  ;;  %v7590_v12 = vcombine.low %v7086_v28, %v7093_v39  ;;  %v9806_v36 = vcombine.high %v7086_v28, %v7093_v39 }
 0x87e   : > { %v14027_v34 = vrot.slane %v7710_v2, %v14613_v13  ;;  %v14030_v9 = vrot.slane %v9809_v4, %v14613_v13  ;;  %v14033_v29 = vrot.slane %v7726_v50, %v14613_v13  ;;  %v14036_v46 = vrot.slane %v9810_v33, %v14613_v13 }
 0x87f   : > { %v14039_v40 = vrot.slane %v7574_v0, %v14613_v13  ;;  %v14042_v63 = vrot.slane %v9805_v23, %v14613_v13  ;;  %v14045_v17 = vrot.slane %v7590_v12, %v14613_v13  ;;  %v14048_v16 = vrot.slane %v9806_v36, %v14613_v13 }
 0x880   : > { %v7258_v43 = vrot.slane %v7250_v19, %v14613_v13  ;;  %v7265_v21 = vrot.slane %v7251_v32, %v14613_v13  ;;  %v7122_v8 = vrot.slane %v7114_v1, %v14613_v13  ;;  %v7129_v55 = vrot.slane %v7115_v25, %v14613_v13 }
 0x881   : > { %v7470_v14 = vcombine.low %v13899_v37, %v13902_v52  ;;  %v7486_v11 = vcombine.low %v13905_v35, %v13908_v53  ;;  %v7538_v20 = vcombine.low %v13957_v61, %v13960_v48  ;;  %v7554_v45 = vcombine.low %v13963_v49, %v13966_v47 }
 0x882   : > { %v7266_v10 = vcombine.low %v7242_v57, %v7258_v43  ;;  %v7267_v19 = vcombine.high %v7242_v57, %v7258_v43  ;;  %v7282_v32 = vcombine.low %v13998_v56, %v7265_v21  ;;  %v7283_v1 = vcombine.high %v13998_v56, %v7265_v21 }
 0x883   : > { %v7130_v25 = vcombine.low %v14001_v31, %v7122_v8  ;;  %v7131_v42 = vcombine.high %v14001_v31, %v7122_v8  ;;  %v7146_v27 = vcombine.low %v14004_v44, %v7129_v55  ;;  %v7147_v28 = vcombine.high %v14004_v44, %v7129_v55 }
 0x884   : > { %v7274_v39 = vrot.slane %v7266_v10, %v10774_v30  ;;  %v7281_v2 = vrot.slane %v7267_v19, %v10774_v30  ;;  %v7290_v4 = vrot.slane %v7282_v32, %v10774_v30  ;;  %v7297_v57 = vrot.slane %v7283_v1, %v10774_v30 }
 0x885   : > { %v7138_v50 = vrot.slane %v7130_v25, %v10774_v30  ;;  %v7145_v56 = vrot.slane %v7131_v42, %v10774_v30  ;;  %v7154_v33 = vrot.slane %v7146_v27, %v10774_v30  ;;  %v7161_v31 = vrot.slane %v7147_v28, %v10774_v30 }
 0x886   : > { %v7778_v0 = vcombine.low %v7274_v39, %v7281_v2  ;;  %v9811_v23 = vcombine.high %v7274_v39, %v7281_v2  ;;  %v7794_v12 = vcombine.low %v7290_v4, %v7297_v57  ;;  %v9812_v44 = vcombine.high %v7290_v4, %v7297_v57 }
 0x887   : > { %v7642_v36 = vcombine.low %v7138_v50, %v7145_v56  ;;  %v9807_v43 = vcombine.high %v7138_v50, %v7145_v56  ;;  %v7658_v21 = vcombine.low %v7154_v33, %v7161_v31  ;;  %v9808_v8 = vcombine.high %v7154_v33, %v7161_v31 }
 0x888   : > { %v14077_v55 = vrot.slane %v7778_v0, %v14613_v13  ;;  %v14080_v10 = vrot.slane %v9811_v23, %v14613_v13  ;;  %v14083_v19 = vrot.slane %v7794_v12, %v14613_v13  ;;  %v14086_v32 = vrot.slane %v9812_v44, %v14613_v13 }
 0x889   : > { %v14089_v1 = vrot.slane %v7642_v36, %v14613_v13  ;;  %v14092_v25 = vrot.slane %v9807_v43, %v14613_v13  ;;  %v14095_v42 = vrot.slane %v7658_v21, %v14613_v13  ;;  %v14098_v27 = vrot.slane %v9808_v8, %v14613_v13 }
 0x88a   : > { %v14101_v28 = vrot.slane %v7470_v14, %v10774_v30  ;;  %v14104_v39 = vrot.slane %v7486_v11, %v10774_v30  ;;  %v14107_v2 = vrot.slane %v7538_v20, %v10774_v30  ;;  %v14110_v4 = vrot.slane %v7554_v45, %v10774_v30 }
 0x88b   : > { %v7471_v57 = vcombine.high %v13899_v37, %v13902_v52  ;;  %v7487_v50 = vcombine.high %v13905_v35, %v13908_v53  ;;  %v7539_v56 = vcombine.high %v13957_v61, %v13960_v48  ;;  %v7555_v14 = vcombine.high %v13963_v49, %v13966_v47 }
 0x88c   : > { %v7503_v11 = vcombine.high %v14101_v28, %v14104_v39  ;;  %v7571_v20 = vcombine.high %v14107_v2, %v14110_v4  ;;  %v7334_v45 = vcombine.low %v13913_v60, %v13916_v58  ;;  %v7350_v37 = vcombine.low %v13919_v59, %v13922_v6 }
 0x88d   : > { %v7485_v52 = vrot.slane %v7471_v57, %v10774_v30  ;;  %v7501_v35 = vrot.slane %v7487_v50, %v10774_v30  ;;  %v7553_v53 = vrot.slane %v7539_v56, %v10774_v30  ;;  %v7569_v61 = vrot.slane %v7555_v14, %v10774_v30  ;;  %v10350_v56 = vld [vmem:[%s14544_s7] sm:$0xff]  }
 0x88e   : > { %7858 = vrot.lane.b32.xlu1 %v7503_v11, %s10585_s20  ;;  %7860 = vrot.lane.b32.xlu0 %v7571_v20, %s10585_s20  ;;  %v14135_v48 = vrot.slane %v7334_v45, %v10774_v30  ;;  %v14138_v49 = vrot.slane %v7350_v37, %v10774_v30  ;;  %v7402_v47 = vcombine.low %v13969_v18, %v13972_v62 }
 0x88f   : > { %v7504_v33 = vcombine.low %v7485_v52, %v7501_v35  ;;  %v7572_v31 = vcombine.low %v7553_v53, %v7569_v61  ;;  %v7505_v0 = vcombine.high %v7485_v52, %v7501_v35  ;;  %v7573_v23 = vcombine.high %v7553_v53, %v7569_v61  ;;  %10254 = vmatprep.subr.bf16.mxu0 %v10350_v56 }
 0x890   : > { %v7367_v12 = vcombine.high %v14135_v48, %v14138_v49  ;;  %v14145_v44 = vrot.slane %v7402_v47, %v10774_v30  ;;  %v7418_v36 = vcombine.low %v13975_v51, %v13978_v5  ;;  %v7335_v43 = vcombine.high %v13913_v60, %v13916_v58  ;;  %10255 = vmatpush3.bf16.msra.mxu0 %v10350_v56 }
 0x891   : > { %v7351_v21 = vcombine.high %v13919_v59, %v13922_v6  ;;  %v7403_v8 = vcombine.high %v13969_v18, %v13972_v62  ;;  %v7419_v57 = vcombine.high %v13975_v51, %v13978_v5  ;;  %v7742_v50 = vcombine.low %v14027_v34, %v14030_v9 }
 0x892   : > { %7890 = vrot.lane.b32.xlu1 %v7504_v33, %s10586_s23  ;;  %7892 = vrot.lane.b32.xlu0 %v7572_v31, %s10586_s23  ;;  %v14165_v60 = vrot.slane %v7418_v36, %v10774_v30  ;;  %v14168_v58 = vrot.slane %v7335_v43, %v10774_v30  ;;  %v7758_v59 = vcombine.low %v14033_v29, %v14036_v46 }
 0x893   : > { %v14173_v6 = vrot.slane %v7351_v21, %v10774_v30  ;;  %v14176_v18 = vrot.slane %v7403_v8, %v10774_v30  ;;  %v14179_v62 = vrot.slane %v7419_v57, %v10774_v30  ;;  %v14182_v51 = vrot.slane %v7742_v50, %v10774_v30 }
 0x894   : > { %v7435_v5 = vcombine.high %v14145_v44, %v14165_v60  ;;  %v14187_v14 = vrot.slane %v7758_v59, %v10774_v30  ;;  %v7810_v11 = vcombine.low %v14077_v55, %v14080_v10  ;;  %v7826_v20 = vcombine.low %v14083_v19, %v14086_v32 }
 0x895   : > { %v7368_v45 = vcombine.low %v14168_v58, %v14173_v6  ;;  %v7436_v37 = vcombine.low %v14176_v18, %v14179_v62  ;;  %v7369_v52 = vcombine.high %v14168_v58, %v14173_v6  ;;  %v7437_v35 = vcombine.high %v14176_v18, %v14179_v62 }
 0x896   : > { %7922 = vrot.lane.b32.xlu1 %v7505_v0, %s10587_s25  ;;  %7924 = vrot.lane.b32.xlu0 %v7573_v23, %s10587_s25  ;;  %v7775_v53 = vcombine.high %v14182_v51, %v14187_v14  ;;  %v14206_v61 = vrot.slane %v7810_v11, %v10774_v30  ;;  %v14209_v47 = vrot.slane %v7826_v20, %v10774_v30 }
 0x897   : > { %v7743_v33 = vcombine.high %v14027_v34, %v14030_v9  ;;  %v7759_v31 = vcombine.high %v14033_v29, %v14036_v46  ;;  %v7811_v0 = vcombine.high %v14077_v55, %v14080_v10  ;;  %v7827_v23 = vcombine.high %v14083_v19, %v14086_v32  ;;  %v10351_v10 = vld [vmem:[%s14544_s7 + $0x8] sm:$0xff]  }
 0x898   : > { %v7843_v36 = vcombine.high %v14206_v61, %v14209_v47  ;;  %v7606_v43 = vcombine.low %v14039_v40, %v14042_v63  ;;  %v7622_v21 = vcombine.low %v14045_v17, %v14048_v16  ;;  %v7674_v34 = vcombine.low %v14089_v1, %v14092_v25  ;;  %10256 = vmatprep.subr.bf16.mxu0 %v10351_v10 }
 0x899   : > { %v7757_v9 = vrot.slane %v7743_v33, %v10774_v30  ;;  %v7773_v29 = vrot.slane %v7759_v31, %v10774_v30  ;;  %v7825_v46 = vrot.slane %v7811_v0, %v10774_v30  ;;  %v7841_v55 = vrot.slane %v7827_v23, %v10774_v30  ;;  %10257 = vmatpush3.bf16.msra.mxu0 %v10351_v10 }
 0x89a   : > { %7854 = vrot.lane.b32.xlu1 %v7367_v12, %s10585_s20  ;;  %7856 = vrot.lane.b32.xlu0 %v7435_v5, %s10585_s20  ;;  %v14237_v19 = vrot.slane %v7606_v43, %v10774_v30  ;;  %v14240_v32 = vrot.slane %v7622_v21, %v10774_v30  ;;  %v14243_v8 = vrot.slane %v7674_v34, %v10774_v30 }
 0x89b   : > { %v7776_v57 = vcombine.low %v7757_v9, %v7773_v29  ;;  %v7844_v50 = vcombine.low %v7825_v46, %v7841_v55  ;;  %v7690_v56 = vcombine.low %v14095_v42, %v14098_v27  ;;  %v7607_v58 = vcombine.high %v14039_v40, %v14042_v63 }
 0x89c   : > { %v7639_v12 = vcombine.high %v14237_v19, %v14240_v32  ;;  %v7623_v59 = vcombine.high %v14045_v17, %v14048_v16  ;;  %v7675_v6 = vcombine.high %v14089_v1, %v14092_v25  ;;  %v7691_v18 = vcombine.high %v14095_v42, %v14098_v27 }
 0x89d   : > { %v14258_v62 = vrot.slane %v7690_v56, %v10774_v30  ;;  %v7621_v5 = vrot.slane %v7607_v58, %v10774_v30  ;;  %v7777_v40 = vcombine.high %v7757_v9, %v7773_v29  ;;  %v7845_v63 = vcombine.high %v7825_v46, %v7841_v55 }
 0x89e   : > { %7886 = vrot.lane.b32.xlu1 %v7368_v45, %s10586_s23  ;;  %7888 = vrot.lane.b32.xlu0 %v7436_v37, %s10586_s23  ;;  %v7637_v17 = vrot.slane %v7623_v59, %v10774_v30  ;;  %v7689_v16 = vrot.slane %v7675_v6, %v10774_v30  ;;  %v7705_v1 = vrot.slane %v7691_v18, %v10774_v30 }
 0x89f   : > { %v7707_v25 = vcombine.high %v14243_v8, %v14258_v62  ;;  %v7502_v42 = vcombine.low %v14101_v28, %v14104_v39  ;;  %v7570_v27 = vcombine.low %v14107_v2, %v14110_v4  ;;  %v7366_v11 = vcombine.low %v14135_v48, %v14138_v49 }
 0x8a0   : > { %v7640_v20 = vcombine.low %v7621_v5, %v7637_v17  ;;  %v7708_v45 = vcombine.low %v7689_v16, %v7705_v1  ;;  %v7641_v37 = vcombine.high %v7621_v5, %v7637_v17  ;;  %v7709_v33 = vcombine.high %v7689_v16, %v7705_v1 }
 0x8a1   : > { %v7434_v31 = vcombine.low %v14145_v44, %v14165_v60  ;;  %v7774_v0 = vcombine.low %v14182_v51, %v14187_v14  ;;  %v7842_v23 = vcombine.low %v14206_v61, %v14209_v47  ;;  %v7638_v28 = vcombine.low %v14237_v19, %v14240_v32 }
 0x8a2   : > { %7918 = vrot.lane.b32.xlu1 %v7369_v52, %s10587_s25  ;;  %7920 = vrot.lane.b32.xlu0 %v7437_v35, %s10587_s25  ;;  %v7706_v39 = vcombine.low %v14243_v8, %v14258_v62  ;;  %v9894_v52 = vld [vmem:[%s14551_s14] ss:$0 sm:$0xff] }
 0x8a3   : > { %v9054_v34 = vadd.f32 %v9894_v52, %v13757_v41  ;;  %v9051_v41 = vadd.f32 %v9894_v52, %v13719_v22  ;;  %v9052_v62 = vadd.f32 %v9894_v52, %v13778_v15 }
 0x8a6   : > { %7866 = vrot.lane.b32.xlu1 %v7775_v53, %s10585_s20  ;;  %7868 = vrot.lane.b32.xlu0 %v7843_v36, %s10585_s20  ;;  %v9053_v36 = vadd.f32 %v9894_v52, %v13787_v38 }
 0x8aa   : > { %7898 = vrot.lane.b32.xlu1 %v7776_v57, %s10586_s23  ;;  %7900 = vrot.lane.b32.xlu0 %v7844_v50, %s10586_s23 }
 0x8ae   : > { %7862 = vrot.lane.b32.xlu1 %v7639_v12, %s10585_s20  ;;  %7864 = vrot.lane.b32.xlu0 %v7707_v25, %s10585_s20  ;;  %s9598_s20 = scalar_lea.sflag [#allocation3], %s485_s17 }
 0x8b2   : > { %7894 = vrot.lane.b32.xlu1 %v7640_v20, %s10586_s23  ;;  %7896 = vrot.lane.b32.xlu0 %v7708_v45, %s10586_s23  ;;  %s9675_s23 = sshll.u32 %s485_s17, 4 }
 0x8b6   : > { %7926 = vrot.lane.b32.xlu1 %v7641_v37, %s10587_s25  ;;  %7928 = vrot.lane.b32.xlu0 %v7709_v33, %s10587_s25 }
 0x8ba   : > { %7930 = vrot.lane.b32.xlu1 %v7777_v40, %s10587_s25  ;;  %7932 = vrot.lane.b32.xlu0 %v7845_v63, %s10587_s25  ;;  %s14466_s25 = scalar_lea.vmem [#allocation2], %s9675_s23 }
 0x8bb   : > { %s9612_s0 = sshll.u32 %s14466_s25, 4  ;;  %s14494_s0 = int_to_ptr.vmem [resolvable:$true] %s9612_s0 }
 0x8bc   : > { %s10512_s22 = scalar_lea.vmem %s14494_s0, 256 }
 0x8bd   : > { %p10513_p11 = scmp.ne.s32.totalorder %s14494_s0, %s10512_s22 }
 0x8bf   : > { %p10514_p12 = pnand %p10513_p11, %p10708_p5 }
 0x8c1   : > { %p10515_p13 = pneg %p10514_p12 }
 0x900   : > { %v7859_v2 = vpop.permute.xlu1 %7858  ;;  %v7861_v4 = vpop.permute.xlu0 %7860 }
 0x901   : > { %v7944_v44 = vsel %vm5156_vm9, %v7502_v42, %v7859_v2  ;;  %v7945_v60 = vsel %vm5156_vm9, %v7570_v27, %v7861_v4  ;;  %v9055_v2 = vadd.f32 %v9894_v52, %v13836_v54 }
 0x904   : > { %v7891_v48 = vpop.permute.xlu1 %7890  ;;  %v7893_v49 = vpop.permute.xlu0 %7892 }
 0x905   : > { %v7952_v35 = vsel %vm6077_vm12, %v7944_v44, %v7891_v48  ;;  %v7953_v53 = vsel %vm6077_vm12, %v7945_v60, %v7893_v49  ;;  %v9056_v49 = vadd.f32 %v9894_v52, %v13831_v24 }
 0x908   : > { %v7923_v43 = vpop.permute.xlu1 %7922  ;;  %v7925_v21 = vpop.permute.xlu0 %7924 }
 0x909   : > { %v7961_v9 = vsel %vm7958_vm2, %v7952_v35, %v7923_v43  ;;  %v7962_v29 = vsel %vm7958_vm2, %v7953_v53, %v7925_v21 }
 0x90a   : > { %v9061_v46 = vadd.f32 %v9053_v36, %v7961_v9  ;;  %v9062_v55 = vadd.f32 %v9054_v34, %v7962_v29  ;;  %v9057_v36 = vadd.f32 %v9894_v52, %v13838_v7 }
 0x90c   : > { %v9068_v10 = vpack.c.bf16 %v9062_v55, %v9061_v46  ;;  %v7855_v8 = vpop.permute.xlu1 %7854  ;;  %v7857_v57 = vpop.permute.xlu0 %7856 }
 0x90d   : > { %v7942_v58 = vsel %vm5156_vm9, %v7366_v11, %v7855_v8  ;;  %v7943_v12 = vsel %vm5156_vm9, %v7434_v31, %v7857_v57 }
 0x910   : > { %v7887_v50 = vpop.permute.xlu1 %7886  ;;  %v7889_v56 = vpop.permute.xlu0 %7888 }
 0x911   : > { %v7950_v38 = vsel %vm6077_vm12, %v7942_v58, %v7887_v50  ;;  %v7951_v59 = vsel %vm6077_vm12, %v7943_v12, %v7889_v56 }
 0x914   : > { %v7919_v6 = vpop.permute.xlu1 %7918  ;;  %v7921_v18 = vpop.permute.xlu0 %7920 }
 0x915   : > { %v7959_v5 = vsel %vm7958_vm2, %v7950_v38, %v7919_v6  ;;  %v7960_v40 = vsel %vm7958_vm2, %v7951_v59, %v7921_v18 }
 0x916   : > { %v9059_v63 = vadd.f32 %v9051_v41, %v7959_v5  ;;  %v9060_v17 = vadd.f32 %v9052_v62, %v7960_v40 }
 0x918   : > { %v9067_v16 = vpack.c.bf16 %v9060_v17, %v9059_v63  ;;  %v7867_v1 = vpop.permute.xlu1 %7866  ;;  %v7869_v25 = vpop.permute.xlu0 %7868 }
 0x919   : > { %v7948_v32 = vsel %vm5156_vm9, %v7774_v0, %v7867_v1  ;;  %v7949_v54 = vsel %vm5156_vm9, %v7842_v23, %v7869_v25 }
 0x91a   : > { %10258 = vmatprep.mubr.msk.bf16.mxu0 %vm529_vm0, %v9067_v16 }
 0x91b   : > { %10259 = vmatmul.mubr.msk.bf16.vlgmr.msra.gmra.mrb[60].mxu0 %vm529_vm0, %v9068_v10 }
 0x91c   : > { %v7899_v42 = vpop.permute.xlu1 %7898  ;;  %v7901_v27 = vpop.permute.xlu0 %7900 }
 0x91d   : > { %v7956_v24 = vsel %vm6077_vm12, %v7948_v32, %v7899_v42 }
 0x920   : > { %v7863_v22 = vpop.permute.xlu1 %7862  ;;  %v7865_v11 = vpop.permute.xlu0 %7864 }
 0x921   : > { %v7946_v15 = vsel %vm5156_vm9, %v7638_v28, %v7863_v22  ;;  %v7947_v37 = vsel %vm5156_vm9, %v7706_v39, %v7865_v11  ;;  %v9058_v28 = vadd.f32 %v9894_v52, %v13833_v3  ;;  %v7957_v39 = vsel %vm6077_vm12, %v7949_v54, %v7901_v27  ;;  %v9895_v3 = vld [vmem:[%s14545_s8] ss:$0 sm:$0xff] }
 0x924   : > { %v7895_v20 = vpop.permute.xlu1 %7894  ;;  %v7897_v45 = vpop.permute.xlu0 %7896 }
 0x925   : > { %v7954_v33 = vsel %vm6077_vm12, %v7946_v15, %v7895_v20  ;;  %v7955_v31 = vsel %vm6077_vm12, %v7947_v37, %v7897_v45 }
 0x928   : > { %v7927_v4 = vpop.permute.xlu1 %7926  ;;  %v7929_v48 = vpop.permute.xlu0 %7928 }
 0x929   : > { %v7963_v44 = vsel %vm7958_vm2, %v7954_v33, %v7927_v4  ;;  %v7964_v60 = vsel %vm7958_vm2, %v7955_v31, %v7929_v48 }
 0x92a   : > { %v9063_v35 = vadd.f32 %v9055_v2, %v7963_v44  ;;  %v9064_v19 = vadd.f32 %v9056_v49, %v7964_v60 }
 0x92c   : > { %v9069_v53 = vpack.c.bf16 %v9064_v19, %v9063_v35  ;;  %v7931_v43 = vpop.permute.xlu1 %7930  ;;  %v7933_v21 = vpop.permute.xlu0 %7932 }
 0x92d   : > { %v7965_v51 = vsel %vm7958_vm2, %v7956_v24, %v7931_v43  ;;  %v7966_v14 = vsel %vm7958_vm2, %v7957_v39, %v7933_v21 }
 0x92e   : > { %v9065_v0 = vadd.f32 %v9057_v36, %v7965_v51  ;;  %v9066_v34 = vadd.f32 %v9058_v28, %v7966_v14  ;;  %10262 = vmatprep.mubr.msk.bf16.mxu0 %vm529_vm0, %v9069_v53 }
 0x930   : > { %v9070_v61 = vpack.c.bf16 %v9066_v34, %v9065_v0 }
 0x932   : > { %10263 = vmatmul.mubr.msk.bf16.gmra.mrb[64].mxu0 %vm529_vm0, %v9070_v61 }
 0x9ee   : > { %v10260_v47 = vpop.f32.mrb[60].mxu0 }
 0x9ef   : > { %v9140_v23 = vpop.f32.mrb[61].mxu0  ;;  %v9149_v46 = vadd.f32 %v10260_v47, %v9895_v3 }
 0x9f0   : > { %v9141_v7 = vadd.f32 %v9895_v3, %v9140_v23  ;;  %v10261_v52 = vpop.f32.mrb[62].mxu0 }
 0x9f1   : > { %v9143_v9 = vpop.f32.mrb[63].mxu0  ;;  %v9152_v55 = vadd.f32 %v10261_v52, %v9895_v3 }
 0x9f2   : > { %9171 = vxpose.xlu1.b32.start [1/8] (short) (narrow) %v9141_v7, 32  ;;  %v9144_v29 = vadd.f32 %v9895_v3, %v9143_v9 }
 0x9f6   : > { %9172 = vxpose.xlu1.b32.cont [2/8] (short) (narrow) %v9144_v29, 32 }
 0x9fa   : > { %9173 = vxpose.xlu1.b32.cont [3/8] (short) (narrow) %v9149_v46, 32 }
 0x9fe   : > { %9174 = vxpose.xlu1.b32.cont [4/8] (short) (narrow) %v9152_v55, 32 }
 0xa05   : > { %v10264_v10 = vpop.f32.mrb[64].mxu0 }
 0xa06   : > { %v9156_v8 = vpop.f32.mrb[65].mxu0  ;;  %v9165_v12 = vadd.f32 %v10264_v10, %v9895_v3 }
 0xa07   : > { %v9157_v57 = vadd.f32 %v9895_v3, %v9156_v8  ;;  %v10265_v50 = vpop.f32.mrb[66].mxu0 }
 0xa08   : > { %v9159_v56 = vpop.f32.mrb[67].mxu0  ;;  %v9168_v38 = vadd.f32 %v10265_v50, %v9895_v3 }
 0xa09   : > { %9175 = vxpose.xlu1.b32.cont [5/8] (short) (narrow) %v9157_v57, 32  ;;  %v9160_v58 = vadd.f32 %v9895_v3, %v9159_v56 }
 0xa0d   : > { %9176 = vxpose.xlu1.b32.cont [6/8] (short) (narrow) %v9160_v58, 32 }
 0xa11   : > { %9177 = vxpose.xlu1.b32.cont [7/8] (short) (narrow) %v9165_v12, 32 }
 0xa15   : > { %9178 = vxpose.xlu1.b32.end [8/8] (short) (narrow) %v9168_v38, 32 }
 0xa79   : > { %v9187_v59 = vpop.trf.xlu1 }
 0xa7a   : > { %v9203_v41 = vcombine.high %v9187_v59, %v14626_v26  ;;  %v9210_v6 = vrot.slane %v9187_v59, %v14613_v13 }
 0xa7c   : > { %v9218_v18 = vcombine.high %v9210_v6, %v14626_v26  ;;  %v14353_v62 = vrot.slane %v9210_v6, %v10774_v30  ;;  %v9217_v5 = vrot.slane %v9203_v41, %v14613_v13 }
 0xa7d   : > { %v9188_v17 = vpop.trf.xlu1 }
 0xa7e   : > { %v14357_v40 = vrot.slane %v9218_v18, %v10774_v30  ;;  %v9248_v63 = vcombine.high %v14353_v62, %v14626_v26  ;;  %v9233_v16 = vcombine.high %v9217_v5, %v14626_v26  ;;  %v14364_v1 = vrot.slane %v9217_v5, %v10774_v30 }
 0xa7f   : > { %v9259_v42 = vrot.slane %v9188_v17, %v14613_v13  ;;  %v9252_v20 = vcombine.high %v9188_v17, %v14626_v26 }
 0xa80   : > { %9400 = vrot.lane.b32.xlu0 %v9248_v63, %s10588_s27  ;;  %v9249_v25 = vcombine.high %v14357_v40, %v14626_v26  ;;  %v14371_v27 = vrot.slane %v9233_v16, %v10774_v30  ;;  %v9250_v22 = vcombine.high %v14364_v1, %v14626_v26  ;;  %v14635_v16 = vld [vmem:[#allocation8_spill] sm:$0xff] }
 0xa81   : > { %v14377_v11 = vrot.slane %v9259_v42, %v10774_v30  ;;  %v9267_v45 = vcombine.high %v9259_v42, %v14626_v26  ;;  %v9266_v33 = vrot.slane %v9252_v20, %v14613_v13  ;;  %v9189_v2 = vpop.trf.xlu1 }
 0xa82   : > { %v9251_v15 = vcombine.high %v14371_v27, %v14626_v26  ;;  %v9308_v44 = vrot.slane %v9189_v2, %v14613_v13  ;;  %v9301_v32 = vcombine.high %v9189_v2, %v14626_v26 }
 0xa83   : > { %v9297_v37 = vcombine.high %v14377_v11, %v14626_v26  ;;  %v9281_v31 = vrot.slane %v9267_v45, %v10774_v30  ;;  %v9282_v4 = vcombine.high %v9266_v33, %v14626_v26  ;;  %v9289_v48 = vrot.slane %v9266_v33, %v10774_v30 }
 0xa84   : > { %9404 = vrot.lane.b32.xlu0 %v9249_v25, %s10588_s27  ;;  %v14398_v19 = vrot.slane %v9308_v44, %v10774_v30  ;;  %v9316_v54 = vcombine.high %v9308_v44, %v14626_v26  ;;  %v9315_v39 = vrot.slane %v9301_v32, %v14613_v13 }
 0xa85   : > { %v9298_v49 = vcombine.high %v9281_v31, %v14626_v26  ;;  %v9296_v60 = vrot.slane %v9282_v4, %v10774_v30  ;;  %v9299_v35 = vcombine.high %v9289_v48, %v14626_v26  ;;  %v9190_v36 = vpop.trf.xlu1 }
 0xa86   : > { %v9346_v24 = vcombine.high %v14398_v19, %v14626_v26  ;;  %v14408_v53 = vrot.slane %v9316_v54, %v10774_v30  ;;  %v9331_v43 = vcombine.high %v9315_v39, %v14626_v26  ;;  %v14413_v21 = vrot.slane %v9315_v39, %v10774_v30 }
 0xa87   : > { %v9300_v28 = vcombine.high %v9296_v60, %v14626_v26  ;;  %v9357_v14 = vrot.slane %v9190_v36, %v14613_v13  ;;  %v9350_v3 = vcombine.high %v9190_v36, %v14626_v26 }
 0xa88   : > { %9408 = vrot.lane.b32.xlu0 %v9250_v22, %s10588_s27  ;;  %v9347_v51 = vcombine.high %v14408_v53, %v14626_v26  ;;  %v9345_v0 = vrot.slane %v9331_v43, %v10774_v30  ;;  %v9348_v34 = vcombine.high %v14413_v21, %v14626_v26 }
 0xa89   : > { %v14424_v61 = vrot.slane %v9357_v14, %v10774_v30  ;;  %v9365_v47 = vcombine.high %v9357_v14, %v14626_v26  ;;  %v9364_v52 = vrot.slane %v9350_v3, %v14613_v13 }
 0xa8a   : > { %v9349_v23 = vcombine.high %v9345_v0, %v14626_v26 }
 0xa8b   : > { %v9395_v7 = vcombine.high %v14424_v61, %v14626_v26  ;;  %v9379_v9 = vrot.slane %v9365_v47, %v10774_v30  ;;  %v9380_v29 = vcombine.high %v9364_v52, %v14626_v26  ;;  %v9387_v46 = vrot.slane %v9364_v52, %v10774_v30 }
 0xa8c   : > { %9412 = vrot.lane.b32.xlu0 %v9251_v15, %s10588_s27 }
 0xa8d   : > { %v9396_v55 = vcombine.high %v9379_v9, %v14626_v26  ;;  %v9394_v10 = vrot.slane %v9380_v29, %v10774_v30  ;;  %v9397_v8 = vcombine.high %v9387_v46, %v14626_v26 }
 0xa8f   : > { %v9398_v13 = vcombine.high %v9394_v10, %v14626_v26 }
 0xa90   : > { %9416 = vrot.lane.b32.xlu0 %v9297_v37, %s10588_s27 }
 0xa94   : > { %9420 = vrot.lane.b32.xlu0 %v9298_v49, %s10588_s27 }
 0xa98   : > { %9424 = vrot.lane.b32.xlu0 %v9299_v35, %s10588_s27 }
 0xa9c   : > { %9428 = vrot.lane.b32.xlu0 %v9300_v28, %s10588_s27 }
 0xaa0   : > { %9432 = vrot.lane.b32.xlu0 %v9346_v24, %s10588_s27 }
 0xaa4   : > { %9436 = vrot.lane.b32.xlu0 %v9347_v51, %s10588_s27 }
 0xaa8   : > { %9440 = vrot.lane.b32.xlu0 %v9348_v34, %s10588_s27 }
 0xaac   : > { %9444 = vrot.lane.b32.xlu0 %v9349_v23, %s10588_s27 }
 0xab0   : > { %9448 = vrot.lane.b32.xlu0 %v9395_v7, %s10588_s27 }
 0xab4   : > { %9452 = vrot.lane.b32.xlu0 %v9396_v55, %s10588_s27 }
 0xab8   : > { %9456 = vrot.lane.b32.xlu0 %v9397_v8, %s10588_s27 }
 0xabc   : > { %9460 = vrot.lane.b32.xlu0 %v9398_v13, %s10588_s27  ;;  %s10589_s27 = smov [#allocation2]  }
 0xabd   : > { %s10516_s23 = sshll.u32 %s10589_s27, 4  ;;  %s10517_s23 = int_to_ptr.vmem [resolvable:$false] %s10516_s23 }
 0xabe   : > { %s10518_s1 = scalar_lea.vmem %s10517_s23, 512  ;;  %p10519_p0 = scmp.lt.s32.totalorder %s14494_s0, %s10517_s23 }
 0xabf   : > { %p10520_p1 = scmp.lt.s32.totalorder %s10518_s1, %s10512_s22 }
 0xac1   : > { %p10521_p2 = por %p10520_p1, %p10519_p0 }
 0xac3   : > { %p10522_p3 = pnand %p10521_p2, %p10515_p13 }
 0xaf2   : > { %v9401_v57 = vpop.permute.xlu0 %9400 }
 0xaf3   : > { %v9463_v18 = vsel %vm1380_vm1, %v14353_v62, %v9401_v57 }
 0xaf6   : > { %v9405_v50 = vpop.permute.xlu0 %9404 }
 0xaf7   : > { %v9464_v30 = vsel %vm1380_vm1, %v14357_v40, %v9405_v50 }
 0xaf8   : > { %v9495_v63 = vcombine.low %v9463_v18, %v9464_v30 }
 0xafa   : > { %v9409_v56 = vpop.permute.xlu0 %9408  ;;  %v9505_v22 = vrot.slane %v9495_v63, %v14635_v16 }
 0xafb   : > { %v9465_v41 = vsel %vm1380_vm1, %v14364_v1, %v9409_v56 }
 0xafe   : > { %v9413_v58 = vpop.permute.xlu0 %9412 }
 0xaff   : > { %v9466_v59 = vsel %vm1380_vm1, %v14371_v27, %v9413_v58 }
 0xb00   : > { %v9496_v6 = vcombine.low %v9465_v41, %v9466_v59 }
 0xb02   : > { %v9417_v12 = vpop.permute.xlu0 %9416  ;;  %v9512_v25 = vrot.slane %v9496_v6, %v14635_v16 }
 0xb03   : > { %v9467_v17 = vsel %vm1380_vm1, %v14377_v11, %v9417_v12 }
 0xb04   : > { %v9527_v62 = vcombine.low %v9505_v22, %v9512_v25 }
 0xb06   : > { %v9421_v38 = vpop.permute.xlu0 %9420  ;;  %v9535_v11 = vrot.slane %v9527_v62, %v14635_v16 }
 0xb07   : > { %v9468_v5 = vsel %vm1380_vm1, %v9281_v31, %v9421_v38 }
 0xb08   : > { %v9497_v42 = vcombine.low %v9467_v17, %v9468_v5 }
 0xb0a   : > { %v9425_v26 = vpop.permute.xlu0 %9424  ;;  %v9519_v45 = vrot.slane %v9497_v42, %v14635_v16 }
 0xb0b   : > { %v9469_v40 = vsel %vm1380_vm1, %v9289_v48, %v9425_v26 }
 0xb0e   : > { %v9429_v27 = vpop.permute.xlu0 %9428 }
 0xb0f   : > { %v9470_v1 = vsel %vm1380_vm1, %v9296_v60, %v9429_v27 }
 0xb10   : > { %v9498_v20 = vcombine.low %v9469_v40, %v9470_v1 }
 0xb12   : > { %v9526_v15 = vrot.slane %v9498_v20, %v14635_v16  ;;  %v9433_v37 = vpop.permute.xlu0 %9432 }
 0xb13   : > { %v9471_v39 = vsel %vm1380_vm1, %v14398_v19, %v9433_v37 }
 0xb14   : > { %v9528_v33 = vcombine.low %v9519_v45, %v9526_v15 }
 0xb16   : > { %v9542_v31 = vrot.slane %v9528_v33, %v14635_v16  ;;  %v9437_v2 = vpop.permute.xlu0 %9436 }
 0xb17   : > { %v9472_v32 = vsel %vm1380_vm1, %v14408_v53, %v9437_v2 }
 0xb18   : > { %v9543_v4 = vcombine.low %v9535_v11, %v9542_v31  ;;  %v9544_v43 = vcombine.low %v9471_v39, %v9472_v32 }
 0xb1a   : > { %v9441_v48 = vpop.permute.xlu0 %9440  ;;  %9595 = vst [vmem:[%s14466_s25] sm:$0xff] %v9543_v4  ;;  %v9554_v3 = vrot.slane %v9544_v43, %v14635_v16 }
 0xb1b   : > { %v9473_v54 = vsel %vm1380_vm1, %v14413_v21, %v9441_v48 }
 0xb1e   : > { %v9445_v49 = vpop.permute.xlu0 %9444 }
 0xb1f   : > { %v9474_v35 = vsel %vm1380_vm1, %v9345_v0, %v9445_v49 }
 0xb20   : > { %v9545_v28 = vcombine.low %v9473_v54, %v9474_v35 }
 0xb22   : > { %v9449_v44 = vpop.permute.xlu0 %9448  ;;  %v9561_v14 = vrot.slane %v9545_v28, %v14635_v16 }
 0xb23   : > { %v9475_v51 = vsel %vm1380_vm1, %v14424_v61, %v9449_v44 }
 0xb24   : > { %v9576_v47 = vcombine.low %v9554_v3, %v9561_v14 }
 0xb26   : > { %v9453_v60 = vpop.permute.xlu0 %9452  ;;  %v9584_v52 = vrot.slane %v9576_v47, %v14635_v16 }
 0xb27   : > { %v9476_v36 = vsel %vm1380_vm1, %v9379_v9, %v9453_v60 }
 0xb28   : > { %v9546_v0 = vcombine.low %v9475_v51, %v9476_v36 }
 0xb2a   : > { %v9457_v24 = vpop.permute.xlu0 %9456  ;;  %v9568_v23 = vrot.slane %v9546_v0, %v14635_v16 }
 0xb2b   : > { %v9477_v21 = vsel %vm1380_vm1, %v9387_v46, %v9457_v24 }
 0xb2e   : > { %v9461_v53 = vpop.permute.xlu0 %9460 }
 0xb2f   : > { %v9478_v34 = vsel %vm1380_vm1, %v9394_v10, %v9461_v53 }
 0xb30   : > { %v9547_v19 = vcombine.low %v9477_v21, %v9478_v34 }
 0xb32   : > { %v9575_v7 = vrot.slane %v9547_v19, %v14635_v16 }
 0xb34   : > { %v9577_v61 = vcombine.low %v9568_v23, %v9575_v7 }
 0xb36   : > { %v9591_v9 = vrot.slane %v9577_v61, %v14635_v16 }
 0xb38   : > { %v9592_v29 = vcombine.low %v9584_v52, %v9591_v9 }
 0xb3a   : > { %9596 = vst [vmem:[%s14466_s25 + $0x8] sm:$0xff] %v9592_v29 }
 0xb3b   : > { %10525 = shalt.err (!%p10522_p3)
}
 0xb3c   : > { %s10526_s17 = scalar_lea.hbm %s14492_s30, 256  ;;  %s10530_s16 = scalar_lea.hbm %s14552_s15, 512 }
 0xb3d   : > { %p10527_p4 = scmp.ne.s32.totalorder %s14492_s30, %s10526_s17  ;;  %p10531_p9 = scmp.lt.u32.totalorder %s14492_s30, %s14552_s15 }
 0xb3e   : > { %p10532_p10 = scmp.lt.u32.totalorder %s10530_s16, %s10526_s17  ;;  %p10534_p12 = scmp.lt.u32.totalorder %s10526_s17, %s14492_s30 }
 0xb3f   : > { %p10528_p7 = pnand %p10527_p4, %p10708_p5 }
 0xb40   : > { %p10533_p11 = por %p10532_p10, %p10531_p9 }
 0xb41   : > { %p10529_p8 = pneg %p10528_p7 }
 0xb42   : > { %p10535_p13 = por %p10534_p12, %p10533_p11 }
 0xb44   : > { %p10536_p0 = pnand %p10535_p13, %p10529_p8 }
 0xb46   : > { %10539 = shalt.err (!%p10536_p0)
}
 0xb47   : > { %10290 = dma.vmem_to_hbm [thread:$0]  (%p10708_p5), %s14494_s0, 256, %s14492_s30, %s9598_s20  }
 0xb48 PF: > { %p10296_p1 = scmp.ge.s32.totalorder %s10574_s21, 2  ;;  %s9624_s1 = sand.u32 1, %s10562_s18  }
 0xb49   : > { %s9625_s22 = scalar_lea.sflag [#allocation3], %s9624_s1 }
 0xb4a   : > { %p10293_p2 = pnand %p10296_p1, %p10712_p6 }
 0xb4c   : > { %10557 = dma.done.wait (!%p10293_p2), %s9625_s22, 256  }
 0xb4d   : > { %10559 = vsyncadd (!%p10293_p2), %s9625_s22, 4294967040  ;;  %s14636_s21 = sld [smem:[#allocation6_spill]]  ;;  %s14637_s23 = sld [smem:[#allocation5_spill]] }
 0xb4e   : > { %s14638_s20 = sld [smem:[#allocation7_spill]]  ;;  %s14639_s18 = smov %s10566_s19 }
 0xb53   : > { %p25_p3 = scmp.ge.s32.totalorder %s14636_s21, 4   ;;  %s14640_s19 = smov %s14637_s23 }
 0xb55   :  { %27 = sbr.rel (!%p25_p3) target bundleno = 6 (0x6), region = 131 }
 0xb5c   :  { %9630 = vsyncpa [#allocation3], 1 }
 0xb5d   :  { %9632 = vsyncpa [#allocation3 + $0x1], 1 }

</bundles_post_ra>
